<compile_context>
chip_gen: v7x
topology: tpu7x:2x2x1
jax: 0.10.0
libtpu: 0.0.40
codegen_flags: <defaults>
</compile_context>

<pallas_src>
import functools

import numpy as np
import jax
import jax.numpy as jnp
from jax import lax
from jax.experimental import pallas as pl
from jax.experimental.pallas import tpu as pltpu


# ----------------------------------------------------------------------------
# Parameter construction (deterministic, mirrors HiPPO.__init__ for method='legt',
# discretization='bilinear', c=0.0) -- plain numpy, no file loading.
# ----------------------------------------------------------------------------
def transition_legt(N):
    Q = np.arange(N, dtype=np.float64)
    R = (2 * Q + 1) ** 0.5
    j, i = np.meshgrid(Q, Q)
    A = R[:, None] * np.where(i < j, (-1.0) ** (i - j), 1) * R[None, :]
    B = R[:, None]
    A = -A
    return A, B


def bilinear_discretize(A, B, dt):
    # Equivalent to scipy.signal.cont2discrete((A,B,C,D), dt, method='bilinear')
    N = A.shape[0]
    I = np.eye(N)
    ima = I - (dt / 2.0) * A
    dA = np.linalg.solve(ima, I + (dt / 2.0) * A)
    dB = np.linalg.solve(ima, dt * B)
    return dA, dB.squeeze(-1)


def build_chunk_operators(dA, dB, K):
    """Precompute (float64) the chunked-recurrence operators, with M = dA^T.

    P     : (N, K*N)  column-block j = M^{j+1}                        (homogeneous)
    Wtoe  : (K, K*N)  Wtoe[i, j*N:(j+1)*N] = dB @ M^{j-i}, j >= i     (inhomogeneous)
    MK    : (N, N)    M^K                                             (carry, homogeneous)
    Wlast : (K, N)    Wlast[i] = dB @ M^{K-1-i}                       (carry, inhomog.)
    """
    N = dA.shape[0]
    M = dA.T
    powers = [np.eye(N)]
    for _ in range(K):
        powers.append(powers[-1] @ M)

    P = np.concatenate([powers[j + 1] for j in range(K)], axis=1)       # (N, K*N)

    W = np.stack([dB @ powers[m] for m in range(K)], axis=0)            # (K, N)
    Wtoe = np.zeros((K, K * N), dtype=np.float64)
    for i in range(K):
        for j in range(i, K):
            Wtoe[i, j * N:(j + 1) * N] = W[j - i]

    MK = powers[K]
    Wlast = np.ascontiguousarray(W[::-1])                                # (K, N)
    return P, Wtoe, MK, Wlast


# ----------------------------------------------------------------------------
# Pallas kernel: one grid step per group of G chunks (G*K timesteps).
# ----------------------------------------------------------------------------
def _hippo_kernel(G, BP, B, K, N, CB,
                  f_ref, P_ref, Wtoe_ref, MK_ref, Wl_ref,
                  out_ref, c_ref, inh_ref, cin_ref):
    @pl.when(pl.program_id(0) == 0)
    def _():
        c_ref[...] = jnp.zeros_like(c_ref)

    f = f_ref[...]                                    # (G*BP, K)
    n_cb = (K * N) // CB

    # --- Hoisted, state-independent work (off the sequential chain) ---------
    # One wide matmul per 1024-lane column block: MXU M-dim = G*BP rows.
    for cb in range(n_cb):                            # static
        lo = cb * CB
        inh_ref[:, lo:lo + CB] = jnp.dot(
            f, Wtoe_ref[:, lo:lo + CB], preferred_element_type=jnp.float32)
    # Inhomogeneous part of the per-chunk carry, for all G chunks at once.
    cin_ref[...] = jnp.dot(f, Wl_ref[...], preferred_element_type=jnp.float32)

    # --- Sequential chain: only the tiny state-dependent term + carry -------
    def body(g, c):
        row0 = pl.multiple_of(g * BP, BP)             # aligned sublane slab of chunk g
        for cb in range(n_cb):                        # static
            lo = cb * CB
            blk = jnp.dot(c, P_ref[:, lo:lo + CB],
                          preferred_element_type=jnp.float32)
            blk = blk + inh_ref[pl.ds(row0, BP), lo:lo + CB]
            out_ref[g, :, lo:lo + CB] = blk[:B]       # store only real batch rows
        # Aligned carry: c_next = c @ M^K + f_g @ W_last (no unaligned lane slice).
        c_next = jnp.dot(c, MK_ref[...], preferred_element_type=jnp.float32)
        return c_next + cin_ref[pl.ds(row0, BP), :]

    c_ref[...] = lax.fori_loop(0, G, body, c_ref[...], unroll=(G <= 8))


def hippo_forward(inputs, P, Wtoe, MK, Wlast, *, N, K, G=4, chunked_output=False):
    """inputs: (L, B) float32 -> (L, B, N) float32 (or (C, B, K, N) if chunked_output)."""
    L, Bsz = inputs.shape
    BP = ((Bsz + 7) // 8) * 8                 # sublane-pad batch to a multiple of 8
    S = int(pl.cdiv(L, K * G))                # grid steps
    C = S * G                                 # total chunks
    Lpad = C * K

    x = inputs
    if Lpad != L:
        # Zero-pad the tail; forward recurrence => padded steps never affect t < L.
        x = jnp.pad(x, ((0, Lpad - L), (0, 0)))

    # (Lpad, B) -> (C, B, K) -> pad batch to BP -> (C*BP, K).  Tiny vs the output
    # (factor ~1/(4N)), so this wrapper rearrange is negligible HBM traffic.
    f = x.reshape(C, K, Bsz).transpose(0, 2, 1)
    f = jnp.pad(f, ((0, 0), (0, BP - Bsz), (0, 0))).reshape(C * BP, K)

    CB = min(K * N, 1024)                     # column-block width for the wide matmuls
    assert (K * N) % CB == 0

    out = pl.pallas_call(
        functools.partial(_hippo_kernel, G, BP, Bsz, K, N, CB),
        out_shape=jax.ShapeDtypeStruct((C, Bsz, K * N), jnp.float32),
        grid_spec=pltpu.PrefetchScalarGridSpec(
            num_scalar_prefetch=0,
            grid=(S,),
            in_specs=[
                pl.BlockSpec((G * BP, K), lambda s: (s, 0)),     # chunk inputs
                pl.BlockSpec((N, K * N), lambda s: (0, 0)),      # P      (resident)
                pl.BlockSpec((K, K * N), lambda s: (0, 0)),      # Wtoe   (resident)
                pl.BlockSpec((N, N), lambda s: (0, 0)),          # M^K    (resident)
                pl.BlockSpec((K, N), lambda s: (0, 0)),          # W_last (resident)
            ],
            out_specs=pl.BlockSpec((G, Bsz, K * N), lambda s: (s, 0, 0)),
            scratch_shapes=[
                pltpu.VMEM((BP, N), jnp.float32),                # carried state c
                pltpu.VMEM((G * BP, K * N), jnp.float32),        # hoisted inh term
                pltpu.VMEM((G * BP, N), jnp.float32),            # hoisted carry term
            ],
        ),
        compiler_params=pltpu.CompilerParams(
            dimension_semantics=("arbitrary",),     # recurrence over grid steps
            vmem_limit_bytes=32 * 1024 * 1024,      # <= v7x physical 64 MiB; ~6 MB used
        ),
    )(f, P, Wtoe, MK, Wlast)

    if chunked_output:
        # Free reshape, no transpose: preferred consumption path at large L.
        return out.reshape(C, Bsz, K, N)

    # Time-major (L, B, N) view for the reference check / spec-conformant output.
    out = out.reshape(C, Bsz, K, N).transpose(0, 2, 1, 3).reshape(Lpad, Bsz, N)
    return out[:L]


# ----------------------------------------------------------------------------
# Pure-JAX step-by-step reference for the correctness check.
# ----------------------------------------------------------------------------
def hippo_forward_ref(inputs, dA, dB):
    def step(c, ft):
        c = c @ dA.T + dB[None, :] * ft[:, None]
        return c, c

    c0 = jnp.zeros((inputs.shape[1], dA.shape[0]), jnp.float32)
    _, cs = jax.lax.scan(step, c0, inputs)
    return cs


if __name__ == "__main__":
    N = 32        # HiPPO order
    L = 1024      # sequence length
    Bsz = 2       # batch ("..." dims of the PyTorch forward)
    K = 128       # timesteps per chunk
    G = 4         # chunks per grid step
    dt = 1.0 / L

    A, Bmat = transition_legt(N)                     # method='legt', c=0.0
    dA_np, dB_np = bilinear_discretize(A, Bmat, dt)
    P_np, Wtoe_np, MK_np, Wlast_np = build_chunk_operators(dA_np, dB_np, K)

    dA = jnp.asarray(dA_np, dtype=jnp.float32)
    dB = jnp.asarray(dB_np, dtype=jnp.float32)
    P = jnp.asarray(P_np, dtype=jnp.float32)
    Wtoe = jnp.asarray(Wtoe_np, dtype=jnp.float32)
    MK = jnp.asarray(MK_np, dtype=jnp.float32)
    Wlast = jnp.asarray(Wlast_np, dtype=jnp.float32)

    key = jax.random.PRNGKey(0)
    inputs = jax.random.normal(key, (L, Bsz), dtype=jnp.float32)

    out = jax.block_until_ready(
        hippo_forward(inputs, P, Wtoe, MK, Wlast, N=N, K=K, G=G))
    ref = jax.block_until_ready(hippo_forward_ref(inputs, dA, dB))

    assert out.shape == (L, Bsz, N)
    # The chunked reformulation (f64-built operators, different f32 summation order)
    # differs slightly from the step-by-step f32 reference; a structurally wrong kernel
    # would be off by O(1), far outside these tolerances.
    np.testing.assert_allclose(np.asarray(out), np.asarray(ref), rtol=1e-2, atol=1e-3)

    print("KERNEL_OK")
</pallas_src>

<mosaic_0001>
module attributes {stable_mosaic.version = 11 : i64} {
  func.func @_hippo_kernel(%arg0: i32, %arg1: memref<32x128xf32, #tpu.memory_space<vmem>>, %arg2: memref<32x4096xf32, #tpu.memory_space<vmem>>, %arg3: memref<128x4096xf32, #tpu.memory_space<vmem>>, %arg4: memref<32x32xf32, #tpu.memory_space<vmem>>, %arg5: memref<128x32xf32, #tpu.memory_space<vmem>>, %arg6: memref<4x2x4096xf32, #tpu.memory_space<vmem>>, %arg7: memref<8x32xf32, #tpu.memory_space<vmem>>, %arg8: memref<32x4096xf32, #tpu.memory_space<vmem>>, %arg9: memref<32x32xf32, #tpu.memory_space<vmem>>) attributes {dimension_semantics = [#tpu.dimension_semantics<arbitrary>], iteration_bounds = array<i64: 2>, scalar_prefetch = 0 : i64, scratch_operands = 3 : i64, tpu.core_type = #tpu.core_type<tc>, window_params = [{transform_indices = @transform_0, window_bounds = array<i64: 32, 128>}, {pipeline_mode = #tpu.pipeline_mode<synchronous>, transform_indices = @transform_1, window_bounds = array<i64: 32, 4096>}, {pipeline_mode = #tpu.pipeline_mode<synchronous>, transform_indices = @transform_2, window_bounds = array<i64: 128, 4096>}, {pipeline_mode = #tpu.pipeline_mode<synchronous>, transform_indices = @transform_3, window_bounds = array<i64: 32, 32>}, {pipeline_mode = #tpu.pipeline_mode<synchronous>, transform_indices = @transform_4, window_bounds = array<i64: 128, 32>}, {transform_indices = @transform_5, window_bounds = array<i64: 4, 2, 4096>}]} {
    %c0_i32 = arith.constant 0 : i32
    %0 = arith.cmpi eq, %arg0, %c0_i32 : i32
    %1 = arith.extui %0 : i1 to i32
    %c0_i32_0 = arith.constant 0 : i32
    %2 = arith.cmpi ne, %1, %c0_i32_0 : i32
    scf.if %2 {
      %cst_143 = arith.constant 0.000000e+00 : f32
      %209 = vector.broadcast %cst_143 : f32 to vector<8x32xf32>
      %c0_144 = arith.constant 0 : index
      %c0_145 = arith.constant 0 : index
      %210 = vector.load %arg7[%c0_144, %c0_145] : memref<8x32xf32, #tpu.memory_space<vmem>>, vector<8x32xf32>
      tpu.vector_store %arg7[%c0_144, %c0_145], %209 {strides = array<i32>} : memref<8x32xf32, #tpu.memory_space<vmem>>, vector<8x32xf32>,
    } else {
    }
    %c0 = arith.constant 0 : index
    %c0_1 = arith.constant 0 : index
    %3 = vector.load %arg1[%c0, %c0_1] : memref<32x128xf32, #tpu.memory_space<vmem>>, vector<32x128xf32>
    %c0_2 = arith.constant 0 : index
    %c0_3 = arith.constant 0 : index
    %4 = vector.load %arg3[%c0_2, %c0_3] : memref<128x4096xf32, #tpu.memory_space<vmem>>, vector<128x1024xf32>
    %cst = arith.constant dense<0.000000e+00> : vector<32x1024xf32>
    %5 = tpu.matmul %3, %4, %cst {dimension_numbers = #tpu.dot_dimension_numbers<[1], [0], [0], [1], [0, 0, 1, 1], [], []>} : vector<32x128xf32>, vector<128x1024xf32>, vector<32x1024xf32> -> vector<32x1024xf32>
    %c0_4 = arith.constant 0 : index
    %c0_5 = arith.constant 0 : index
    %6 = vector.load %arg8[%c0_4, %c0_5] : memref<32x4096xf32, #tpu.memory_space<vmem>>, vector<32x1024xf32>
    tpu.vector_store %arg8[%c0_4, %c0_5], %5 {strides = array<i32>} : memref<32x4096xf32, #tpu.memory_space<vmem>>, vector<32x1024xf32>,
    %c0_6 = arith.constant 0 : index
    %c1024 = arith.constant 1024 : index
    %7 = vector.load %arg3[%c0_6, %c1024] : memref<128x4096xf32, #tpu.memory_space<vmem>>, vector<128x1024xf32>
    %cst_7 = arith.constant dense<0.000000e+00> : vector<32x1024xf32>
    %8 = tpu.matmul %3, %7, %cst_7 {dimension_numbers = #tpu.dot_dimension_numbers<[1], [0], [0], [1], [0, 0, 1, 1], [], []>} : vector<32x128xf32>, vector<128x1024xf32>, vector<32x1024xf32> -> vector<32x1024xf32>
    %c0_8 = arith.constant 0 : index
    %c1024_9 = arith.constant 1024 : index
    %9 = vector.load %arg8[%c0_8, %c1024_9] : memref<32x4096xf32, #tpu.memory_space<vmem>>, vector<32x1024xf32>
    tpu.vector_store %arg8[%c0_8, %c1024_9], %8 {strides = array<i32>} : memref<32x4096xf32, #tpu.memory_space<vmem>>, vector<32x1024xf32>,
    %c0_10 = arith.constant 0 : index
    %c2048 = arith.constant 2048 : index
    %10 = vector.load %arg3[%c0_10, %c2048] : memref<128x4096xf32, #tpu.memory_space<vmem>>, vector<128x1024xf32>
    %cst_11 = arith.constant dense<0.000000e+00> : vector<32x1024xf32>
    %11 = tpu.matmul %3, %10, %cst_11 {dimension_numbers = #tpu.dot_dimension_numbers<[1], [0], [0], [1], [0, 0, 1, 1], [], []>} : vector<32x128xf32>, vector<128x1024xf32>, vector<32x1024xf32> -> vector<32x1024xf32>
    %c0_12 = arith.constant 0 : index
    %c2048_13 = arith.constant 2048 : index
    %12 = vector.load %arg8[%c0_12, %c2048_13] : memref<32x4096xf32, #tpu.memory_space<vmem>>, vector<32x1024xf32>
    tpu.vector_store %arg8[%c0_12, %c2048_13], %11 {strides = array<i32>} : memref<32x4096xf32, #tpu.memory_space<vmem>>, vector<32x1024xf32>,
    %c0_14 = arith.constant 0 : index
    %c3072 = arith.constant 3072 : index
    %13 = vector.load %arg3[%c0_14, %c3072] : memref<128x4096xf32, #tpu.memory_space<vmem>>, vector<128x1024xf32>
    %cst_15 = arith.constant dense<0.000000e+00> : vector<32x1024xf32>
    %14 = tpu.matmul %3, %13, %cst_15 {dimension_numbers = #tpu.dot_dimension_numbers<[1], [0], [0], [1], [0, 0, 1, 1], [], []>} : vector<32x128xf32>, vector<128x1024xf32>, vector<32x1024xf32> -> vector<32x1024xf32>
    %c0_16 = arith.constant 0 : index
    %c3072_17 = arith.constant 3072 : index
    %15 = vector.load %arg8[%c0_16, %c3072_17] : memref<32x4096xf32, #tpu.memory_space<vmem>>, vector<32x1024xf32>
    tpu.vector_store %arg8[%c0_16, %c3072_17], %14 {strides = array<i32>} : memref<32x4096xf32, #tpu.memory_space<vmem>>, vector<32x1024xf32>,
    %c0_18 = arith.constant 0 : index
    %c0_19 = arith.constant 0 : index
    %16 = vector.load %arg5[%c0_18, %c0_19] : memref<128x32xf32, #tpu.memory_space<vmem>>, vector<128x32xf32>
    %cst_20 = arith.constant dense<0.000000e+00> : vector<32x32xf32>
    %17 = tpu.matmul %3, %16, %cst_20 {dimension_numbers = #tpu.dot_dimension_numbers<[1], [0], [0], [1], [0, 0, 1, 1], [], []>} : vector<32x128xf32>, vector<128x32xf32>, vector<32x32xf32> -> vector<32x32xf32>
    %c0_21 = arith.constant 0 : index
    %c0_22 = arith.constant 0 : index
    %18 = vector.load %arg9[%c0_21, %c0_22] : memref<32x32xf32, #tpu.memory_space<vmem>>, vector<32x32xf32>
    tpu.vector_store %arg9[%c0_21, %c0_22], %17 {strides = array<i32>} : memref<32x32xf32, #tpu.memory_space<vmem>>, vector<32x32xf32>,
    %c0_23 = arith.constant 0 : index
    %c0_24 = arith.constant 0 : index
    %19 = vector.load %arg7[%c0_23, %c0_24] : memref<8x32xf32, #tpu.memory_space<vmem>>, vector<8x32xf32>
    %c0_i32_25 = arith.constant 0 : i32
    %c8_i32 = arith.constant 8 : i32
    %20 = arith.muli %c0_i32_25, %c8_i32 : i32
    %21 = tpu.assume_multiple %20, 8 : i32
    %c0_26 = arith.constant 0 : index
    %c0_27 = arith.constant 0 : index
    %22 = vector.load %arg2[%c0_26, %c0_27] : memref<32x4096xf32, #tpu.memory_space<vmem>>, vector<32x1024xf32>
    %cst_28 = arith.constant dense<0.000000e+00> : vector<8x1024xf32>
    %23 = tpu.matmul %19, %22, %cst_28 {dimension_numbers = #tpu.dot_dimension_numbers<[1], [0], [0], [1], [0, 0, 1, 1], [], []>} : vector<8x32xf32>, vector<32x1024xf32>, vector<8x1024xf32> -> vector<8x1024xf32>
    %24 = arith.index_cast %21 : i32 to index
    %c0_29 = arith.constant 0 : index
    %25 = vector.load %arg8[%24, %c0_29] : memref<32x4096xf32, #tpu.memory_space<vmem>>, vector<8x1024xf32>
    %26 = arith.addf %23, %25 : vector<8x1024xf32>
    %27 = vector.extract_strided_slice %26 {offsets = [0, 0], sizes = [2, 1024], strides = [1, 1]} : vector<8x1024xf32> to vector<2x1024xf32>
    %28 = arith.index_cast %c0_i32_25 : i32 to index
    %c0_30 = arith.constant 0 : index
    %c0_31 = arith.constant 0 : index
    %29 = vector.load %arg6[%28, %c0_30, %c0_31] : memref<4x2x4096xf32, #tpu.memory_space<vmem>>, vector<1x2x1024xf32>
    %30 = vector.shape_cast %29 : vector<1x2x1024xf32> to vector<2x1024xf32>
    %31 = vector.shape_cast %27 : vector<2x1024xf32> to vector<1x2x1024xf32>
    tpu.vector_store %arg6[%28, %c0_30, %c0_31], %31 {strides = array<i32>} : memref<4x2x4096xf32, #tpu.memory_space<vmem>>, vector<1x2x1024xf32>,
    %c0_32 = arith.constant 0 : index
    %c1024_33 = arith.constant 1024 : index
    %32 = vector.load %arg2[%c0_32, %c1024_33] : memref<32x4096xf32, #tpu.memory_space<vmem>>, vector<32x1024xf32>
    %cst_34 = arith.constant dense<0.000000e+00> : vector<8x1024xf32>
    %33 = tpu.matmul %19, %32, %cst_34 {dimension_numbers = #tpu.dot_dimension_numbers<[1], [0], [0], [1], [0, 0, 1, 1], [], []>} : vector<8x32xf32>, vector<32x1024xf32>, vector<8x1024xf32> -> vector<8x1024xf32>
    %34 = arith.index_cast %21 : i32 to index
    %c1024_35 = arith.constant 1024 : index
    %35 = vector.load %arg8[%34, %c1024_35] : memref<32x4096xf32, #tpu.memory_space<vmem>>, vector<8x1024xf32>
    %36 = arith.addf %33, %35 : vector<8x1024xf32>
    %37 = vector.extract_strided_slice %36 {offsets = [0, 0], sizes = [2, 1024], strides = [1, 1]} : vector<8x1024xf32> to vector<2x1024xf32>
    %38 = arith.index_cast %c0_i32_25 : i32 to index
    %c0_36 = arith.constant 0 : index
    %c1024_37 = arith.constant 1024 : index
    %39 = vector.load %arg6[%38, %c0_36, %c1024_37] : memref<4x2x4096xf32, #tpu.memory_space<vmem>>, vector<1x2x1024xf32>
    %40 = vector.shape_cast %39 : vector<1x2x1024xf32> to vector<2x1024xf32>
    %41 = vector.shape_cast %37 : vector<2x1024xf32> to vector<1x2x1024xf32>
    tpu.vector_store %arg6[%38, %c0_36, %c1024_37], %41 {strides = array<i32>} : memref<4x2x4096xf32, #tpu.memory_space<vmem>>, vector<1x2x1024xf32>,
    %c0_38 = arith.constant 0 : index
    %c2048_39 = arith.constant 2048 : index
    %42 = vector.load %arg2[%c0_38, %c2048_39] : memref<32x4096xf32, #tpu.memory_space<vmem>>, vector<32x1024xf32>
    %cst_40 = arith.constant dense<0.000000e+00> : vector<8x1024xf32>
    %43 = tpu.matmul %19, %42, %cst_40 {dimension_numbers = #tpu.dot_dimension_numbers<[1], [0], [0], [1], [0, 0, 1, 1], [], []>} : vector<8x32xf32>, vector<32x1024xf32>, vector<8x1024xf32> -> vector<8x1024xf32>
    %44 = arith.index_cast %21 : i32 to index
    %c2048_41 = arith.constant 2048 : index
    %45 = vector.load %arg8[%44, %c2048_41] : memref<32x4096xf32, #tpu.memory_space<vmem>>, vector<8x1024xf32>
    %46 = arith.addf %43, %45 : vector<8x1024xf32>
    %47 = vector.extract_strided_slice %46 {offsets = [0, 0], sizes = [2, 1024], strides = [1, 1]} : vector<8x1024xf32> to vector<2x1024xf32>
    %48 = arith.index_cast %c0_i32_25 : i32 to index
    %c0_42 = arith.constant 0 : index
    %c2048_43 = arith.constant 2048 : index
    %49 = vector.load %arg6[%48, %c0_42, %c2048_43] : memref<4x2x4096xf32, #tpu.memory_space<vmem>>, vector<1x2x1024xf32>
    %50 = vector.shape_cast %49 : vector<1x2x1024xf32> to vector<2x1024xf32>
    %51 = vector.shape_cast %47 : vector<2x1024xf32> to vector<1x2x1024xf32>
    tpu.vector_store %arg6[%48, %c0_42, %c2048_43], %51 {strides = array<i32>} : memref<4x2x4096xf32, #tpu.memory_space<vmem>>, vector<1x2x1024xf32>,
    %c0_44 = arith.constant 0 : index
    %c3072_45 = arith.constant 3072 : index
    %52 = vector.load %arg2[%c0_44, %c3072_45] : memref<32x4096xf32, #tpu.memory_space<vmem>>, vector<32x1024xf32>
    %cst_46 = arith.constant dense<0.000000e+00> : vector<8x1024xf32>
    %53 = tpu.matmul %19, %52, %cst_46 {dimension_numbers = #tpu.dot_dimension_numbers<[1], [0], [0], [1], [0, 0, 1, 1], [], []>} : vector<8x32xf32>, vector<32x1024xf32>, vector<8x1024xf32> -> vector<8x1024xf32>
    %54 = arith.index_cast %21 : i32 to index
    %c3072_47 = arith.constant 3072 : index
    %55 = vector.load %arg8[%54, %c3072_47] : memref<32x4096xf32, #tpu.memory_space<vmem>>, vector<8x1024xf32>
    %56 = arith.addf %53, %55 : vector<8x1024xf32>
    %57 = vector.extract_strided_slice %56 {offsets = [0, 0], sizes = [2, 1024], strides = [1, 1]} : vector<8x1024xf32> to vector<2x1024xf32>
    %58 = arith.index_cast %c0_i32_25 : i32 to index
    %c0_48 = arith.constant 0 : index
    %c3072_49 = arith.constant 3072 : index
    %59 = vector.load %arg6[%58, %c0_48, %c3072_49] : memref<4x2x4096xf32, #tpu.memory_space<vmem>>, vector<1x2x1024xf32>
    %60 = vector.shape_cast %59 : vector<1x2x1024xf32> to vector<2x1024xf32>
    %61 = vector.shape_cast %57 : vector<2x1024xf32> to vector<1x2x1024xf32>
    tpu.vector_store %arg6[%58, %c0_48, %c3072_49], %61 {strides = array<i32>} : memref<4x2x4096xf32, #tpu.memory_space<vmem>>, vector<1x2x1024xf32>,
    %c0_50 = arith.constant 0 : index
    %c0_51 = arith.constant 0 : index
    %62 = vector.load %arg4[%c0_50, %c0_51] : memref<32x32xf32, #tpu.memory_space<vmem>>, vector<32x32xf32>
    %cst_52 = arith.constant dense<0.000000e+00> : vector<8x32xf32>
    %63 = tpu.matmul %19, %62, %cst_52 {dimension_numbers = #tpu.dot_dimension_numbers<[1], [0], [0], [1], [0, 0, 1, 1], [], []>} : vector<8x32xf32>, vector<32x32xf32>, vector<8x32xf32> -> vector<8x32xf32>
    %64 = arith.index_cast %21 : i32 to index
    %c0_53 = arith.constant 0 : index
    %65 = vector.load %arg9[%64, %c0_53] : memref<32x32xf32, #tpu.memory_space<vmem>>, vector<8x32xf32>
    %66 = arith.addf %63, %65 : vector<8x32xf32>
    %c1_i32 = arith.constant 1 : i32
    %c8_i32_54 = arith.constant 8 : i32
    %67 = arith.muli %c1_i32, %c8_i32_54 : i32
    %68 = tpu.assume_multiple %67, 8 : i32
    %c0_55 = arith.constant 0 : index
    %c0_56 = arith.constant 0 : index
    %69 = vector.load %arg2[%c0_55, %c0_56] : memref<32x4096xf32, #tpu.memory_space<vmem>>, vector<32x1024xf32>
    %cst_57 = arith.constant dense<0.000000e+00> : vector<8x1024xf32>
    %70 = tpu.matmul %66, %69, %cst_57 {dimension_numbers = #tpu.dot_dimension_numbers<[1], [0], [0], [1], [0, 0, 1, 1], [], []>} : vector<8x32xf32>, vector<32x1024xf32>, vector<8x1024xf32> -> vector<8x1024xf32>
    %71 = arith.index_cast %68 : i32 to index
    %c0_58 = arith.constant 0 : index
    %72 = vector.load %arg8[%71, %c0_58] : memref<32x4096xf32, #tpu.memory_space<vmem>>, vector<8x1024xf32>
    %73 = arith.addf %70, %72 : vector<8x1024xf32>
    %74 = vector.extract_strided_slice %73 {offsets = [0, 0], sizes = [2, 1024], strides = [1, 1]} : vector<8x1024xf32> to vector<2x1024xf32>
    %75 = arith.index_cast %c1_i32 : i32 to index
    %c0_59 = arith.constant 0 : index
    %c0_60 = arith.constant 0 : index
    %76 = vector.load %arg6[%75, %c0_59, %c0_60] : memref<4x2x4096xf32, #tpu.memory_space<vmem>>, vector<1x2x1024xf32>
    %77 = vector.shape_cast %76 : vector<1x2x1024xf32> to vector<2x1024xf32>
    %78 = vector.shape_cast %74 : vector<2x1024xf32> to vector<1x2x1024xf32>
    tpu.vector_store %arg6[%75, %c0_59, %c0_60], %78 {strides = array<i32>} : memref<4x2x4096xf32, #tpu.memory_space<vmem>>, vector<1x2x1024xf32>,
    %c0_61 = arith.constant 0 : index
    %c1024_62 = arith.constant 1024 : index
    %79 = vector.load %arg2[%c0_61, %c1024_62] : memref<32x4096xf32, #tpu.memory_space<vmem>>, vector<32x1024xf32>
    %cst_63 = arith.constant dense<0.000000e+00> : vector<8x1024xf32>
    %80 = tpu.matmul %66, %79, %cst_63 {dimension_numbers = #tpu.dot_dimension_numbers<[1], [0], [0], [1], [0, 0, 1, 1], [], []>} : vector<8x32xf32>, vector<32x1024xf32>, vector<8x1024xf32> -> vector<8x1024xf32>
    %81 = arith.index_cast %68 : i32 to index
    %c1024_64 = arith.constant 1024 : index
    %82 = vector.load %arg8[%81, %c1024_64] : memref<32x4096xf32, #tpu.memory_space<vmem>>, vector<8x1024xf32>
    %83 = arith.addf %80, %82 : vector<8x1024xf32>
    %84 = vector.extract_strided_slice %83 {offsets = [0, 0], sizes = [2, 1024], strides = [1, 1]} : vector<8x1024xf32> to vector<2x1024xf32>
    %85 = arith.index_cast %c1_i32 : i32 to index
    %c0_65 = arith.constant 0 : index
    %c1024_66 = arith.constant 1024 : index
    %86 = vector.load %arg6[%85, %c0_65, %c1024_66] : memref<4x2x4096xf32, #tpu.memory_space<vmem>>, vector<1x2x1024xf32>
    %87 = vector.shape_cast %86 : vector<1x2x1024xf32> to vector<2x1024xf32>
    %88 = vector.shape_cast %84 : vector<2x1024xf32> to vector<1x2x1024xf32>
    tpu.vector_store %arg6[%85, %c0_65, %c1024_66], %88 {strides = array<i32>} : memref<4x2x4096xf32, #tpu.memory_space<vmem>>, vector<1x2x1024xf32>,
    %c0_67 = arith.constant 0 : index
    %c2048_68 = arith.constant 2048 : index
    %89 = vector.load %arg2[%c0_67, %c2048_68] : memref<32x4096xf32, #tpu.memory_space<vmem>>, vector<32x1024xf32>
    %cst_69 = arith.constant dense<0.000000e+00> : vector<8x1024xf32>
    %90 = tpu.matmul %66, %89, %cst_69 {dimension_numbers = #tpu.dot_dimension_numbers<[1], [0], [0], [1], [0, 0, 1, 1], [], []>} : vector<8x32xf32>, vector<32x1024xf32>, vector<8x1024xf32> -> vector<8x1024xf32>
    %91 = arith.index_cast %68 : i32 to index
    %c2048_70 = arith.constant 2048 : index
    %92 = vector.load %arg8[%91, %c2048_70] : memref<32x4096xf32, #tpu.memory_space<vmem>>, vector<8x1024xf32>
    %93 = arith.addf %90, %92 : vector<8x1024xf32>
    %94 = vector.extract_strided_slice %93 {offsets = [0, 0], sizes = [2, 1024], strides = [1, 1]} : vector<8x1024xf32> to vector<2x1024xf32>
    %95 = arith.index_cast %c1_i32 : i32 to index
    %c0_71 = arith.constant 0 : index
    %c2048_72 = arith.constant 2048 : index
    %96 = vector.load %arg6[%95, %c0_71, %c2048_72] : memref<4x2x4096xf32, #tpu.memory_space<vmem>>, vector<1x2x1024xf32>
    %97 = vector.shape_cast %96 : vector<1x2x1024xf32> to vector<2x1024xf32>
    %98 = vector.shape_cast %94 : vector<2x1024xf32> to vector<1x2x1024xf32>
    tpu.vector_store %arg6[%95, %c0_71, %c2048_72], %98 {strides = array<i32>} : memref<4x2x4096xf32, #tpu.memory_space<vmem>>, vector<1x2x1024xf32>,
    %c0_73 = arith.constant 0 : index
    %c3072_74 = arith.constant 3072 : index
    %99 = vector.load %arg2[%c0_73, %c3072_74] : memref<32x4096xf32, #tpu.memory_space<vmem>>, vector<32x1024xf32>
    %cst_75 = arith.constant dense<0.000000e+00> : vector<8x1024xf32>
    %100 = tpu.matmul %66, %99, %cst_75 {dimension_numbers = #tpu.dot_dimension_numbers<[1], [0], [0], [1], [0, 0, 1, 1], [], []>} : vector<8x32xf32>, vector<32x1024xf32>, vector<8x1024xf32> -> vector<8x1024xf32>
    %101 = arith.index_cast %68 : i32 to index
    %c3072_76 = arith.constant 3072 : index
    %102 = vector.load %arg8[%101, %c3072_76] : memref<32x4096xf32, #tpu.memory_space<vmem>>, vector<8x1024xf32>
    %103 = arith.addf %100, %102 : vector<8x1024xf32>
    %104 = vector.extract_strided_slice %103 {offsets = [0, 0], sizes = [2, 1024], strides = [1, 1]} : vector<8x1024xf32> to vector<2x1024xf32>
    %105 = arith.index_cast %c1_i32 : i32 to index
    %c0_77 = arith.constant 0 : index
    %c3072_78 = arith.constant 3072 : index
    %106 = vector.load %arg6[%105, %c0_77, %c3072_78] : memref<4x2x4096xf32, #tpu.memory_space<vmem>>, vector<1x2x1024xf32>
    %107 = vector.shape_cast %106 : vector<1x2x1024xf32> to vector<2x1024xf32>
    %108 = vector.shape_cast %104 : vector<2x1024xf32> to vector<1x2x1024xf32>
    tpu.vector_store %arg6[%105, %c0_77, %c3072_78], %108 {strides = array<i32>} : memref<4x2x4096xf32, #tpu.memory_space<vmem>>, vector<1x2x1024xf32>,
    %c0_79 = arith.constant 0 : index
    %c0_80 = arith.constant 0 : index
    %109 = vector.load %arg4[%c0_79, %c0_80] : memref<32x32xf32, #tpu.memory_space<vmem>>, vector<32x32xf32>
    %cst_81 = arith.constant dense<0.000000e+00> : vector<8x32xf32>
    %110 = tpu.matmul %66, %109, %cst_81 {dimension_numbers = #tpu.dot_dimension_numbers<[1], [0], [0], [1], [0, 0, 1, 1], [], []>} : vector<8x32xf32>, vector<32x32xf32>, vector<8x32xf32> -> vector<8x32xf32>
    %111 = arith.index_cast %68 : i32 to index
    %c0_82 = arith.constant 0 : index
    %112 = vector.load %arg9[%111, %c0_82] : memref<32x32xf32, #tpu.memory_space<vmem>>, vector<8x32xf32>
    %113 = arith.addf %110, %112 : vector<8x32xf32>
    %c2_i32 = arith.constant 2 : i32
    %c8_i32_83 = arith.constant 8 : i32
    %114 = arith.muli %c2_i32, %c8_i32_83 : i32
    %115 = tpu.assume_multiple %114, 8 : i32
    %c0_84 = arith.constant 0 : index
    %c0_85 = arith.constant 0 : index
    %116 = vector.load %arg2[%c0_84, %c0_85] : memref<32x4096xf32, #tpu.memory_space<vmem>>, vector<32x1024xf32>
    %cst_86 = arith.constant dense<0.000000e+00> : vector<8x1024xf32>
    %117 = tpu.matmul %113, %116, %cst_86 {dimension_numbers = #tpu.dot_dimension_numbers<[1], [0], [0], [1], [0, 0, 1, 1], [], []>} : vector<8x32xf32>, vector<32x1024xf32>, vector<8x1024xf32> -> vector<8x1024xf32>
    %118 = arith.index_cast %115 : i32 to index
    %c0_87 = arith.constant 0 : index
    %119 = vector.load %arg8[%118, %c0_87] : memref<32x4096xf32, #tpu.memory_space<vmem>>, vector<8x1024xf32>
    %120 = arith.addf %117, %119 : vector<8x1024xf32>
    %121 = vector.extract_strided_slice %120 {offsets = [0, 0], sizes = [2, 1024], strides = [1, 1]} : vector<8x1024xf32> to vector<2x1024xf32>
    %122 = arith.index_cast %c2_i32 : i32 to index
    %c0_88 = arith.constant 0 : index
    %c0_89 = arith.constant 0 : index
    %123 = vector.load %arg6[%122, %c0_88, %c0_89] : memref<4x2x4096xf32, #tpu.memory_space<vmem>>, vector<1x2x1024xf32>
    %124 = vector.shape_cast %123 : vector<1x2x1024xf32> to vector<2x1024xf32>
    %125 = vector.shape_cast %121 : vector<2x1024xf32> to vector<1x2x1024xf32>
    tpu.vector_store %arg6[%122, %c0_88, %c0_89], %125 {strides = array<i32>} : memref<4x2x4096xf32, #tpu.memory_space<vmem>>, vector<1x2x1024xf32>,
    %c0_90 = arith.constant 0 : index
    %c1024_91 = arith.constant 1024 : index
    %126 = vector.load %arg2[%c0_90, %c1024_91] : memref<32x4096xf32, #tpu.memory_space<vmem>>, vector<32x1024xf32>
    %cst_92 = arith.constant dense<0.000000e+00> : vector<8x1024xf32>
    %127 = tpu.matmul %113, %126, %cst_92 {dimension_numbers = #tpu.dot_dimension_numbers<[1], [0], [0], [1], [0, 0, 1, 1], [], []>} : vector<8x32xf32>, vector<32x1024xf32>, vector<8x1024xf32> -> vector<8x1024xf32>
    %128 = arith.index_cast %115 : i32 to index
    %c1024_93 = arith.constant 1024 : index
    %129 = vector.load %arg8[%128, %c1024_93] : memref<32x4096xf32, #tpu.memory_space<vmem>>, vector<8x1024xf32>
    %130 = arith.addf %127, %129 : vector<8x1024xf32>
    %131 = vector.extract_strided_slice %130 {offsets = [0, 0], sizes = [2, 1024], strides = [1, 1]} : vector<8x1024xf32> to vector<2x1024xf32>
    %132 = arith.index_cast %c2_i32 : i32 to index
    %c0_94 = arith.constant 0 : index
    %c1024_95 = arith.constant 1024 : index
    %133 = vector.load %arg6[%132, %c0_94, %c1024_95] : memref<4x2x4096xf32, #tpu.memory_space<vmem>>, vector<1x2x1024xf32>
    %134 = vector.shape_cast %133 : vector<1x2x1024xf32> to vector<2x1024xf32>
    %135 = vector.shape_cast %131 : vector<2x1024xf32> to vector<1x2x1024xf32>
    tpu.vector_store %arg6[%132, %c0_94, %c1024_95], %135 {strides = array<i32>} : memref<4x2x4096xf32, #tpu.memory_space<vmem>>, vector<1x2x1024xf32>,
    %c0_96 = arith.constant 0 : index
    %c2048_97 = arith.constant 2048 : index
    %136 = vector.load %arg2[%c0_96, %c2048_97] : memref<32x4096xf32, #tpu.memory_space<vmem>>, vector<32x1024xf32>
    %cst_98 = arith.constant dense<0.000000e+00> : vector<8x1024xf32>
    %137 = tpu.matmul %113, %136, %cst_98 {dimension_numbers = #tpu.dot_dimension_numbers<[1], [0], [0], [1], [0, 0, 1, 1], [], []>} : vector<8x32xf32>, vector<32x1024xf32>, vector<8x1024xf32> -> vector<8x1024xf32>
    %138 = arith.index_cast %115 : i32 to index
    %c2048_99 = arith.constant 2048 : index
    %139 = vector.load %arg8[%138, %c2048_99] : memref<32x4096xf32, #tpu.memory_space<vmem>>, vector<8x1024xf32>
    %140 = arith.addf %137, %139 : vector<8x1024xf32>
    %141 = vector.extract_strided_slice %140 {offsets = [0, 0], sizes = [2, 1024], strides = [1, 1]} : vector<8x1024xf32> to vector<2x1024xf32>
    %142 = arith.index_cast %c2_i32 : i32 to index
    %c0_100 = arith.constant 0 : index
    %c2048_101 = arith.constant 2048 : index
    %143 = vector.load %arg6[%142, %c0_100, %c2048_101] : memref<4x2x4096xf32, #tpu.memory_space<vmem>>, vector<1x2x1024xf32>
    %144 = vector.shape_cast %143 : vector<1x2x1024xf32> to vector<2x1024xf32>
    %145 = vector.shape_cast %141 : vector<2x1024xf32> to vector<1x2x1024xf32>
    tpu.vector_store %arg6[%142, %c0_100, %c2048_101], %145 {strides = array<i32>} : memref<4x2x4096xf32, #tpu.memory_space<vmem>>, vector<1x2x1024xf32>,
    %c0_102 = arith.constant 0 : index
    %c3072_103 = arith.constant 3072 : index
    %146 = vector.load %arg2[%c0_102, %c3072_103] : memref<32x4096xf32, #tpu.memory_space<vmem>>, vector<32x1024xf32>
    %cst_104 = arith.constant dense<0.000000e+00> : vector<8x1024xf32>
    %147 = tpu.matmul %113, %146, %cst_104 {dimension_numbers = #tpu.dot_dimension_numbers<[1], [0], [0], [1], [0, 0, 1, 1], [], []>} : vector<8x32xf32>, vector<32x1024xf32>, vector<8x1024xf32> -> vector<8x1024xf32>
    %148 = arith.index_cast %115 : i32 to index
    %c3072_105 = arith.constant 3072 : index
    %149 = vector.load %arg8[%148, %c3072_105] : memref<32x4096xf32, #tpu.memory_space<vmem>>, vector<8x1024xf32>
    %150 = arith.addf %147, %149 : vector<8x1024xf32>
    %151 = vector.extract_strided_slice %150 {offsets = [0, 0], sizes = [2, 1024], strides = [1, 1]} : vector<8x1024xf32> to vector<2x1024xf32>
    %152 = arith.index_cast %c2_i32 : i32 to index
    %c0_106 = arith.constant 0 : index
    %c3072_107 = arith.constant 3072 : index
    %153 = vector.load %arg6[%152, %c0_106, %c3072_107] : memref<4x2x4096xf32, #tpu.memory_space<vmem>>, vector<1x2x1024xf32>
    %154 = vector.shape_cast %153 : vector<1x2x1024xf32> to vector<2x1024xf32>
    %155 = vector.shape_cast %151 : vector<2x1024xf32> to vector<1x2x1024xf32>
    tpu.vector_store %arg6[%152, %c0_106, %c3072_107], %155 {strides = array<i32>} : memref<4x2x4096xf32, #tpu.memory_space<vmem>>, vector<1x2x1024xf32>,
    %c0_108 = arith.constant 0 : index
    %c0_109 = arith.constant 0 : index
    %156 = vector.load %arg4[%c0_108, %c0_109] : memref<32x32xf32, #tpu.memory_space<vmem>>, vector<32x32xf32>
    %cst_110 = arith.constant dense<0.000000e+00> : vector<8x32xf32>
    %157 = tpu.matmul %113, %156, %cst_110 {dimension_numbers = #tpu.dot_dimension_numbers<[1], [0], [0], [1], [0, 0, 1, 1], [], []>} : vector<8x32xf32>, vector<32x32xf32>, vector<8x32xf32> -> vector<8x32xf32>
    %158 = arith.index_cast %115 : i32 to index
    %c0_111 = arith.constant 0 : index
    %159 = vector.load %arg9[%158, %c0_111] : memref<32x32xf32, #tpu.memory_space<vmem>>, vector<8x32xf32>
    %160 = arith.addf %157, %159 : vector<8x32xf32>
    %c3_i32 = arith.constant 3 : i32
    %c8_i32_112 = arith.constant 8 : i32
    %161 = arith.muli %c3_i32, %c8_i32_112 : i32
    %162 = tpu.assume_multiple %161, 8 : i32
    %c0_113 = arith.constant 0 : index
    %c0_114 = arith.constant 0 : index
    %163 = vector.load %arg2[%c0_113, %c0_114] : memref<32x4096xf32, #tpu.memory_space<vmem>>, vector<32x1024xf32>
    %cst_115 = arith.constant dense<0.000000e+00> : vector<8x1024xf32>
    %164 = tpu.matmul %160, %163, %cst_115 {dimension_numbers = #tpu.dot_dimension_numbers<[1], [0], [0], [1], [0, 0, 1, 1], [], []>} : vector<8x32xf32>, vector<32x1024xf32>, vector<8x1024xf32> -> vector<8x1024xf32>
    %165 = arith.index_cast %162 : i32 to index
    %c0_116 = arith.constant 0 : index
    %166 = vector.load %arg8[%165, %c0_116] : memref<32x4096xf32, #tpu.memory_space<vmem>>, vector<8x1024xf32>
    %167 = arith.addf %164, %166 : vector<8x1024xf32>
    %168 = vector.extract_strided_slice %167 {offsets = [0, 0], sizes = [2, 1024], strides = [1, 1]} : vector<8x1024xf32> to vector<2x1024xf32>
    %169 = arith.index_cast %c3_i32 : i32 to index
    %c0_117 = arith.constant 0 : index
    %c0_118 = arith.constant 0 : index
    %170 = vector.load %arg6[%169, %c0_117, %c0_118] : memref<4x2x4096xf32, #tpu.memory_space<vmem>>, vector<1x2x1024xf32>
    %171 = vector.shape_cast %170 : vector<1x2x1024xf32> to vector<2x1024xf32>
    %172 = vector.shape_cast %168 : vector<2x1024xf32> to vector<1x2x1024xf32>
    tpu.vector_store %arg6[%169, %c0_117, %c0_118], %172 {strides = array<i32>} : memref<4x2x4096xf32, #tpu.memory_space<vmem>>, vector<1x2x1024xf32>,
    %c0_119 = arith.constant 0 : index
    %c1024_120 = arith.constant 1024 : index
    %173 = vector.load %arg2[%c0_119, %c1024_120] : memref<32x4096xf32, #tpu.memory_space<vmem>>, vector<32x1024xf32>
    %cst_121 = arith.constant dense<0.000000e+00> : vector<8x1024xf32>
    %174 = tpu.matmul %160, %173, %cst_121 {dimension_numbers = #tpu.dot_dimension_numbers<[1], [0], [0], [1], [0, 0, 1, 1], [], []>} : vector<8x32xf32>, vector<32x1024xf32>, vector<8x1024xf32> -> vector<8x1024xf32>
    %175 = arith.index_cast %162 : i32 to index
    %c1024_122 = arith.constant 1024 : index
    %176 = vector.load %arg8[%175, %c1024_122] : memref<32x4096xf32, #tpu.memory_space<vmem>>, vector<8x1024xf32>
    %177 = arith.addf %174, %176 : vector<8x1024xf32>
    %178 = vector.extract_strided_slice %177 {offsets = [0, 0], sizes = [2, 1024], strides = [1, 1]} : vector<8x1024xf32> to vector<2x1024xf32>
    %179 = arith.index_cast %c3_i32 : i32 to index
    %c0_123 = arith.constant 0 : index
    %c1024_124 = arith.constant 1024 : index
    %180 = vector.load %arg6[%179, %c0_123, %c1024_124] : memref<4x2x4096xf32, #tpu.memory_space<vmem>>, vector<1x2x1024xf32>
    %181 = vector.shape_cast %180 : vector<1x2x1024xf32> to vector<2x1024xf32>
    %182 = vector.shape_cast %178 : vector<2x1024xf32> to vector<1x2x1024xf32>
    tpu.vector_store %arg6[%179, %c0_123, %c1024_124], %182 {strides = array<i32>} : memref<4x2x4096xf32, #tpu.memory_space<vmem>>, vector<1x2x1024xf32>,
    %c0_125 = arith.constant 0 : index
    %c2048_126 = arith.constant 2048 : index
    %183 = vector.load %arg2[%c0_125, %c2048_126] : memref<32x4096xf32, #tpu.memory_space<vmem>>, vector<32x1024xf32>
    %cst_127 = arith.constant dense<0.000000e+00> : vector<8x1024xf32>
    %184 = tpu.matmul %160, %183, %cst_127 {dimension_numbers = #tpu.dot_dimension_numbers<[1], [0], [0], [1], [0, 0, 1, 1], [], []>} : vector<8x32xf32>, vector<32x1024xf32>, vector<8x1024xf32> -> vector<8x1024xf32>
    %185 = arith.index_cast %162 : i32 to index
    %c2048_128 = arith.constant 2048 : index
    %186 = vector.load %arg8[%185, %c2048_128] : memref<32x4096xf32, #tpu.memory_space<vmem>>, vector<8x1024xf32>
    %187 = arith.addf %184, %186 : vector<8x1024xf32>
    %188 = vector.extract_strided_slice %187 {offsets = [0, 0], sizes = [2, 1024], strides = [1, 1]} : vector<8x1024xf32> to vector<2x1024xf32>
    %189 = arith.index_cast %c3_i32 : i32 to index
    %c0_129 = arith.constant 0 : index
    %c2048_130 = arith.constant 2048 : index
    %190 = vector.load %arg6[%189, %c0_129, %c2048_130] : memref<4x2x4096xf32, #tpu.memory_space<vmem>>, vector<1x2x1024xf32>
    %191 = vector.shape_cast %190 : vector<1x2x1024xf32> to vector<2x1024xf32>
    %192 = vector.shape_cast %188 : vector<2x1024xf32> to vector<1x2x1024xf32>
    tpu.vector_store %arg6[%189, %c0_129, %c2048_130], %192 {strides = array<i32>} : memref<4x2x4096xf32, #tpu.memory_space<vmem>>, vector<1x2x1024xf32>,
    %c0_131 = arith.constant 0 : index
    %c3072_132 = arith.constant 3072 : index
    %193 = vector.load %arg2[%c0_131, %c3072_132] : memref<32x4096xf32, #tpu.memory_space<vmem>>, vector<32x1024xf32>
    %cst_133 = arith.constant dense<0.000000e+00> : vector<8x1024xf32>
    %194 = tpu.matmul %160, %193, %cst_133 {dimension_numbers = #tpu.dot_dimension_numbers<[1], [0], [0], [1], [0, 0, 1, 1], [], []>} : vector<8x32xf32>, vector<32x1024xf32>, vector<8x1024xf32> -> vector<8x1024xf32>
    %195 = arith.index_cast %162 : i32 to index
    %c3072_134 = arith.constant 3072 : index
    %196 = vector.load %arg8[%195, %c3072_134] : memref<32x4096xf32, #tpu.memory_space<vmem>>, vector<8x1024xf32>
    %197 = arith.addf %194, %196 : vector<8x1024xf32>
    %198 = vector.extract_strided_slice %197 {offsets = [0, 0], sizes = [2, 1024], strides = [1, 1]} : vector<8x1024xf32> to vector<2x1024xf32>
    %199 = arith.index_cast %c3_i32 : i32 to index
    %c0_135 = arith.constant 0 : index
    %c3072_136 = arith.constant 3072 : index
    %200 = vector.load %arg6[%199, %c0_135, %c3072_136] : memref<4x2x4096xf32, #tpu.memory_space<vmem>>, vector<1x2x1024xf32>
    %201 = vector.shape_cast %200 : vector<1x2x1024xf32> to vector<2x1024xf32>
    %202 = vector.shape_cast %198 : vector<2x1024xf32> to vector<1x2x1024xf32>
    tpu.vector_store %arg6[%199, %c0_135, %c3072_136], %202 {strides = array<i32>} : memref<4x2x4096xf32, #tpu.memory_space<vmem>>, vector<1x2x1024xf32>,
    %c0_137 = arith.constant 0 : index
    %c0_138 = arith.constant 0 : index
    %203 = vector.load %arg4[%c0_137, %c0_138] : memref<32x32xf32, #tpu.memory_space<vmem>>, vector<32x32xf32>
    %cst_139 = arith.constant dense<0.000000e+00> : vector<8x32xf32>
    %204 = tpu.matmul %160, %203, %cst_139 {dimension_numbers = #tpu.dot_dimension_numbers<[1], [0], [0], [1], [0, 0, 1, 1], [], []>} : vector<8x32xf32>, vector<32x32xf32>, vector<8x32xf32> -> vector<8x32xf32>
    %205 = arith.index_cast %162 : i32 to index
    %c0_140 = arith.constant 0 : index
    %206 = vector.load %arg9[%205, %c0_140] : memref<32x32xf32, #tpu.memory_space<vmem>>, vector<8x32xf32>
    %207 = arith.addf %204, %206 : vector<8x32xf32>
    %c4_i32 = arith.constant 4 : i32
    %c0_141 = arith.constant 0 : index
    %c0_142 = arith.constant 0 : index
    %208 = vector.load %arg7[%c0_141, %c0_142] : memref<8x32xf32, #tpu.memory_space<vmem>>, vector<8x32xf32>
    tpu.vector_store %arg7[%c0_141, %c0_142], %207 {strides = array<i32>} : memref<8x32xf32, #tpu.memory_space<vmem>>, vector<8x32xf32>,
    return
  }
  func.func @transform_0(%arg0: i32) -> (i32, i32) {
    %c0_i32 = arith.constant 0 : i32
    %c0_i32_0 = arith.constant 0 : i32
    return %arg0, %c0_i32 : i32, i32
  }
  func.func @transform_1(%arg0: i32) -> (i32, i32) {
    %c0_i32 = arith.constant 0 : i32
    %c0_i32_0 = arith.constant 0 : i32
    %c0_i32_1 = arith.constant 0 : i32
    return %c0_i32, %c0_i32_0 : i32, i32
  }
  func.func @transform_2(%arg0: i32) -> (i32, i32) {
    %c0_i32 = arith.constant 0 : i32
    %c0_i32_0 = arith.constant 0 : i32
    %c0_i32_1 = arith.constant 0 : i32
    return %c0_i32, %c0_i32_0 : i32, i32
  }
  func.func @transform_3(%arg0: i32) -> (i32, i32) {
    %c0_i32 = arith.constant 0 : i32
    %c0_i32_0 = arith.constant 0 : i32
    %c0_i32_1 = arith.constant 0 : i32
    return %c0_i32, %c0_i32_0 : i32, i32
  }
  func.func @transform_4(%arg0: i32) -> (i32, i32) {
    %c0_i32 = arith.constant 0 : i32
    %c0_i32_0 = arith.constant 0 : i32
    %c0_i32_1 = arith.constant 0 : i32
    return %c0_i32, %c0_i32_0 : i32, i32
  }
  func.func @transform_5(%arg0: i32) -> (i32, i32, i32) {
    %c0_i32 = arith.constant 0 : i32
    %c0_i32_0 = arith.constant 0 : i32
    %c0_i32_1 = arith.constant 0 : i32
    return %arg0, %c0_i32, %c0_i32_0 : i32, i32, i32
  }
}

</mosaic_0001>

<bundles_post_ra>
// kernel: tpu_custom_call.1
= control target key start
LH: loop header
LB: loop body
LE: loop exit
PB: predicated region body
PF: predicated region fallthrough
CT: control target
= control target key end

     0   :  { %10 = vsyncpa [#allocation6], 0  ;;  %s11950_s0 = inlined_call_operand.hbm [shape: f32[64,128], index: 0, kind: input, shape index: {}]   ;;  %s11951_s1 = inlined_call_operand.hbm [shape: f32[32,4096], index: 1, kind: input, shape index: {}]   ;;  %s11952_s2 = inlined_call_operand.hbm [shape: f32[128,4096], index: 2, kind: input, shape index: {}]   ;;  %s11953_s3 = inlined_call_operand.hbm [shape: f32[32,32], index: 3, kind: input, shape index: {}]   ;;  %s11954_s4 = inlined_call_operand.vmem [shape: f32[128,32], index: 4, kind: input, shape index: {}]   ;;  %s11955_s5 = inlined_call_operand.hbm [shape: f32[8,2,4096], index: 5, kind: output, shape index: {}]  }
   0x1   :  { %12 = vsyncpa [#allocation6 + $0x1], 0 }
   0x2   :  { %13 = vsyncpa [#allocation9], 0 }
   0x3   :  { %14 = vsyncpa [#allocation12], 0 }
   0x4   :  { %15 = vsyncpa [#allocation7], 0 }
   0x5   :  { %17 = vsyncpa [#allocation7 + $0x1], 0  ;;  %s10617_s18 = smov 0   ;;  %s10619_s19 = smov 0  }
   0x6   :  { %s10621_s20 = smov 0   ;;  %s10623_s21 = smov 0  }
   0x7 LB: > { %s10638_s22 = sadd.s32 4294967295, %s10569_s21   ;;  %s8841_s23 = sadd.s32 4294967294, %s10569_s21   ;;  %s10569_s21 = sphi %s10623_s21, %s12072_s21   ;;  %s10565_s20 = sphi %s10621_s20, %s12071_s20   ;;  %s10561_s19 = sphi %s10619_s19, %s12070_s19   ;;  %s10557_s18 = sphi %s10617_s18, %s12069_s18  }
   0x8   : > { %p43_p0 = scmp.ne.s32.totalorder %s10561_s19, %s10557_s18  ;;  %p11956_p1 = scmp.eq.s32.totalorder %s10638_s22, 0 }
   0x9   : > { %p157_p3 = scmp.eq.s32.totalorder %s8841_s23, 1  ;;  %p8842_p5 = scmp.ge.s32.totalorder %s10569_s21, 1 }
   0xa   : > { %p10647_p4 = por %p11956_p1, %p43_p0  ;;  %p164_p7 = scmp.lt.s32.totalorder %s10569_s21, 3 }
   0xb   : > { %p10652_p6 = por %p157_p3, %p43_p0  ;;  %s10571_s27 = smov [#allocation8]  }
   0xc   : > { %s11992_s24 = scalar_select %p10647_p4, 1, 0 }
   0xd   : > { %s11993_s25 = scalar_select %p10652_p6, 1, 0 }
   0xe   : > { %p10658_p9 = pnand %p8842_p5, %p164_p7  ;;  %s176_s28 = sshll.u32 %s10571_s27, 4  ;;  %s10662_s28 = int_to_ptr.vmem [resolvable:$true] %s176_s28 }
   0xf   : > { %s10572_s30 = smov [#allocation10]   ;;  %s10573_s7 = smov [#allocation11]  }
  0x10   : > { %s11994_s26 = scalar_select %p10658_p9, 1, 0 }
  0x11   : > { %p10304_p10 = pneg %p10658_p9  ;;  %s189_s6 = sshll.u32 %s10572_s30, 4  ;;  %s10673_s6 = int_to_ptr.vmem [resolvable:$true] %s189_s6 }
  0x12   : > { %s10675_s8 = sshll.u32 %s10573_s7, 4  ;;  %s10381_s11 = scalar_lea.hbm %s11951_s1, 16384  ;;  %s203_s8 = int_to_ptr.vmem [resolvable:$true] %s10675_s8 }
  0x13   : > { %p10669_p12 = pnand %p10304_p10, %p11956_p1  ;;  %p10382_p13 = scmp.ne.s32.totalorder %s11951_s1, %s10381_s11 }
  0x14   : > { %p10388_p7 = scmp.lt.u32.totalorder %s10381_s11, %s11951_s1 }
  0x15   : > { %p10685_p0 = pneg %p10669_p12 }
  0x17   : > { %p10384_p3 = pnand %p10685_p0, %p10382_p13 }
  0x19   : > { %p10385_p5 = pneg %p10384_p3 }
  0x1b   : > { %p10390_p10 = pnand %p10388_p7, %p10385_p5 }
  0x1d   : > { %10393 = shalt.err (!%p10390_p10)
}
  0x1e   : > { %s10394_s17 = scalar_lea.vmem %s10662_s28, 16384  ;;  %p10402_p2 = scmp.lt.s32.totalorder %s10662_s28, %s10662_s28 }
  0x1f   : > { %p10395_p11 = scmp.ne.s32.totalorder %s10662_s28, %s10394_s17  ;;  %p10403_p6 = scmp.lt.s32.totalorder %s10394_s17, %s10394_s17 }
  0x21   : > { %p10397_p8 = pnand %p10395_p11, %p10685_p0  ;;  %p10404_p13 = por %p10403_p6, %p10402_p2 }
  0x23   : > { %p10398_p1 = pneg %p10397_p8 }
  0x25   : > { %p10405_p3 = pnand %p10404_p13, %p10398_p1 }
  0x27   : > { %10408 = shalt.err (!%p10405_p3)
}
  0x28   : > { %s10574_s23 = smov 4096   ;;  %s10575_s27 = smov 256  }
  0x29   : > { %10307 = dma.hbm_to_vmem [thread:$0]  (!%p10669_p12), %s11951_s1, 16384, %s10662_s28, [#allocation9], %s10574_s23, %s10574_s23, %s10575_s27  }
  0x2a   : > { %s10409_s11 = scalar_lea.hbm %s11952_s2, 65536 }
  0x2b   : > { %p10410_p2 = scmp.ne.s32.totalorder %s11952_s2, %s10409_s11  ;;  %p10416_p8 = scmp.lt.u32.totalorder %s10409_s11, %s11952_s2 }
  0x2d   : > { %p10412_p1 = pnand %p10410_p2, %p10685_p0 }
  0x2f   : > { %p10413_p6 = pneg %p10412_p1 }
  0x31   : > { %p10418_p11 = pnand %p10416_p8, %p10413_p6 }
  0x33   : > { %10421 = shalt.err (!%p10418_p11)
}
  0x34   : > { %s10422_s28 = scalar_lea.vmem %s10673_s6, 65536  ;;  %p10430_p13 = scmp.lt.s32.totalorder %s10673_s6, %s10673_s6 }
  0x35   : > { %p10423_p5 = scmp.ne.s32.totalorder %s10673_s6, %s10422_s28  ;;  %p10431_p3 = scmp.lt.s32.totalorder %s10422_s28, %s10422_s28 }
  0x37   : > { %p10425_p7 = pnand %p10423_p5, %p10685_p0  ;;  %p10432_p2 = por %p10431_p3, %p10430_p13 }
  0x39   : > { %p10426_p10 = pneg %p10425_p7 }
  0x3b   : > { %p10433_p1 = pnand %p10432_p2, %p10426_p10 }
  0x3d   : > { %10436 = shalt.err (!%p10433_p1)
}
  0x3e   : > { %10310 = dma.hbm_to_vmem [thread:$0]  (!%p10669_p12), %s11952_s2, 65536, %s10673_s6, [#allocation9], %s10574_s23, %s10574_s23, %s10575_s27  }
  0x3f   : > { %s10437_s10 = scalar_lea.hbm %s11953_s3, 512 }
  0x40   : > { %p10438_p6 = scmp.ne.s32.totalorder %s11953_s3, %s10437_s10  ;;  %p10444_p5 = scmp.lt.u32.totalorder %s10437_s10, %s11953_s3 }
  0x42   : > { %p10440_p8 = pnand %p10438_p6, %p10685_p0 }
  0x44   : > { %p10441_p11 = pneg %p10440_p8 }
  0x46   : > { %p10446_p7 = pnand %p10444_p5, %p10441_p11 }
  0x48   : > { %10449 = shalt.err (!%p10446_p7)
}
  0x49   : > { %s10450_s16 = scalar_lea.vmem %s203_s8, 512  ;;  %p10458_p2 = scmp.lt.s32.totalorder %s203_s8, %s203_s8 }
  0x4a   : > { %p10451_p10 = scmp.ne.s32.totalorder %s203_s8, %s10450_s16  ;;  %p10459_p1 = scmp.lt.s32.totalorder %s10450_s16, %s10450_s16 }
  0x4c   : > { %p10453_p13 = pnand %p10451_p10, %p10685_p0  ;;  %p10460_p4 = por %p10459_p1, %p10458_p2 }
  0x4e   : > { %p10454_p3 = pneg %p10453_p13 }
  0x50   : > { %p10461_p9 = pnand %p10460_p4, %p10454_p3 }
  0x52   : > { %10464 = shalt.err (!%p10461_p9)
}
  0x53   : > { %s10576_s6 = smov 128   ;;  %s10577_s14 = smov 8  }
  0x54   : > { %10313 = dma.hbm_to_vmem [thread:$0]  (!%p10669_p12), %s11953_s3, 512, %s203_s8, [#allocation12], %s10576_s6, %s10576_s6, %s10577_s14  }
  0x55   : > { %s10752_s28 = sadd.s32 1, %s10569_s21   ;;  %s30_s30 = sadd.s32 1, %s10565_s20 }
  0x56   : > { %s27_s17 = ssub.s32 %s10569_s21, %s10752_s28  ;;  %p37_p9 = scmp.ne.s32.totalorder %s10565_s20, %s10561_s19 }
  0x57   : > { %p28_p4 = scmp.eq.s32.totalorder %s27_s17, 0  ;;  %p38_p0 = scmp.eq.s32.totalorder %s10569_s21, 0 }
  0x58   : > { %p10325_p6 = scmp.lt.s32.totalorder %s10569_s21, 2  ;;  %p11997_p11 = scmp.eq.s32.totalorder %s10638_s22, 1 }
  0x59   : > { %s10762_s7 = scalar_select %p28_p4, %s10565_s20, %s30_s30  }
  0x5a   : > { %p39_p8 = por %p38_p0, %p37_p9  ;;  %p10766_p5 = por %p11997_p11, %p37_p9 }
  0x5b   : > { %s219_s9 = sand.u32 1, %s10565_s20   ;;  %s8955_s10 = sshll.u32 %s10569_s21, 9 }
  0x5c   : > { %s8847_s8 = sshll.u32 %s219_s9, 5  ;;  %s10775_s13 = scalar_lea.hbm %s11950_s0, %s8955_s10 }
  0x5d   : > { %s223_s15 = scalar_lea.vmem [#allocation5], %s8847_s8  ;;  %p10777_p12 = pnand %p10325_p6, %p39_p8 }
  0x5e   : > { %s230_s16 = sshll.u32 %s223_s15, 4  ;;  %s10783_s27 = scalar_lea.sflag [#allocation6], %s219_s9  ;;  %s10781_s16 = int_to_ptr.vmem [resolvable:$true] %s230_s16 }
  0x5f   : > { %s10465_s17 = scalar_lea.hbm %s10775_s13, 512  ;;  %p10467_p10 = pneg %p10777_p12 }
  0x60   : > { %p10466_p7 = scmp.ne.s32.totalorder %s10775_s13, %s10465_s17  ;;  %s10470_s8 = scalar_lea.hbm %s11950_s0, 1024 }
  0x61   : > { %p10471_p2 = scmp.lt.u32.totalorder %s10775_s13, %s11950_s0  ;;  %p10472_p1 = scmp.lt.u32.totalorder %s10470_s8, %s10465_s17 }
  0x62   : > { %p10468_p13 = pnand %p10467_p10, %p10466_p7  ;;  %p10474_p9 = scmp.lt.u32.totalorder %s10465_s17, %s10775_s13 }
  0x63   : > { %p10473_p4 = por %p10472_p1, %p10471_p2 }
  0x64   : > { %p10469_p3 = pneg %p10468_p13 }
  0x65   : > { %p10475_p0 = por %p10474_p9, %p10473_p4 }
  0x67   : > { %p10476_p6 = pnand %p10475_p0, %p10469_p3 }
  0x69   : > { %10479 = shalt.err (!%p10476_p6)
}
  0x6a   : > { %s10480_s9 = scalar_lea.vmem %s10781_s16, 512  ;;  %s10578_s15 = smov [#allocation5]  }
  0x6b   : > { %p10481_p8 = scmp.ne.s32.totalorder %s10781_s16, %s10480_s9  ;;  %s10485_s30 = sshll.u32 %s10578_s15, 4  ;;  %s10486_s30 = int_to_ptr.vmem [resolvable:$false] %s10485_s30 }
  0x6c   : > { %s10487_s10 = scalar_lea.vmem %s10486_s30, 1024  ;;  %p10488_p13 = scmp.lt.s32.totalorder %s10781_s16, %s10486_s30 }
  0x6d   : > { %p10483_p11 = pnand %p10481_p8, %p10467_p10  ;;  %p10489_p2 = scmp.lt.s32.totalorder %s10487_s10, %s10480_s9 }
  0x6f   : > { %p10484_p7 = pneg %p10483_p11  ;;  %p10490_p1 = por %p10489_p2, %p10488_p13 }
  0x71   : > { %p10491_p4 = pnand %p10490_p1, %p10484_p7 }
  0x73   : > { %10494 = shalt.err (!%p10491_p4)
}
  0x74   : > { %10317 = dma.hbm_to_vmem [thread:$0]  (!%p10777_p12), %s10775_s13, 512, %s10781_s16, %s10783_s27, %s10576_s6, %s10576_s6, %s10577_s14  }
  0x75   : > { %p12000_p10 = scmp.ne.s32.totalorder %s11994_s26, 0 }
  0x77   : > { %242 = sbr.rel (%p12000_p10) target bundleno = 1548 (0x60c), region = 40 }
  0x7e   : > { %s10817_s17 = sand.u32 1, %s10561_s19   ;;  %p12001_p3 = scmp.ne.s32.totalorder %s11992_s24, 0 }
  0x7f   : > { %s8851_s8 = sshll.u32 %s10817_s17, 5  ;;  %s245_s11 = scalar_lea.sflag [#allocation6], %s10817_s17 }
  0x80   : > { %s10821_s12 = scalar_lea.vmem [#allocation5], %s8851_s8 }
  0x81   : > { %10540 = dma.done.wait (%p12001_p3), %s245_s11, 512  }
  0x82   : > { %10542 = vsyncadd (%p12001_p3), %s245_s11, 4294966784  ;;  %p12002_p12 = scmp.eq.s32.totalorder %s10638_s22, 0 }
  0x84   : > { %10544 = dma.done.wait (%p12002_p12), [#allocation9], 81920   ;;  %p12003_p9 = pmov %p12002_p12 }
  0x86   : > { %10546 = vsyncadd (%p12003_p9), [#allocation9], 4294885376  ;;  %p12004_p0 = pmov %p12003_p9 }
  0x88   : > { %10548 = dma.done.wait (%p12004_p0), [#allocation12], 512   ;;  %p12005_p6 = pmov %p12004_p0 }
  0x89   : > { %s8855_s26 = sshll.u32 %s10817_s17, 8  ;;  %p12006_p8 = scmp.ne.s32.totalorder %s10638_s22, 0 }
  0x8a   : > { %10550 = vsyncadd (%p12005_p6), [#allocation12], 4294966784  ;;  %s10836_s6 = scalar_lea.vmem [#allocation13], %s8855_s26  ;;  %vm293_vm0 = vcmask (!%p12006_p8), 261120   ;;  %v10579_v0 = vmov (!%p12006_p8), 0.0  }
  0x8b   : > { %292 = sbr.rel (%p12006_p8) target bundleno = 146 (0x92), region = 60  ;;  %294 = vst.msk [vmem:[#allocation2] sm:$0xff] (!%p12006_p8), %vm293_vm0, %v10579_v0 }
  0x92 PF: > { %v300_v1 = vld [vmem:[#allocation10 + $0x8] sm:$0xff]  ;;  %v302_v3 = vld [vmem:[#allocation10 + $0x18] sm:$0xff]  ;;  %v299_v6 = vld [vmem:[#allocation10] sm:$0xff]  ;;  %v11959_v8 = vmov 0.0   ;;  %vm2464_vm1 = vcmask 261120   ;;  %vm10582_vm2 = vmmov 0  }
  0x93   : > { %v308_v2 = vld [vmem:[#allocation10 + $0x108] sm:$0xff]  ;;  %v310_v5 = vld [vmem:[#allocation10 + $0x118] sm:$0xff]  ;;  %v307_v7 = vld [vmem:[#allocation10 + $0x100] sm:$0xff]  ;;  %491 = vmatprep.mubr.f32.mxu0 %v11959_v8  ;;  %580 = vmatprep.mubr.f32.mxu1 %v11959_v8  ;;  %s8736_s9 = sshll.u32 %s10836_s6, 4  ;;  %s10584_s11 = smov [#allocation13]   ;;  %s11904_s9 = int_to_ptr.vmem [resolvable:$true] %s8736_s9 }
  0x94   : > { %v9080_v4 = vpack.c.bf16 %v308_v2, %v300_v1  ;;  %v9112_v9 = vpack.c.bf16 %v310_v5, %v302_v3  ;;  %v9082_v10 = vpack.c.bf16 %v307_v7, %v299_v6  ;;  %v301_v11 = vld [vmem:[#allocation10 + $0x10] sm:$0xff]  ;;  %v316_v13 = vld [vmem:[#allocation10 + $0x208] sm:$0xff]  ;;  %v318_v16 = vld [vmem:[#allocation10 + $0x218] sm:$0xff]  ;;  %s10495_s8 = scalar_lea.vmem %s11904_s9, 4096  ;;  %s10499_s26 = sshll.u32 %s10584_s11, 4  ;;  %s10500_s26 = int_to_ptr.vmem [resolvable:$false] %s10499_s26 }
  0x95   : > { %v309_v12 = vld [vmem:[#allocation10 + $0x110] sm:$0xff]  ;;  %v324_v15 = vld [vmem:[#allocation10 + $0x308] sm:$0xff]  ;;  %v326_v17 = vld [vmem:[#allocation10 + $0x318] sm:$0xff]  ;;  %p10496_p11 = scmp.ne.s32.totalorder %s11904_s9, %s10495_s8  ;;  %s10501_s24 = scalar_lea.vmem %s10500_s26, 8192 }
  0x96   : > { %9081 = vmatprep.subr.bf16.mxu0 %v9080_v4  ;;  %v9114_v14 = vpack.c.bf16 %v309_v12, %v301_v11  ;;  %9113 = vmatprep.subr.bf16.mxu1 %v9112_v9  ;;  %v9084_v18 = vpack.c.bf16 %v324_v15, %v316_v13  ;;  %v9116_v19 = vpack.c.bf16 %v326_v17, %v318_v16  ;;  %v315_v20 = vld [vmem:[#allocation10 + $0x200] sm:$0xff]  ;;  %v317_v22 = vld [vmem:[#allocation10 + $0x210] sm:$0xff]  ;;  %v332_v25 = vld [vmem:[#allocation10 + $0x408] sm:$0xff]  ;;  %p10502_p2 = scmp.lt.s32.totalorder %s11904_s9, %s10500_s26  ;;  %p10503_p1 = scmp.lt.s32.totalorder %s10501_s24, %s10495_s8 }
  0x97   : > { %9083 = vmatpush1.bf16.msra.mxu0 %v9082_v10  ;;  %v323_v21 = vld [vmem:[#allocation10 + $0x300] sm:$0xff]  ;;  %v325_v24 = vld [vmem:[#allocation10 + $0x310] sm:$0xff]  ;;  %v340_v26 = vld [vmem:[#allocation10 + $0x508] sm:$0xff]  ;;  %p10497_p7 = pnand %p10496_p11, %p10766_p5 }
  0x98   : > { %9115 = vmatpush1.bf16.msra.mxu1 %v9114_v14  ;;  %v9086_v23 = vpack.c.bf16 %v323_v21, %v315_v20  ;;  %9085 = vmatprep.subr.bf16.mxu0 %v9084_v18  ;;  %v9118_v27 = vpack.c.bf16 %v325_v24, %v317_v22  ;;  %v9088_v28 = vpack.c.bf16 %v340_v26, %v332_v25  ;;  %v334_v29 = vld [vmem:[#allocation10 + $0x418] sm:$0xff]  ;;  %v331_v31 = vld [vmem:[#allocation10 + $0x400] sm:$0xff]  ;;  %v333_v34 = vld [vmem:[#allocation10 + $0x410] sm:$0xff]  ;;  %p10504_p4 = por %p10503_p1, %p10502_p2 }
  0x99   : > { %9117 = vmatprep.subr.bf16.mxu1 %v9116_v19  ;;  %v342_v30 = vld [vmem:[#allocation10 + $0x518] sm:$0xff]  ;;  %v339_v33 = vld [vmem:[#allocation10 + $0x500] sm:$0xff]  ;;  %v341_v35 = vld [vmem:[#allocation10 + $0x510] sm:$0xff]  ;;  %p10498_p13 = pneg %p10497_p7 }
  0x9a   : > { %v9120_v32 = vpack.c.bf16 %v342_v30, %v334_v29  ;;  %v9090_v36 = vpack.c.bf16 %v339_v33, %v331_v31  ;;  %v348_v37 = vld [vmem:[#allocation10 + $0x608] sm:$0xff]  ;;  %v350_v39 = vld [vmem:[#allocation10 + $0x618] sm:$0xff]  ;;  %v9122_v40 = vpack.c.bf16 %v341_v35, %v333_v34  ;;  %v347_v43 = vld [vmem:[#allocation10 + $0x600] sm:$0xff] }
  0x9b   : > { %9087 = vmatpush1.bf16.msra.mxu0 %v9086_v23  ;;  %v356_v38 = vld [vmem:[#allocation10 + $0x708] sm:$0xff]  ;;  %v358_v42 = vld [vmem:[#allocation10 + $0x718] sm:$0xff]  ;;  %v355_v44 = vld [vmem:[#allocation10 + $0x700] sm:$0xff]  ;;  %p10505_p10 = pnand %p10504_p4, %p10498_p13 }
  0x9c   : > { %9119 = vmatpush1.bf16.msra.mxu1 %v9118_v27  ;;  %9089 = vmatprep.subr.bf16.mxu0 %v9088_v28  ;;  %v9092_v41 = vpack.c.bf16 %v356_v38, %v348_v37  ;;  %v9124_v45 = vpack.c.bf16 %v358_v42, %v350_v39  ;;  %v349_v46 = vld [vmem:[#allocation10 + $0x610] sm:$0xff]  ;;  %v364_v48 = vld [vmem:[#allocation10 + $0x808] sm:$0xff]  ;;  %v366_v50 = vld [vmem:[#allocation10 + $0x818] sm:$0xff]  ;;  %v9094_v52 = vpack.c.bf16 %v355_v44, %v347_v43 }
  0x9d   : > { %9121 = vmatprep.subr.bf16.mxu1 %v9120_v32  ;;  %v357_v47 = vld [vmem:[#allocation10 + $0x710] sm:$0xff]  ;;  %v372_v49 = vld [vmem:[#allocation10 + $0x908] sm:$0xff]  ;;  %v374_v51 = vld [vmem:[#allocation10 + $0x918] sm:$0xff] }
  0x9e   : > { %v9126_v53 = vpack.c.bf16 %v357_v47, %v349_v46  ;;  %v9096_v54 = vpack.c.bf16 %v372_v49, %v364_v48  ;;  %v363_v55 = vld [vmem:[#allocation10 + $0x800] sm:$0xff]  ;;  %v365_v57 = vld [vmem:[#allocation10 + $0x810] sm:$0xff]  ;;  %v9128_v58 = vpack.c.bf16 %v374_v51, %v366_v50  ;;  %v380_v60 = vld [vmem:[#allocation10 + $0xa08] sm:$0xff] }
  0x9f   : > { %9091 = vmatpush1.bf16.msra.mxu0 %v9090_v36  ;;  %v371_v56 = vld [vmem:[#allocation10 + $0x900] sm:$0xff]  ;;  %v373_v59 = vld [vmem:[#allocation10 + $0x910] sm:$0xff]  ;;  %v388_v61 = vld [vmem:[#allocation10 + $0xb08] sm:$0xff] }
  0xa0   : > { %9123 = vmatpush1.bf16.msra.mxu1 %v9122_v40  ;;  %9093 = vmatprep.subr.bf16.mxu0 %v9092_v41  ;;  %v382_v62 = vld [vmem:[#allocation10 + $0xa18] sm:$0xff]  ;;  %v9098_v0 = vpack.c.bf16 %v371_v56, %v363_v55  ;;  %v9130_v1 = vpack.c.bf16 %v373_v59, %v365_v57  ;;  %v9100_v2 = vpack.c.bf16 %v388_v61, %v380_v60  ;;  %v379_v3 = vld [vmem:[#allocation10 + $0xa00] sm:$0xff]  ;;  %v381_v5 = vld [vmem:[#allocation10 + $0xa10] sm:$0xff] }
  0xa1   : > { %9125 = vmatprep.subr.bf16.mxu1 %v9124_v45  ;;  %v390_v63 = vld [vmem:[#allocation10 + $0xb18] sm:$0xff]  ;;  %v387_v4 = vld [vmem:[#allocation10 + $0xb00] sm:$0xff]  ;;  %v389_v7 = vld [vmem:[#allocation10 + $0xb10] sm:$0xff] }
  0xa2   : > { %v9132_v6 = vpack.c.bf16 %v390_v63, %v382_v62  ;;  %v396_v9 = vld [vmem:[#allocation10 + $0xc08] sm:$0xff]  ;;  %v398_v11 = vld [vmem:[#allocation10 + $0xc18] sm:$0xff]  ;;  %v9102_v13 = vpack.c.bf16 %v387_v4, %v379_v3  ;;  %v9134_v14 = vpack.c.bf16 %v389_v7, %v381_v5  ;;  %v395_v16 = vld [vmem:[#allocation10 + $0xc00] sm:$0xff] }
  0xa3   : > { %9095 = vmatpush1.bf16.msra.mxu0 %v9094_v52  ;;  %v404_v10 = vld [vmem:[#allocation10 + $0xd08] sm:$0xff]  ;;  %v406_v12 = vld [vmem:[#allocation10 + $0xd18] sm:$0xff]  ;;  %v403_v17 = vld [vmem:[#allocation10 + $0xd00] sm:$0xff] }
  0xa4   : > { %9127 = vmatpush1.bf16.msra.mxu1 %v9126_v53  ;;  %9097 = vmatprep.subr.bf16.mxu0 %v9096_v54  ;;  %v9104_v15 = vpack.c.bf16 %v404_v10, %v396_v9  ;;  %v397_v18 = vld [vmem:[#allocation10 + $0xc10] sm:$0xff]  ;;  %v9136_v19 = vpack.c.bf16 %v406_v12, %v398_v11  ;;  %v412_v21 = vld [vmem:[#allocation10 + $0xe08] sm:$0xff]  ;;  %v414_v23 = vld [vmem:[#allocation10 + $0xe18] sm:$0xff]  ;;  %v9106_v25 = vpack.c.bf16 %v403_v17, %v395_v16 }
  0xa5   : > { %9129 = vmatprep.subr.bf16.mxu1 %v9128_v58  ;;  %v405_v20 = vld [vmem:[#allocation10 + $0xd10] sm:$0xff]  ;;  %v420_v22 = vld [vmem:[#allocation10 + $0xf08] sm:$0xff]  ;;  %v422_v24 = vld [vmem:[#allocation10 + $0xf18] sm:$0xff] }
  0xa6   : > { %v9138_v26 = vpack.c.bf16 %v405_v20, %v397_v18  ;;  %v9108_v27 = vpack.c.bf16 %v420_v22, %v412_v21  ;;  %v411_v28 = vld [vmem:[#allocation10 + $0xe00] sm:$0xff]  ;;  %v413_v30 = vld [vmem:[#allocation10 + $0xe10] sm:$0xff]  ;;  %v9140_v31 = vpack.c.bf16 %v422_v24, %v414_v23  ;;  %v304_v33 = vld [vmem:[#allocation10 + $0x28] sm:$0xff] }
  0xa7   : > { %9099 = vmatpush1.bf16.msra.mxu0 %v9098_v0  ;;  %v419_v29 = vld [vmem:[#allocation10 + $0xf00] sm:$0xff]  ;;  %v421_v32 = vld [vmem:[#allocation10 + $0xf10] sm:$0xff]  ;;  %v312_v34 = vld [vmem:[#allocation10 + $0x128] sm:$0xff] }
  0xa8   : > { %9131 = vmatpush1.bf16.msra.mxu1 %v9130_v1  ;;  %9101 = vmatprep.subr.bf16.mxu0 %v9100_v2  ;;  %v306_v35 = vld [vmem:[#allocation10 + $0x38] sm:$0xff]  ;;  %v9110_v37 = vpack.c.bf16 %v419_v29, %v411_v28  ;;  %v9142_v38 = vpack.c.bf16 %v421_v32, %v413_v30  ;;  %v9144_v39 = vpack.c.bf16 %v312_v34, %v304_v33  ;;  %v303_v40 = vld [vmem:[#allocation10 + $0x20] sm:$0xff]  ;;  %v305_v42 = vld [vmem:[#allocation10 + $0x30] sm:$0xff] }
  0xa9   : > { %9133 = vmatprep.subr.bf16.mxu1 %v9132_v6  ;;  %v314_v36 = vld [vmem:[#allocation10 + $0x138] sm:$0xff]  ;;  %v311_v41 = vld [vmem:[#allocation10 + $0x120] sm:$0xff]  ;;  %v313_v44 = vld [vmem:[#allocation10 + $0x130] sm:$0xff] }
  0xaa   : > { %v9176_v43 = vpack.c.bf16 %v314_v36, %v306_v35  ;;  %v320_v45 = vld [vmem:[#allocation10 + $0x228] sm:$0xff]  ;;  %v322_v47 = vld [vmem:[#allocation10 + $0x238] sm:$0xff]  ;;  %v10843_v49 = vld [vmem:[%s10821_s12] sm:$0xff]  ;;  %v9146_v50 = vpack.c.bf16 %v311_v41, %v303_v40  ;;  %v9178_v51 = vpack.c.bf16 %v313_v44, %v305_v42 }
  0xab   : > { %9103 = vmatpush1.bf16.msra.mxu0 %v9102_v13  ;;  %v328_v46 = vld [vmem:[#allocation10 + $0x328] sm:$0xff]  ;;  %v330_v48 = vld [vmem:[#allocation10 + $0x338] sm:$0xff]  ;;  %v319_v53 = vld [vmem:[#allocation10 + $0x220] sm:$0xff] }
  0xac   : > { %9135 = vmatpush1.bf16.msra.mxu1 %v9134_v14  ;;  %9105 = vmatprep.subr.bf16.mxu0 %v9104_v15  ;;  %v9148_v52 = vpack.c.bf16 %v328_v46, %v320_v45  ;;  %v327_v54 = vld [vmem:[#allocation10 + $0x320] sm:$0xff]  ;;  %v321_v55 = vld [vmem:[#allocation10 + $0x230] sm:$0xff]  ;;  %v9180_v56 = vpack.c.bf16 %v330_v48, %v322_v47  ;;  %v336_v58 = vld [vmem:[#allocation10 + $0x428] sm:$0xff] }
  0xad   : > { %9137 = vmatprep.subr.bf16.mxu1 %v9136_v19  ;;  %v329_v57 = vld [vmem:[#allocation10 + $0x330] sm:$0xff]  ;;  %v344_v59 = vld [vmem:[#allocation10 + $0x528] sm:$0xff]  ;;  %v338_v60 = vld [vmem:[#allocation10 + $0x438] sm:$0xff]  ;;  %v9150_v62 = vpack.c.bf16 %v327_v54, %v319_v53 }
  0xae   : > { %v346_v61 = vld [vmem:[#allocation10 + $0x538] sm:$0xff]  ;;  %v10848_v63 = vld [vmem:[%s10821_s12 + $0x8] sm:$0xff]  ;;  %v9182_v0 = vpack.c.bf16 %v329_v57, %v321_v55  ;;  %v9152_v1 = vpack.c.bf16 %v344_v59, %v336_v58  ;;  %v335_v2 = vld [vmem:[#allocation10 + $0x420] sm:$0xff] }
  0xaf   : > { %9107 = vmatpush1.bf16.msra.mxu0 %v9106_v25  ;;  %v343_v3 = vld [vmem:[#allocation10 + $0x520] sm:$0xff]  ;;  %v337_v4 = vld [vmem:[#allocation10 + $0x430] sm:$0xff]  ;;  %v9184_v5 = vpack.c.bf16 %v346_v61, %v338_v60  ;;  %v352_v7 = vld [vmem:[#allocation10 + $0x628] sm:$0xff] }
  0xb0   : > { %9139 = vmatpush1.bf16.msra.mxu1 %v9138_v26  ;;  %9109 = vmatprep.subr.bf16.mxu0 %v9108_v27  ;;  %v345_v6 = vld [vmem:[#allocation10 + $0x530] sm:$0xff]  ;;  %v360_v9 = vld [vmem:[#allocation10 + $0x728] sm:$0xff]  ;;  %v354_v10 = vld [vmem:[#allocation10 + $0x638] sm:$0xff]  ;;  %v9154_v12 = vpack.c.bf16 %v343_v3, %v335_v2 }
  0xb1   : > { %9141 = vmatprep.subr.bf16.mxu1 %v9140_v31  ;;  %v362_v11 = vld [vmem:[#allocation10 + $0x738] sm:$0xff]  ;;  %v10855_v13 = vld [vmem:[%s10821_s12 + $0x10] sm:$0xff]  ;;  %v9186_v14 = vpack.c.bf16 %v345_v6, %v337_v4  ;;  %v9156_v15 = vpack.c.bf16 %v360_v9, %v352_v7  ;;  %v351_v16 = vld [vmem:[#allocation10 + $0x620] sm:$0xff] }
  0xb2   : > { %v359_v17 = vld [vmem:[#allocation10 + $0x720] sm:$0xff]  ;;  %v353_v18 = vld [vmem:[#allocation10 + $0x630] sm:$0xff]  ;;  %v9188_v19 = vpack.c.bf16 %v362_v11, %v354_v10  ;;  %v368_v21 = vld [vmem:[#allocation10 + $0x828] sm:$0xff] }
  0xb3   : > { %9111 = vmatpush1.bf16.msra.mxu0 %v9110_v37  ;;  %v361_v20 = vld [vmem:[#allocation10 + $0x730] sm:$0xff]  ;;  %v376_v22 = vld [vmem:[#allocation10 + $0x928] sm:$0xff]  ;;  %v370_v23 = vld [vmem:[#allocation10 + $0x838] sm:$0xff]  ;;  %v9158_v25 = vpack.c.bf16 %v359_v17, %v351_v16 }
  0xb4   : > { %9143 = vmatpush1.bf16.msra.mxu1 %v9142_v38  ;;  %9145 = vmatprep.subr.bf16.mxu0 %v9144_v39  ;;  %v378_v24 = vld [vmem:[#allocation10 + $0x938] sm:$0xff]  ;;  %v9190_v27 = vpack.c.bf16 %v361_v20, %v353_v18  ;;  %v9160_v28 = vpack.c.bf16 %v376_v22, %v368_v21  ;;  %v367_v29 = vld [vmem:[#allocation10 + $0x820] sm:$0xff]  ;;  %v369_v31 = vld [vmem:[#allocation10 + $0x830] sm:$0xff] }
  0xb5   : > { %9177 = vmatprep.subr.bf16.mxu1 %v9176_v43  ;;  %v10862_v26 = vld [vmem:[%s10821_s12 + $0x18] sm:$0xff]  ;;  %v375_v30 = vld [vmem:[#allocation10 + $0x920] sm:$0xff]  ;;  %v9192_v32 = vpack.c.bf16 %v378_v24, %v370_v23  ;;  %v377_v33 = vld [vmem:[#allocation10 + $0x930] sm:$0xff] }
  0xb6   : > { %492 = vmatmul.mubr.f32.vlgmr.msra.gmra.mrb[0].mxu0 %v10843_v49  ;;  %v384_v34 = vld [vmem:[#allocation10 + $0xa28] sm:$0xff]  ;;  %v386_v36 = vld [vmem:[#allocation10 + $0xa38] sm:$0xff]  ;;  %v9162_v38 = vpack.c.bf16 %v375_v30, %v367_v29  ;;  %v9194_v39 = vpack.c.bf16 %v377_v33, %v369_v31  ;;  %v383_v41 = vld [vmem:[#allocation10 + $0xa20] sm:$0xff] }
  0xb7   : > { %581 = vmatmul.mubr.f32.vlgmr.msra.gmra.mrb[0].mxu1 %v10843_v49  ;;  %9147 = vmatpush1.bf16.msra.mxu0 %v9146_v50  ;;  %v392_v35 = vld [vmem:[#allocation10 + $0xb28] sm:$0xff]  ;;  %v394_v37 = vld [vmem:[#allocation10 + $0xb38] sm:$0xff]  ;;  %v391_v42 = vld [vmem:[#allocation10 + $0xb20] sm:$0xff] }
  0xb8   : > { %9179 = vmatpush1.bf16.msra.mxu1 %v9178_v51  ;;  %9149 = vmatprep.subr.bf16.mxu0 %v9148_v52  ;;  %v9164_v40 = vpack.c.bf16 %v392_v35, %v384_v34  ;;  %v385_v43 = vld [vmem:[#allocation10 + $0xa30] sm:$0xff]  ;;  %v9196_v44 = vpack.c.bf16 %v394_v37, %v386_v36  ;;  %v400_v46 = vld [vmem:[#allocation10 + $0xc28] sm:$0xff]  ;;  %v402_v48 = vld [vmem:[#allocation10 + $0xc38] sm:$0xff]  ;;  %v9166_v51 = vpack.c.bf16 %v391_v42, %v383_v41 }
  0xb9   : > { %9181 = vmatprep.subr.bf16.mxu1 %v9180_v56  ;;  %497 = vmatprep.mubr.f32.mxu0 %v11959_v8  ;;  %v393_v45 = vld [vmem:[#allocation10 + $0xb30] sm:$0xff]  ;;  %v408_v47 = vld [vmem:[#allocation10 + $0xd28] sm:$0xff]  ;;  %v410_v50 = vld [vmem:[#allocation10 + $0xd38] sm:$0xff] }
  0xba   : > { %586 = vmatprep.mubr.f32.mxu1 %v11959_v8  ;;  %498 = vmatmul.mubr.f32.gmra.mrb[2].mxu0 %v10848_v63  ;;  %v9198_v52 = vpack.c.bf16 %v393_v45, %v385_v43  ;;  %v9168_v53 = vpack.c.bf16 %v408_v47, %v400_v46  ;;  %v399_v54 = vld [vmem:[#allocation10 + $0xc20] sm:$0xff]  ;;  %v401_v56 = vld [vmem:[#allocation10 + $0xc30] sm:$0xff]  ;;  %v9200_v57 = vpack.c.bf16 %v410_v50, %v402_v48  ;;  %v416_v59 = vld [vmem:[#allocation10 + $0xe28] sm:$0xff] }
  0xbb   : > { %9151 = vmatpush1.bf16.msra.mxu0 %v9150_v62  ;;  %587 = vmatmul.mubr.f32.gmra.mrb[2].mxu1 %v10848_v63  ;;  %v407_v55 = vld [vmem:[#allocation10 + $0xd20] sm:$0xff]  ;;  %v409_v58 = vld [vmem:[#allocation10 + $0xd30] sm:$0xff]  ;;  %v424_v60 = vld [vmem:[#allocation10 + $0xf28] sm:$0xff] }
  0xbc   : > { %9183 = vmatpush1.bf16.msra.mxu1 %v9182_v0  ;;  %9153 = vmatprep.subr.bf16.mxu0 %v9152_v1  ;;  %v418_v61 = vld [vmem:[#allocation10 + $0xe38] sm:$0xff]  ;;  %v9170_v0 = vpack.c.bf16 %v407_v55, %v399_v54  ;;  %v9202_v1 = vpack.c.bf16 %v409_v58, %v401_v56  ;;  %v9172_v2 = vpack.c.bf16 %v424_v60, %v416_v59  ;;  %v415_v3 = vld [vmem:[#allocation10 + $0xe20] sm:$0xff]  ;;  %v425_v7 = vld [vmem:[#allocation10 + $0xf30] sm:$0xff] }
  0xbd   : > { %9185 = vmatprep.subr.bf16.mxu1 %v9184_v5  ;;  %503 = vmatprep.mubr.f32.mxu0 %v11959_v8  ;;  %v426_v62 = vld [vmem:[#allocation10 + $0xf38] sm:$0xff]  ;;  %v423_v4 = vld [vmem:[#allocation10 + $0xf20] sm:$0xff]  ;;  %v417_v5 = vld [vmem:[#allocation10 + $0xe30] sm:$0xff] }
  0xbe   : > { %592 = vmatprep.mubr.f32.mxu1 %v11959_v8  ;;  %504 = vmatmul.mubr.f32.gmra.mrb[4].mxu0 %v10855_v13  ;;  %v9204_v6 = vpack.c.bf16 %v426_v62, %v418_v61  ;;  %v816_v9 = vld [vmem:[#allocation10 + $0x48] sm:$0xff]  ;;  %v818_v11 = vld [vmem:[#allocation10 + $0x58] sm:$0xff]  ;;  %v815_v17 = vld [vmem:[#allocation10 + $0x40] sm:$0xff] }
  0xbf   : > { %9155 = vmatpush1.bf16.msra.mxu0 %v9154_v12  ;;  %593 = vmatmul.mubr.f32.gmra.mrb[4].mxu1 %v10855_v13  ;;  %v824_v10 = vld [vmem:[#allocation10 + $0x148] sm:$0xff]  ;;  %v826_v12 = vld [vmem:[#allocation10 + $0x158] sm:$0xff]  ;;  %v823_v18 = vld [vmem:[#allocation10 + $0x140] sm:$0xff] }
  0xc0   : > { %9187 = vmatpush1.bf16.msra.mxu1 %v9186_v14  ;;  %9157 = vmatprep.subr.bf16.mxu0 %v9156_v15  ;;  %v9174_v14 = vpack.c.bf16 %v423_v4, %v415_v3  ;;  %v9206_v15 = vpack.c.bf16 %v425_v7, %v417_v5  ;;  %v9208_v16 = vpack.c.bf16 %v824_v10, %v816_v9  ;;  %v825_v21 = vld [vmem:[#allocation10 + $0x150] sm:$0xff]  ;;  %v832_v22 = vld [vmem:[#allocation10 + $0x248] sm:$0xff]  ;;  %v834_v24 = vld [vmem:[#allocation10 + $0x258] sm:$0xff] }
  0xc1   : > { %9189 = vmatprep.subr.bf16.mxu1 %v9188_v19  ;;  %509 = vmatprep.mubr.f32.mxu0 %v11959_v8  ;;  %v817_v19 = vld [vmem:[#allocation10 + $0x50] sm:$0xff]  ;;  %v9240_v20 = vpack.c.bf16 %v826_v12, %v818_v11  ;;  %v840_v23 = vld [vmem:[#allocation10 + $0x348] sm:$0xff]  ;;  %v831_v30 = vld [vmem:[#allocation10 + $0x240] sm:$0xff] }
  0xc2   : > { %598 = vmatprep.mubr.f32.mxu1 %v11959_v8  ;;  %510 = vmatmul.mubr.f32.gmra.mrb[6].mxu0 %v10862_v26  ;;  %v9212_v29 = vpack.c.bf16 %v840_v23, %v832_v22  ;;  %v839_v31 = vld [vmem:[#allocation10 + $0x340] sm:$0xff]  ;;  %v841_v34 = vld [vmem:[#allocation10 + $0x350] sm:$0xff]  ;;  %v848_v35 = vld [vmem:[#allocation10 + $0x448] sm:$0xff] }
  0xc3   : > { %9159 = vmatpush1.bf16.msra.mxu0 %v9158_v25  ;;  %599 = vmatmul.mubr.f32.gmra.mrb[6].mxu1 %v10862_v26  ;;  %v842_v25 = vld [vmem:[#allocation10 + $0x358] sm:$0xff]  ;;  %v856_v36 = vld [vmem:[#allocation10 + $0x548] sm:$0xff]  ;;  %v847_v42 = vld [vmem:[#allocation10 + $0x440] sm:$0xff] }
  0xc4   : > { %9191 = vmatpush1.bf16.msra.mxu1 %v9190_v27  ;;  %9161 = vmatprep.subr.bf16.mxu0 %v9160_v28  ;;  %v9210_v27 = vpack.c.bf16 %v823_v18, %v815_v17  ;;  %v9242_v28 = vpack.c.bf16 %v825_v21, %v817_v19  ;;  %v9244_v33 = vpack.c.bf16 %v842_v25, %v834_v24  ;;  %v850_v37 = vld [vmem:[#allocation10 + $0x458] sm:$0xff]  ;;  %v855_v43 = vld [vmem:[#allocation10 + $0x540] sm:$0xff]  ;;  %v857_v46 = vld [vmem:[#allocation10 + $0x550] sm:$0xff] }
  0xc5   : > { %9193 = vmatprep.subr.bf16.mxu1 %v9192_v32  ;;  %669 = vmatprep.mubr.f32.mxu0 %v11959_v8  ;;  %v833_v32 = vld [vmem:[#allocation10 + $0x250] sm:$0xff]  ;;  %v9216_v41 = vpack.c.bf16 %v856_v36, %v848_v35  ;;  %v864_v47 = vld [vmem:[#allocation10 + $0x648] sm:$0xff]  ;;  %v866_v50 = vld [vmem:[#allocation10 + $0x658] sm:$0xff] }
  0xc6   : > { %758 = vmatprep.mubr.f32.mxu1 %v11959_v8  ;;  %v872_v48 = vld [vmem:[#allocation10 + $0x748] sm:$0xff]  ;;  %v863_v55 = vld [vmem:[#allocation10 + $0x640] sm:$0xff]  ;;  %v873_v59 = vld [vmem:[#allocation10 + $0x750] sm:$0xff] }
  0xc7   : > { %9163 = vmatpush1.bf16.msra.mxu0 %v9162_v38  ;;  %v858_v38 = vld [vmem:[#allocation10 + $0x558] sm:$0xff]  ;;  %v9220_v54 = vpack.c.bf16 %v872_v48, %v864_v47  ;;  %v871_v56 = vld [vmem:[#allocation10 + $0x740] sm:$0xff]  ;;  %v880_v60 = vld [vmem:[#allocation10 + $0x848] sm:$0xff] }
  0xc8   : > { %9195 = vmatpush1.bf16.msra.mxu1 %v9194_v39  ;;  %9165 = vmatprep.subr.bf16.mxu0 %v9164_v40  ;;  %v9214_v39 = vpack.c.bf16 %v839_v31, %v831_v30  ;;  %v9246_v40 = vpack.c.bf16 %v841_v34, %v833_v32  ;;  %v9248_v45 = vpack.c.bf16 %v858_v38, %v850_v37  ;;  %v888_v61 = vld [vmem:[#allocation10 + $0x948] sm:$0xff]  ;;  %v882_v62 = vld [vmem:[#allocation10 + $0x858] sm:$0xff]  ;;  %v879_v4 = vld [vmem:[#allocation10 + $0x840] sm:$0xff] }
  0xc9   : > { %9197 = vmatprep.subr.bf16.mxu1 %v9196_v44  ;;  %v849_v44 = vld [vmem:[#allocation10 + $0x450] sm:$0xff]  ;;  %v9224_v3 = vpack.c.bf16 %v888_v61, %v880_v60  ;;  %v887_v5 = vld [vmem:[#allocation10 + $0x940] sm:$0xff]  ;;  %v896_v10 = vld [vmem:[#allocation10 + $0xa48] sm:$0xff] }
  0xca   : > { %v889_v9 = vld [vmem:[#allocation10 + $0x950] sm:$0xff]  ;;  %v904_v11 = vld [vmem:[#allocation10 + $0xb48] sm:$0xff]  ;;  %v898_v12 = vld [vmem:[#allocation10 + $0xa58] sm:$0xff] }
  0xcb   : > { %9167 = vmatpush1.bf16.msra.mxu0 %v9166_v51  ;;  %v874_v51 = vld [vmem:[#allocation10 + $0x758] sm:$0xff]  ;;  %v9228_v17 = vpack.c.bf16 %v904_v11, %v896_v10  ;;  %v895_v18 = vld [vmem:[#allocation10 + $0xa40] sm:$0xff]  ;;  %v905_v22 = vld [vmem:[#allocation10 + $0xb50] sm:$0xff] }
  0xcc   : > { %9199 = vmatpush1.bf16.msra.mxu1 %v9198_v52  ;;  %9169 = vmatprep.subr.bf16.mxu0 %v9168_v53  ;;  %v9218_v52 = vpack.c.bf16 %v855_v43, %v847_v42  ;;  %v9250_v53 = vpack.c.bf16 %v857_v46, %v849_v44  ;;  %v9252_v58 = vpack.c.bf16 %v874_v51, %v866_v50  ;;  %v903_v19 = vld [vmem:[#allocation10 + $0xb40] sm:$0xff]  ;;  %v912_v23 = vld [vmem:[#allocation10 + $0xc48] sm:$0xff]  ;;  %v914_v25 = vld [vmem:[#allocation10 + $0xc58] sm:$0xff] }
  0xcd   : > { %9201 = vmatprep.subr.bf16.mxu1 %v9200_v57  ;;  %v865_v57 = vld [vmem:[#allocation10 + $0x650] sm:$0xff]  ;;  %v920_v24 = vld [vmem:[#allocation10 + $0xd48] sm:$0xff]  ;;  %v911_v31 = vld [vmem:[#allocation10 + $0xc40] sm:$0xff] }
  0xce   : > { %v9232_v30 = vpack.c.bf16 %v920_v24, %v912_v23  ;;  %v919_v32 = vld [vmem:[#allocation10 + $0xd40] sm:$0xff]  ;;  %v921_v35 = vld [vmem:[#allocation10 + $0xd50] sm:$0xff]  ;;  %v928_v36 = vld [vmem:[#allocation10 + $0xe48] sm:$0xff] }
  0xcf   : > { %9171 = vmatpush1.bf16.msra.mxu0 %v9170_v0  ;;  %v890_v0 = vld [vmem:[#allocation10 + $0x958] sm:$0xff]  ;;  %v936_v37 = vld [vmem:[#allocation10 + $0xf48] sm:$0xff]  ;;  %v927_v43 = vld [vmem:[#allocation10 + $0xe40] sm:$0xff] }
  0xd0   : > { %9203 = vmatpush1.bf16.msra.mxu1 %v9202_v1  ;;  %9173 = vmatprep.subr.bf16.mxu0 %v9172_v2  ;;  %v9222_v1 = vpack.c.bf16 %v871_v56, %v863_v55  ;;  %v9254_v2 = vpack.c.bf16 %v873_v59, %v865_v57  ;;  %v9256_v7 = vpack.c.bf16 %v890_v0, %v882_v62  ;;  %v930_v38 = vld [vmem:[#allocation10 + $0xe58] sm:$0xff]  ;;  %v935_v44 = vld [vmem:[#allocation10 + $0xf40] sm:$0xff]  ;;  %v937_v47 = vld [vmem:[#allocation10 + $0xf50] sm:$0xff] }
  0xd1   : > { %9205 = vmatprep.subr.bf16.mxu1 %v9204_v6  ;;  %v881_v6 = vld [vmem:[#allocation10 + $0x850] sm:$0xff]  ;;  %v9236_v42 = vpack.c.bf16 %v936_v37, %v928_v36  ;;  %v820_v48 = vld [vmem:[#allocation10 + $0x68] sm:$0xff]  ;;  %v822_v51 = vld [vmem:[#allocation10 + $0x78] sm:$0xff] }
  0xd2   : > { %v828_v50 = vld [vmem:[#allocation10 + $0x168] sm:$0xff]  ;;  %v819_v56 = vld [vmem:[#allocation10 + $0x60] sm:$0xff]  ;;  %v829_v60 = vld [vmem:[#allocation10 + $0x170] sm:$0xff] }
  0xd3   : > { %9175 = vmatpush1.bf16.msra.mxu0 %v9174_v14  ;;  %v906_v14 = vld [vmem:[#allocation10 + $0xb58] sm:$0xff]  ;;  %v9272_v55 = vpack.c.bf16 %v828_v50, %v820_v48  ;;  %v827_v57 = vld [vmem:[#allocation10 + $0x160] sm:$0xff]  ;;  %v836_v61 = vld [vmem:[#allocation10 + $0x268] sm:$0xff] }
  0xd4   : > { %9207 = vmatpush1.bf16.msra.mxu1 %v9206_v15  ;;  %9209 = vmatprep.subr.bf16.mxu0 %v9208_v16  ;;  %v9226_v15 = vpack.c.bf16 %v887_v5, %v879_v4  ;;  %v9258_v16 = vpack.c.bf16 %v889_v9, %v881_v6  ;;  %v9260_v21 = vpack.c.bf16 %v906_v14, %v898_v12  ;;  %v844_v62 = vld [vmem:[#allocation10 + $0x368] sm:$0xff]  ;;  %v838_v0 = vld [vmem:[#allocation10 + $0x278] sm:$0xff]  ;;  %v835_v5 = vld [vmem:[#allocation10 + $0x260] sm:$0xff] }
  0xd5   : > { %9241 = vmatprep.subr.bf16.mxu1 %v9240_v20  ;;  %v897_v20 = vld [vmem:[#allocation10 + $0xa50] sm:$0xff]  ;;  %v9276_v4 = vpack.c.bf16 %v844_v62, %v836_v61  ;;  %v843_v6 = vld [vmem:[#allocation10 + $0x360] sm:$0xff]  ;;  %v852_v11 = vld [vmem:[#allocation10 + $0x468] sm:$0xff] }
  0xd6   : > { %670 = vmatmul.mubr.f32.vlgmr.msra.gmra.mrb[8].mxu0 %v10843_v49  ;;  %v845_v10 = vld [vmem:[#allocation10 + $0x370] sm:$0xff]  ;;  %v860_v12 = vld [vmem:[#allocation10 + $0x568] sm:$0xff]  ;;  %v854_v14 = vld [vmem:[#allocation10 + $0x478] sm:$0xff] }
  0xd7   : > { %759 = vmatmul.mubr.f32.vlgmr.msra.gmra.mrb[8].mxu1 %v10843_v49  ;;  %9211 = vmatpush1.bf16.msra.mxu0 %v9210_v27  ;;  %v922_v27 = vld [vmem:[#allocation10 + $0xd58] sm:$0xff]  ;;  %v861_v23 = vld [vmem:[#allocation10 + $0x570] sm:$0xff]  ;;  %v868_v24 = vld [vmem:[#allocation10 + $0x668] sm:$0xff] }
  0xd8   : > { %9243 = vmatpush1.bf16.msra.mxu1 %v9242_v28  ;;  %9213 = vmatprep.subr.bf16.mxu0 %v9212_v29  ;;  %v9230_v28 = vpack.c.bf16 %v903_v19, %v895_v18  ;;  %v9262_v29 = vpack.c.bf16 %v905_v22, %v897_v20  ;;  %v9264_v34 = vpack.c.bf16 %v922_v27, %v914_v25  ;;  %v851_v19 = vld [vmem:[#allocation10 + $0x460] sm:$0xff]  ;;  %v876_v25 = vld [vmem:[#allocation10 + $0x768] sm:$0xff]  ;;  %v870_v27 = vld [vmem:[#allocation10 + $0x678] sm:$0xff] }
  0xd9   : > { %9245 = vmatprep.subr.bf16.mxu1 %v9244_v33  ;;  %675 = vmatprep.mubr.f32.mxu0 %v11959_v8  ;;  %v913_v33 = vld [vmem:[#allocation10 + $0xc50] sm:$0xff]  ;;  %v9280_v18 = vpack.c.bf16 %v860_v12, %v852_v11  ;;  %v859_v20 = vld [vmem:[#allocation10 + $0x560] sm:$0xff]  ;;  %v884_v37 = vld [vmem:[#allocation10 + $0x868] sm:$0xff] }
  0xda   : > { %764 = vmatprep.mubr.f32.mxu1 %v11959_v8  ;;  %676 = vmatmul.mubr.f32.gmra.mrb[10].mxu0 %v10848_v63  ;;  %v877_v36 = vld [vmem:[#allocation10 + $0x770] sm:$0xff]  ;;  %v900_v50 = vld [vmem:[#allocation10 + $0xa68] sm:$0xff] }
  0xdb   : > { %9215 = vmatpush1.bf16.msra.mxu0 %v9214_v39  ;;  %765 = vmatmul.mubr.f32.gmra.mrb[10].mxu1 %v10848_v63  ;;  %v938_v39 = vld [vmem:[#allocation10 + $0xf58] sm:$0xff]  ;;  %v893_v48 = vld [vmem:[#allocation10 + $0x970] sm:$0xff]  ;;  %v916_v62 = vld [vmem:[#allocation10 + $0xc68] sm:$0xff] }
  0xdc   : > { %9247 = vmatpush1.bf16.msra.mxu1 %v9246_v40  ;;  %9217 = vmatprep.subr.bf16.mxu0 %v9216_v41  ;;  %v9234_v40 = vpack.c.bf16 %v919_v32, %v911_v31  ;;  %v9266_v41 = vpack.c.bf16 %v921_v35, %v913_v33  ;;  %v9268_v46 = vpack.c.bf16 %v938_v39, %v930_v38  ;;  %v867_v32 = vld [vmem:[#allocation10 + $0x660] sm:$0xff]  ;;  %v892_v38 = vld [vmem:[#allocation10 + $0x968] sm:$0xff]  ;;  %v886_v39 = vld [vmem:[#allocation10 + $0x878] sm:$0xff] }
  0xdd   : > { %9249 = vmatprep.subr.bf16.mxu1 %v9248_v45  ;;  %681 = vmatprep.mubr.f32.mxu0 %v11959_v8  ;;  %v929_v45 = vld [vmem:[#allocation10 + $0xe50] sm:$0xff]  ;;  %v9284_v31 = vpack.c.bf16 %v876_v25, %v868_v24  ;;  %v875_v33 = vld [vmem:[#allocation10 + $0x760] sm:$0xff]  ;;  %v932_v12 = vld [vmem:[#allocation10 + $0xe68] sm:$0xff] }
  0xde   : > { %770 = vmatprep.mubr.f32.mxu1 %v11959_v8  ;;  %682 = vmatmul.mubr.f32.gmra.mrb[12].mxu0 %v10855_v13  ;;  %v909_v61 = vld [vmem:[#allocation10 + $0xb70] sm:$0xff]  ;;  %v1332_v25 = vld [vmem:[#allocation10 + $0x88] sm:$0xff] }
  0xdf   : > { %9219 = vmatpush1.bf16.msra.mxu0 %v9218_v52  ;;  %771 = vmatmul.mubr.f32.gmra.mrb[12].mxu1 %v10855_v13  ;;  %v830_v52 = vld [vmem:[#allocation10 + $0x178] sm:$0xff]  ;;  %v925_v11 = vld [vmem:[#allocation10 + $0xd70] sm:$0xff] }
  0xe0   : > { %9251 = vmatpush1.bf16.msra.mxu1 %v9250_v53  ;;  %9221 = vmatprep.subr.bf16.mxu0 %v9220_v54  ;;  %v9238_v53 = vpack.c.bf16 %v935_v44, %v927_v43  ;;  %v9270_v54 = vpack.c.bf16 %v937_v47, %v929_v45  ;;  %v9304_v59 = vpack.c.bf16 %v830_v52, %v822_v51  ;;  %v883_v44 = vld [vmem:[#allocation10 + $0x860] sm:$0xff]  ;;  %v908_v51 = vld [vmem:[#allocation10 + $0xb68] sm:$0xff]  ;;  %v902_v52 = vld [vmem:[#allocation10 + $0xa78] sm:$0xff] }
  0xe1   : > { %9253 = vmatprep.subr.bf16.mxu1 %v9252_v58  ;;  %687 = vmatprep.mubr.f32.mxu0 %v11959_v8  ;;  %v821_v58 = vld [vmem:[#allocation10 + $0x70] sm:$0xff]  ;;  %v9288_v43 = vpack.c.bf16 %v892_v38, %v884_v37  ;;  %v891_v45 = vld [vmem:[#allocation10 + $0x960] sm:$0xff]  ;;  %v1348_v38 = vld [vmem:[#allocation10 + $0x288] sm:$0xff] }
  0xe2   : > { %776 = vmatprep.mubr.f32.mxu1 %v11959_v8  ;;  %688 = vmatmul.mubr.f32.gmra.mrb[14].mxu0 %v10862_v26  ;;  %v941_v24 = vld [vmem:[#allocation10 + $0xf70] sm:$0xff] }
  0xe3   : > { %9223 = vmatpush1.bf16.msra.mxu0 %v9222_v1  ;;  %777 = vmatmul.mubr.f32.gmra.mrb[14].mxu1 %v10862_v26  ;;  %v846_v1 = vld [vmem:[#allocation10 + $0x378] sm:$0xff]  ;;  %v1341_v37 = vld [vmem:[#allocation10 + $0x190] sm:$0xff] }
  0xe4   : > { %9255 = vmatpush1.bf16.msra.mxu1 %v9254_v2  ;;  %9225 = vmatprep.subr.bf16.mxu0 %v9224_v3  ;;  %v9274_v2 = vpack.c.bf16 %v827_v57, %v819_v56  ;;  %v9306_v3 = vpack.c.bf16 %v829_v60, %v821_v58  ;;  %v9308_v9 = vpack.c.bf16 %v846_v1, %v838_v0  ;;  %v899_v57 = vld [vmem:[#allocation10 + $0xa60] sm:$0xff]  ;;  %v924_v0 = vld [vmem:[#allocation10 + $0xd68] sm:$0xff]  ;;  %v918_v1 = vld [vmem:[#allocation10 + $0xc78] sm:$0xff] }
  0xe5   : > { %9257 = vmatprep.subr.bf16.mxu1 %v9256_v7  ;;  %1007 = vmatprep.mubr.f32.mxu0 %v11959_v8  ;;  %v837_v7 = vld [vmem:[#allocation10 + $0x270] sm:$0xff]  ;;  %v9292_v56 = vpack.c.bf16 %v908_v51, %v900_v50  ;;  %v907_v58 = vld [vmem:[#allocation10 + $0xb60] sm:$0xff]  ;;  %v1364_v51 = vld [vmem:[#allocation10 + $0x488] sm:$0xff] }
  0xe6   : > { %1096 = vmatprep.mubr.f32.mxu1 %v11959_v8  ;;  %v1357_v50 = vld [vmem:[#allocation10 + $0x390] sm:$0xff] }
  0xe7   : > { %9227 = vmatpush1.bf16.msra.mxu0 %v9226_v15  ;;  %v862_v15 = vld [vmem:[#allocation10 + $0x578] sm:$0xff] }
  0xe8   : > { %9259 = vmatpush1.bf16.msra.mxu1 %v9258_v16  ;;  %9229 = vmatprep.subr.bf16.mxu0 %v9228_v17  ;;  %v9278_v16 = vpack.c.bf16 %v843_v6, %v835_v5  ;;  %v9310_v17 = vpack.c.bf16 %v845_v10, %v837_v7  ;;  %v9312_v22 = vpack.c.bf16 %v862_v15, %v854_v14  ;;  %v915_v6 = vld [vmem:[#allocation10 + $0xc60] sm:$0xff]  ;;  %v940_v14 = vld [vmem:[#allocation10 + $0xf68] sm:$0xff]  ;;  %v934_v15 = vld [vmem:[#allocation10 + $0xe78] sm:$0xff] }
  0xe9   : > { %9261 = vmatprep.subr.bf16.mxu1 %v9260_v21  ;;  %v853_v21 = vld [vmem:[#allocation10 + $0x470] sm:$0xff]  ;;  %v9296_v5 = vpack.c.bf16 %v924_v0, %v916_v62  ;;  %v923_v7 = vld [vmem:[#allocation10 + $0xd60] sm:$0xff]  ;;  %v1380_v0 = vld [vmem:[#allocation10 + $0x688] sm:$0xff] }
  0xea   : > { %v1373_v62 = vld [vmem:[#allocation10 + $0x590] sm:$0xff] }
  0xeb   : > { %9231 = vmatpush1.bf16.msra.mxu0 %v9230_v28  ;;  %v878_v28 = vld [vmem:[#allocation10 + $0x778] sm:$0xff] }
  0xec   : > { %9263 = vmatpush1.bf16.msra.mxu1 %v9262_v29  ;;  %9233 = vmatprep.subr.bf16.mxu0 %v9232_v30  ;;  %v9282_v29 = vpack.c.bf16 %v859_v20, %v851_v19  ;;  %v9314_v30 = vpack.c.bf16 %v861_v23, %v853_v21  ;;  %v9316_v35 = vpack.c.bf16 %v878_v28, %v870_v27  ;;  %v931_v20 = vld [vmem:[#allocation10 + $0xe60] sm:$0xff]  ;;  %v1340_v27 = vld [vmem:[#allocation10 + $0x188] sm:$0xff]  ;;  %v1334_v28 = vld [vmem:[#allocation10 + $0x98] sm:$0xff] }
  0xed   : > { %9265 = vmatprep.subr.bf16.mxu1 %v9264_v34  ;;  %v869_v34 = vld [vmem:[#allocation10 + $0x670] sm:$0xff]  ;;  %v9300_v19 = vpack.c.bf16 %v940_v14, %v932_v12  ;;  %v939_v21 = vld [vmem:[#allocation10 + $0xf60] sm:$0xff]  ;;  %v1396_v12 = vld [vmem:[#allocation10 + $0x888] sm:$0xff] }
  0xee   : > { %v1404_v14 = vld [vmem:[#allocation10 + $0x988] sm:$0xff] }
  0xef   : > { %9235 = vmatpush1.bf16.msra.mxu0 %v9234_v40  ;;  %v894_v40 = vld [vmem:[#allocation10 + $0x978] sm:$0xff] }
  0xf0   : > { %9267 = vmatpush1.bf16.msra.mxu1 %v9266_v41  ;;  %9237 = vmatprep.subr.bf16.mxu0 %v9236_v42  ;;  %v9286_v41 = vpack.c.bf16 %v875_v33, %v867_v32  ;;  %v9318_v42 = vpack.c.bf16 %v877_v36, %v869_v34  ;;  %v9320_v47 = vpack.c.bf16 %v894_v40, %v886_v39  ;;  %v1331_v33 = vld [vmem:[#allocation10 + $0x80] sm:$0xff]  ;;  %v1356_v39 = vld [vmem:[#allocation10 + $0x388] sm:$0xff]  ;;  %v1350_v40 = vld [vmem:[#allocation10 + $0x298] sm:$0xff] }
  0xf1   : > { %9269 = vmatprep.subr.bf16.mxu1 %v9268_v46  ;;  %v885_v46 = vld [vmem:[#allocation10 + $0x870] sm:$0xff]  ;;  %v9336_v32 = vpack.c.bf16 %v1340_v27, %v1332_v25  ;;  %v1339_v34 = vld [vmem:[#allocation10 + $0x180] sm:$0xff]  ;;  %v1420_v25 = vld [vmem:[#allocation10 + $0xb88] sm:$0xff] }
  0xf2   : > { %v1414_v27 = vld [vmem:[#allocation10 + $0xa98] sm:$0xff] }
  0xf3   : > { %9239 = vmatpush1.bf16.msra.mxu0 %v9238_v53  ;;  %v910_v53 = vld [vmem:[#allocation10 + $0xb78] sm:$0xff] }
  0xf4   : > { %9271 = vmatpush1.bf16.msra.mxu1 %v9270_v54  ;;  %9273 = vmatprep.subr.bf16.mxu0 %v9272_v55  ;;  %v9290_v54 = vpack.c.bf16 %v891_v45, %v883_v44  ;;  %v9322_v55 = vpack.c.bf16 %v893_v48, %v885_v46  ;;  %v9324_v60 = vpack.c.bf16 %v910_v53, %v902_v52  ;;  %v1347_v45 = vld [vmem:[#allocation10 + $0x280] sm:$0xff]  ;;  %v1372_v52 = vld [vmem:[#allocation10 + $0x588] sm:$0xff]  ;;  %v1366_v53 = vld [vmem:[#allocation10 + $0x498] sm:$0xff] }
  0xf5   : > { %9305 = vmatprep.subr.bf16.mxu1 %v9304_v59  ;;  %v901_v59 = vld [vmem:[#allocation10 + $0xa70] sm:$0xff]  ;;  %v9340_v44 = vpack.c.bf16 %v1356_v39, %v1348_v38  ;;  %v1355_v46 = vld [vmem:[#allocation10 + $0x380] sm:$0xff]  ;;  %v1430_v38 = vld [vmem:[#allocation10 + $0xc98] sm:$0xff] }
  0xf6   : > { %1008 = vmatmul.mubr.f32.vlgmr.msra.gmra.mrb[16].mxu0 %v10843_v49  ;;  %v1438_v39 = vld [vmem:[#allocation10 + $0xd98] sm:$0xff] }
  0xf7   : > { %1097 = vmatmul.mubr.f32.vlgmr.msra.gmra.mrb[16].mxu1 %v10843_v49  ;;  %9275 = vmatpush1.bf16.msra.mxu0 %v9274_v2  ;;  %v926_v2 = vld [vmem:[#allocation10 + $0xd78] sm:$0xff] }
  0xf8   : > { %9307 = vmatpush1.bf16.msra.mxu1 %v9306_v3  ;;  %9277 = vmatprep.subr.bf16.mxu0 %v9276_v4  ;;  %v9294_v3 = vpack.c.bf16 %v907_v58, %v899_v57  ;;  %v9326_v4 = vpack.c.bf16 %v909_v61, %v901_v59  ;;  %v9328_v10 = vpack.c.bf16 %v926_v2, %v918_v1  ;;  %v1363_v58 = vld [vmem:[#allocation10 + $0x480] sm:$0xff]  ;;  %v1388_v1 = vld [vmem:[#allocation10 + $0x788] sm:$0xff]  ;;  %v1382_v2 = vld [vmem:[#allocation10 + $0x698] sm:$0xff] }
  0xf9   : > { %9309 = vmatprep.subr.bf16.mxu1 %v9308_v9  ;;  %1013 = vmatprep.mubr.f32.mxu0 %v11959_v8  ;;  %v917_v9 = vld [vmem:[#allocation10 + $0xc70] sm:$0xff]  ;;  %v9344_v57 = vpack.c.bf16 %v1372_v52, %v1364_v51  ;;  %v1371_v59 = vld [vmem:[#allocation10 + $0x580] sm:$0xff]  ;;  %v1454_v51 = vld [vmem:[#allocation10 + $0xf98] sm:$0xff] }
  0xfa   : > { %1102 = vmatprep.mubr.f32.mxu1 %v11959_v8  ;;  %1014 = vmatmul.mubr.f32.gmra.mrb[18].mxu0 %v10848_v63 }
  0xfb   : > { %9279 = vmatpush1.bf16.msra.mxu0 %v9278_v16  ;;  %1103 = vmatmul.mubr.f32.gmra.mrb[18].mxu1 %v10848_v63  ;;  %v942_v16 = vld [vmem:[#allocation10 + $0xf78] sm:$0xff] }
  0xfc   : > { %9311 = vmatpush1.bf16.msra.mxu1 %v9310_v17  ;;  %9281 = vmatprep.subr.bf16.mxu0 %v9280_v18  ;;  %v9298_v17 = vpack.c.bf16 %v923_v7, %v915_v6  ;;  %v9330_v18 = vpack.c.bf16 %v925_v11, %v917_v9  ;;  %v9332_v23 = vpack.c.bf16 %v942_v16, %v934_v15  ;;  %v1379_v6 = vld [vmem:[#allocation10 + $0x680] sm:$0xff]  ;;  %v1381_v9 = vld [vmem:[#allocation10 + $0x690] sm:$0xff]  ;;  %v1398_v15 = vld [vmem:[#allocation10 + $0x898] sm:$0xff] }
  0xfd   : > { %9313 = vmatprep.subr.bf16.mxu1 %v9312_v22  ;;  %1019 = vmatprep.mubr.f32.mxu0 %v11959_v8  ;;  %v933_v22 = vld [vmem:[#allocation10 + $0xe70] sm:$0xff]  ;;  %v1387_v7 = vld [vmem:[#allocation10 + $0x780] sm:$0xff]  ;;  %v1406_v16 = vld [vmem:[#allocation10 + $0x998] sm:$0xff] }
  0xfe   : > { %1108 = vmatprep.mubr.f32.mxu1 %v11959_v8  ;;  %1020 = vmatmul.mubr.f32.gmra.mrb[20].mxu0 %v10855_v13  ;;  %v1389_v11 = vld [vmem:[#allocation10 + $0x790] sm:$0xff] }
  0xff   : > { %9283 = vmatpush1.bf16.msra.mxu0 %v9282_v29  ;;  %1109 = vmatmul.mubr.f32.gmra.mrb[20].mxu1 %v10855_v13  ;;  %v1342_v29 = vld [vmem:[#allocation10 + $0x198] sm:$0xff] }
 0x100   : > { %9315 = vmatpush1.bf16.msra.mxu1 %v9314_v30  ;;  %9285 = vmatprep.subr.bf16.mxu0 %v9284_v31  ;;  %v9302_v30 = vpack.c.bf16 %v939_v21, %v931_v20  ;;  %v9334_v31 = vpack.c.bf16 %v941_v24, %v933_v22  ;;  %v9368_v36 = vpack.c.bf16 %v1342_v29, %v1334_v28  ;;  %v1403_v20 = vld [vmem:[#allocation10 + $0x980] sm:$0xff]  ;;  %v1397_v21 = vld [vmem:[#allocation10 + $0x890] sm:$0xff]  ;;  %v1412_v24 = vld [vmem:[#allocation10 + $0xa88] sm:$0xff] }
 0x101   : > { %9317 = vmatprep.subr.bf16.mxu1 %v9316_v35  ;;  %1025 = vmatprep.mubr.f32.mxu0 %v11959_v8  ;;  %v1333_v35 = vld [vmem:[#allocation10 + $0x90] sm:$0xff]  ;;  %v9384_v22 = vpack.c.bf16 %v1406_v16, %v1398_v15  ;;  %v1422_v28 = vld [vmem:[#allocation10 + $0xb98] sm:$0xff] }
 0x102   : > { %1114 = vmatprep.mubr.f32.mxu1 %v11959_v8  ;;  %1026 = vmatmul.mubr.f32.gmra.mrb[22].mxu0 %v10862_v26 }
 0x103   : > { %9287 = vmatpush1.bf16.msra.mxu0 %v9286_v41  ;;  %1115 = vmatmul.mubr.f32.gmra.mrb[22].mxu1 %v10862_v26  ;;  %v1358_v41 = vld [vmem:[#allocation10 + $0x398] sm:$0xff] }
 0x104   : > { %9319 = vmatpush1.bf16.msra.mxu1 %v9318_v42  ;;  %9289 = vmatprep.subr.bf16.mxu0 %v9288_v43  ;;  %v9338_v42 = vpack.c.bf16 %v1339_v34, %v1331_v33  ;;  %v9370_v43 = vpack.c.bf16 %v1341_v37, %v1333_v35  ;;  %v9372_v48 = vpack.c.bf16 %v1358_v41, %v1350_v40  ;;  %v1413_v33 = vld [vmem:[#allocation10 + $0xa90] sm:$0xff]  ;;  %v1436_v37 = vld [vmem:[#allocation10 + $0xd88] sm:$0xff] }
 0x105   : > { %9321 = vmatprep.subr.bf16.mxu1 %v9320_v47  ;;  %1185 = vmatprep.mubr.f32.mxu0 %v11959_v8  ;;  %v1349_v47 = vld [vmem:[#allocation10 + $0x290] sm:$0xff]  ;;  %v9388_v34 = vpack.c.bf16 %v1422_v28, %v1414_v27 }
 0x106   : > { %1274 = vmatprep.mubr.f32.mxu1 %v11959_v8  ;;  %v1421_v35 = vld [vmem:[#allocation10 + $0xb90] sm:$0xff] }
 0x107   : > { %9291 = vmatpush1.bf16.msra.mxu0 %v9290_v54  ;;  %v1374_v54 = vld [vmem:[#allocation10 + $0x598] sm:$0xff]  ;;  %v9390_v40 = vpack.c.bf16 %v1421_v35, %v1413_v33  ;;  %v1377_v33 = vld [vmem:[#allocation10 + $0x5b0] sm:$0xff]  ;;  %v1392_v35 = vld [vmem:[#allocation10 + $0x7a8] sm:$0xff] }
 0x108   : > { %9323 = vmatpush1.bf16.msra.mxu1 %v9322_v55  ;;  %9293 = vmatprep.subr.bf16.mxu0 %v9292_v56  ;;  %v9342_v55 = vpack.c.bf16 %v1355_v46, %v1347_v45  ;;  %v9374_v56 = vpack.c.bf16 %v1357_v50, %v1349_v47  ;;  %v9376_v61 = vpack.c.bf16 %v1374_v54, %v1366_v53  ;;  %v1437_v46 = vld [vmem:[#allocation10 + $0xd90] sm:$0xff]  ;;  %v1444_v47 = vld [vmem:[#allocation10 + $0xe88] sm:$0xff]  ;;  %v1446_v50 = vld [vmem:[#allocation10 + $0xe98] sm:$0xff] }
 0x109   : > { %9325 = vmatprep.subr.bf16.mxu1 %v9324_v60  ;;  %v1365_v60 = vld [vmem:[#allocation10 + $0x490] sm:$0xff]  ;;  %v9392_v45 = vpack.c.bf16 %v1438_v39, %v1430_v38  ;;  %v10926_v38 = vld [vmem:[%s10821_s12 + $0x8] sm:$0xff] }
 0x10b   : > { %9295 = vmatpush1.bf16.msra.mxu0 %v9294_v3  ;;  %v1390_v3 = vld [vmem:[#allocation10 + $0x798] sm:$0xff] }
 0x10c   : > { %9327 = vmatpush1.bf16.msra.mxu1 %v9326_v4  ;;  %9297 = vmatprep.subr.bf16.mxu0 %v9296_v5  ;;  %v9378_v4 = vpack.c.bf16 %v1373_v62, %v1365_v60  ;;  %v9348_v5 = vpack.c.bf16 %v1388_v1, %v1380_v0  ;;  %v1336_v60 = vld [vmem:[#allocation10 + $0xa8] sm:$0xff]  ;;  %v1338_v62 = vld [vmem:[#allocation10 + $0xb8] sm:$0xff] }
 0x10d   : > { %9329 = vmatprep.subr.bf16.mxu1 %v9328_v10  ;;  %v9380_v10 = vpack.c.bf16 %v1390_v3, %v1382_v2  ;;  %v1346_v0 = vld [vmem:[#allocation10 + $0x1b8] sm:$0xff] }
 0x10f   : > { %9299 = vmatpush1.bf16.msra.mxu0 %v9298_v17  ;;  %v9382_v17 = vpack.c.bf16 %v1389_v11, %v1381_v9  ;;  %v1352_v9 = vld [vmem:[#allocation10 + $0x2a8] sm:$0xff]  ;;  %v1354_v11 = vld [vmem:[#allocation10 + $0x2b8] sm:$0xff] }
 0x110   : > { %9331 = vmatpush1.bf16.msra.mxu1 %v9330_v18  ;;  %9301 = vmatprep.subr.bf16.mxu0 %v9300_v19  ;;  %v9352_v18 = vpack.c.bf16 %v1404_v14, %v1396_v12  ;;  %v1395_v19 = vld [vmem:[#allocation10 + $0x880] sm:$0xff]  ;;  %v1362_v12 = vld [vmem:[#allocation10 + $0x3b8] sm:$0xff] }
 0x111   : > { %9333 = vmatprep.subr.bf16.mxu1 %v9332_v23  ;;  %v1405_v23 = vld [vmem:[#allocation10 + $0x990] sm:$0xff] }
 0x112   : > { %v9386_v29 = vpack.c.bf16 %v1405_v23, %v1397_v21  ;;  %v1368_v21 = vld [vmem:[#allocation10 + $0x4a8] sm:$0xff]  ;;  %v10919_v23 = vld [vmem:[%s10821_s12] sm:$0xff] }
 0x113   : > { %9303 = vmatpush1.bf16.msra.mxu0 %v9302_v30  ;;  %v9356_v30 = vpack.c.bf16 %v1420_v25, %v1412_v24  ;;  %v1370_v24 = vld [vmem:[#allocation10 + $0x4b8] sm:$0xff] }
 0x114   : > { %9335 = vmatpush1.bf16.msra.mxu1 %v9334_v31  ;;  %9337 = vmatprep.subr.bf16.mxu0 %v9336_v32  ;;  %v1411_v31 = vld [vmem:[#allocation10 + $0xa80] sm:$0xff]  ;;  %v1378_v25 = vld [vmem:[#allocation10 + $0x5b8] sm:$0xff] }
 0x115   : > { %9369 = vmatprep.subr.bf16.mxu1 %v9368_v36  ;;  %v1419_v32 = vld [vmem:[#allocation10 + $0xb80] sm:$0xff]  ;;  %v1428_v36 = vld [vmem:[#allocation10 + $0xc88] sm:$0xff] }
 0x116   : > { %1186 = vmatmul.mubr.f32.vlgmr.msra.gmra.mrb[24].mxu0 %v10843_v49  ;;  %v9360_v41 = vpack.c.bf16 %v1436_v37, %v1428_v36  ;;  %v1386_v36 = vld [vmem:[#allocation10 + $0x6b8] sm:$0xff] }
 0x117   : > { %1275 = vmatmul.mubr.f32.vlgmr.msra.gmra.mrb[24].mxu1 %v10843_v49  ;;  %9339 = vmatpush1.bf16.msra.mxu0 %v9338_v42  ;;  %v9346_v49 = vpack.c.bf16 %v1371_v59, %v1363_v58  ;;  %v1427_v42 = vld [vmem:[#allocation10 + $0xc80] sm:$0xff]  ;;  %v9396_v58 = vpack.c.bf16 %v1454_v51, %v1446_v50  ;;  %v1453_v59 = vld [vmem:[#allocation10 + $0xf90] sm:$0xff]  ;;  %v1394_v37 = vld [vmem:[#allocation10 + $0x7b8] sm:$0xff] }
 0x118   : > { %9371 = vmatpush1.bf16.msra.mxu1 %v9370_v43  ;;  %9341 = vmatprep.subr.bf16.mxu0 %v9340_v44  ;;  %v1435_v43 = vld [vmem:[#allocation10 + $0xd80] sm:$0xff]  ;;  %v1429_v44 = vld [vmem:[#allocation10 + $0xc90] sm:$0xff]  ;;  %v1410_v50 = vld [vmem:[#allocation10 + $0x9b8] sm:$0xff] }
 0x119   : > { %9373 = vmatprep.subr.bf16.mxu1 %v9372_v48  ;;  %1191 = vmatprep.mubr.f32.mxu0 %v11959_v8  ;;  %v1452_v48 = vld [vmem:[#allocation10 + $0xf88] sm:$0xff]  ;;  %v9362_v52 = vpack.c.bf16 %v1435_v43, %v1427_v42  ;;  %v9394_v53 = vpack.c.bf16 %v1437_v46, %v1429_v44  ;;  %v1391_v42 = vld [vmem:[#allocation10 + $0x7a0] sm:$0xff]  ;;  %v1385_v43 = vld [vmem:[#allocation10 + $0x6b0] sm:$0xff]  ;;  %v9444_v44 = vpack.c.bf16 %v1394_v37, %v1386_v36 }
 0x11a   : > { %1280 = vmatprep.mubr.f32.mxu1 %v11959_v8  ;;  %1192 = vmatmul.mubr.f32.gmra.mrb[26].mxu0 %v10848_v63  ;;  %v9364_v54 = vpack.c.bf16 %v1452_v48, %v1444_v47  ;;  %v1400_v46 = vld [vmem:[#allocation10 + $0x8a8] sm:$0xff]  ;;  %v1402_v48 = vld [vmem:[#allocation10 + $0x8b8] sm:$0xff]  ;;  %v10933_v51 = vld [vmem:[%s10821_s12 + $0x10] sm:$0xff] }
 0x11b   : > { %9343 = vmatpush1.bf16.msra.mxu0 %v9342_v55  ;;  %1281 = vmatmul.mubr.f32.gmra.mrb[26].mxu1 %v10848_v63  ;;  %v9350_v63 = vpack.c.bf16 %v1387_v7, %v1379_v6  ;;  %v1443_v55 = vld [vmem:[#allocation10 + $0xe80] sm:$0xff]  ;;  %v9432_v6 = vpack.c.bf16 %v1346_v0, %v1338_v62  ;;  %v1345_v7 = vld [vmem:[#allocation10 + $0x1b0] sm:$0xff]  ;;  %v1408_v47 = vld [vmem:[#allocation10 + $0x9a8] sm:$0xff] }
 0x11c   : > { %9375 = vmatpush1.bf16.msra.mxu1 %v9374_v56  ;;  %9345 = vmatprep.subr.bf16.mxu0 %v9344_v57  ;;  %v1451_v56 = vld [vmem:[#allocation10 + $0xf80] sm:$0xff]  ;;  %v1445_v57 = vld [vmem:[#allocation10 + $0xe90] sm:$0xff]  ;;  %v1418_v62 = vld [vmem:[#allocation10 + $0xab8] sm:$0xff] }
 0x11d   : > { %9377 = vmatprep.subr.bf16.mxu1 %v9376_v61  ;;  %1197 = vmatprep.mubr.f32.mxu0 %v11959_v8  ;;  %v1344_v61 = vld [vmem:[#allocation10 + $0x1a8] sm:$0xff]  ;;  %v9366_v1 = vpack.c.bf16 %v1451_v56, %v1443_v55  ;;  %v9398_v2 = vpack.c.bf16 %v1453_v59, %v1445_v57  ;;  %v1399_v55 = vld [vmem:[#allocation10 + $0x8a0] sm:$0xff]  ;;  %v1401_v57 = vld [vmem:[#allocation10 + $0x8b0] sm:$0xff] }
 0x11e   : > { %1286 = vmatprep.mubr.f32.mxu1 %v11959_v8  ;;  %1198 = vmatmul.mubr.f32.gmra.mrb[28].mxu0 %v10855_v13  ;;  %v9400_v3 = vpack.c.bf16 %v1344_v61, %v1336_v60  ;;  %v1407_v56 = vld [vmem:[#allocation10 + $0x9a0] sm:$0xff]  ;;  %v1409_v59 = vld [vmem:[#allocation10 + $0x9b0] sm:$0xff]  ;;  %v1416_v60 = vld [vmem:[#allocation10 + $0xaa8] sm:$0xff] }
 0x11f   : > { %9347 = vmatpush1.bf16.msra.mxu0 %v9346_v49  ;;  %1287 = vmatmul.mubr.f32.gmra.mrb[28].mxu1 %v10855_v13  ;;  %v9354_v13 = vpack.c.bf16 %v1403_v20, %v1395_v19  ;;  %v1335_v49 = vld [vmem:[#allocation10 + $0xa0] sm:$0xff]  ;;  %v9436_v19 = vpack.c.bf16 %v1362_v12, %v1354_v11  ;;  %v1361_v20 = vld [vmem:[#allocation10 + $0x3b0] sm:$0xff]  ;;  %v1424_v61 = vld [vmem:[#allocation10 + $0xba8] sm:$0xff] }
 0x120   : > { %9379 = vmatpush1.bf16.msra.mxu1 %v9378_v4  ;;  %9349 = vmatprep.subr.bf16.mxu0 %v9348_v5  ;;  %v1343_v4 = vld [vmem:[#allocation10 + $0x1a0] sm:$0xff]  ;;  %v1337_v5 = vld [vmem:[#allocation10 + $0xb0] sm:$0xff]  ;;  %v1426_v0 = vld [vmem:[#allocation10 + $0xbb8] sm:$0xff] }
 0x121   : > { %9381 = vmatprep.subr.bf16.mxu1 %v9380_v10  ;;  %1203 = vmatprep.mubr.f32.mxu0 %v11959_v8  ;;  %v1360_v10 = vld [vmem:[#allocation10 + $0x3a8] sm:$0xff]  ;;  %v9402_v14 = vpack.c.bf16 %v1343_v4, %v1335_v49  ;;  %v9434_v15 = vpack.c.bf16 %v1345_v7, %v1337_v5  ;;  %v9420_v49 = vpack.c.bf16 %v1424_v61, %v1416_v60  ;;  %v1415_v4 = vld [vmem:[#allocation10 + $0xaa0] sm:$0xff]  ;;  %v1434_v12 = vld [vmem:[#allocation10 + $0xcb8] sm:$0xff] }
 0x122   : > { %1292 = vmatprep.mubr.f32.mxu1 %v11959_v8  ;;  %1204 = vmatmul.mubr.f32.gmra.mrb[30].mxu0 %v10862_v26  ;;  %v9404_v16 = vpack.c.bf16 %v1360_v10, %v1352_v9  ;;  %v1423_v5 = vld [vmem:[#allocation10 + $0xba0] sm:$0xff]  ;;  %v9452_v7 = vpack.c.bf16 %v1426_v0, %v1418_v62  ;;  %v1425_v9 = vld [vmem:[#allocation10 + $0xbb0] sm:$0xff]  ;;  %v1432_v10 = vld [vmem:[#allocation10 + $0xca8] sm:$0xff] }
 0x123   : > { %9351 = vmatpush1.bf16.msra.mxu0 %v9350_v63  ;;  %1293 = vmatmul.mubr.f32.gmra.mrb[30].mxu1 %v10862_v26  ;;  %v9358_v26 = vpack.c.bf16 %v1419_v32, %v1411_v31  ;;  %v1351_v63 = vld [vmem:[#allocation10 + $0x2a0] sm:$0xff]  ;;  %v1369_v31 = vld [vmem:[#allocation10 + $0x4b0] sm:$0xff]  ;;  %v9440_v32 = vpack.c.bf16 %v1378_v25, %v1370_v24  ;;  %v1440_v11 = vld [vmem:[#allocation10 + $0xda8] sm:$0xff] }
 0x124   : > { %9383 = vmatpush1.bf16.msra.mxu1 %v9382_v17  ;;  %9353 = vmatprep.subr.bf16.mxu0 %v9352_v18  ;;  %v1359_v17 = vld [vmem:[#allocation10 + $0x3a0] sm:$0xff]  ;;  %v1353_v18 = vld [vmem:[#allocation10 + $0x2b0] sm:$0xff]  ;;  %v1456_v24 = vld [vmem:[#allocation10 + $0xfa8] sm:$0xff] }
 0x125   : > { %9385 = vmatprep.subr.bf16.mxu1 %v9384_v22  ;;  %1523 = vmatprep.mubr.f32.mxu0 %v11959_v8  ;;  %v1376_v22 = vld [vmem:[#allocation10 + $0x5a8] sm:$0xff]  ;;  %v9406_v27 = vpack.c.bf16 %v1359_v17, %v1351_v63  ;;  %v9438_v28 = vpack.c.bf16 %v1361_v20, %v1353_v18  ;;  %v9424_v63 = vpack.c.bf16 %v1440_v11, %v1432_v10  ;;  %v1431_v17 = vld [vmem:[#allocation10 + $0xca0] sm:$0xff]  ;;  %v1450_v25 = vld [vmem:[#allocation10 + $0xeb8] sm:$0xff] }
 0x126   : > { %1612 = vmatprep.mubr.f32.mxu1 %v11959_v8  ;;  %v1439_v18 = vld [vmem:[#allocation10 + $0xda0] sm:$0xff]  ;;  %v1856_v36 = vld [vmem:[#allocation10 + $0x1c8] sm:$0xff]  ;;  %v1850_v37 = vld [vmem:[#allocation10 + $0xd8] sm:$0xff] }
 0x127   : > { %9355 = vmatpush1.bf16.msra.mxu0 %v9354_v13  ;;  %v9408_v13 = vpack.c.bf16 %v1376_v22, %v1368_v21  ;;  %v1441_v21 = vld [vmem:[#allocation10 + $0xdb0] sm:$0xff]  ;;  %v1448_v22 = vld [vmem:[#allocation10 + $0xea8] sm:$0xff]  ;;  %v1882_v0 = vld [vmem:[#allocation10 + $0x4d8] sm:$0xff] }
 0x128   : > { %9387 = vmatpush1.bf16.msra.mxu1 %v9386_v29  ;;  %9357 = vmatprep.subr.bf16.mxu0 %v9356_v30  ;;  %v1367_v29 = vld [vmem:[#allocation10 + $0x4a0] sm:$0xff]  ;;  %v1873_v60 = vld [vmem:[#allocation10 + $0x3d0] sm:$0xff]  ;;  %v1880_v61 = vld [vmem:[#allocation10 + $0x4c8] sm:$0xff] }
 0x129   : > { %9389 = vmatprep.subr.bf16.mxu1 %v9388_v34  ;;  %v1375_v30 = vld [vmem:[#allocation10 + $0x5a0] sm:$0xff]  ;;  %v1384_v34 = vld [vmem:[#allocation10 + $0x6a8] sm:$0xff]  ;;  %v1889_v10 = vld [vmem:[#allocation10 + $0x5d0] sm:$0xff] }
 0x12a   : > { %v9410_v39 = vpack.c.bf16 %v1375_v30, %v1367_v29  ;;  %v9428_v29 = vpack.c.bf16 %v1456_v24, %v1448_v22  ;;  %v1447_v30 = vld [vmem:[#allocation10 + $0xea0] sm:$0xff]  ;;  %v1888_v62 = vld [vmem:[#allocation10 + $0x5c8] sm:$0xff]  ;;  %v1905_v22 = vld [vmem:[#allocation10 + $0x7d0] sm:$0xff] }
 0x12b   : > { %9359 = vmatpush1.bf16.msra.mxu0 %v9358_v26  ;;  %v9442_v26 = vpack.c.bf16 %v1377_v33, %v1369_v31  ;;  %v1455_v31 = vld [vmem:[#allocation10 + $0xfa0] sm:$0xff]  ;;  %v1896_v11 = vld [vmem:[#allocation10 + $0x6c8] sm:$0xff] }
 0x12c   : > { %9391 = vmatpush1.bf16.msra.mxu1 %v9390_v40  ;;  %9361 = vmatprep.subr.bf16.mxu0 %v9360_v41  ;;  %v9412_v40 = vpack.c.bf16 %v1392_v35, %v1384_v34  ;;  %v1383_v41 = vld [vmem:[#allocation10 + $0x6a0] sm:$0xff]  ;;  %v1457_v34 = vld [vmem:[#allocation10 + $0xfb0] sm:$0xff]  ;;  %v1848_v35 = vld [vmem:[#allocation10 + $0xc8] sm:$0xff] }
 0x12d   : > { %9393 = vmatprep.subr.bf16.mxu1 %v9392_v45  ;;  %v1393_v45 = vld [vmem:[#allocation10 + $0x7b0] sm:$0xff]  ;;  %v1912_v24 = vld [vmem:[#allocation10 + $0x8c8] sm:$0xff] }
 0x12f   : > { %9363 = vmatpush1.bf16.msra.mxu0 %v9362_v52  ;;  %v9414_v52 = vpack.c.bf16 %v1391_v42, %v1383_v41  ;;  %v9464_v41 = vpack.c.bf16 %v1856_v36, %v1848_v35  ;;  %v1847_v42 = vld [vmem:[#allocation10 + $0xc0] sm:$0xff]  ;;  %v1921_v35 = vld [vmem:[#allocation10 + $0x9d0] sm:$0xff]  ;;  %v1928_v36 = vld [vmem:[#allocation10 + $0xac8] sm:$0xff] }
 0x130   : > { %9395 = vmatpush1.bf16.msra.mxu1 %v9394_v53  ;;  %9365 = vmatprep.subr.bf16.mxu0 %v9364_v54  ;;  %v9446_v53 = vpack.c.bf16 %v1393_v45, %v1385_v43  ;;  %v9416_v54 = vpack.c.bf16 %v1408_v47, %v1400_v46  ;;  %v1855_v43 = vld [vmem:[#allocation10 + $0x1c0] sm:$0xff]  ;;  %v1857_v46 = vld [vmem:[#allocation10 + $0x1d0] sm:$0xff]  ;;  %v1864_v47 = vld [vmem:[#allocation10 + $0x2c8] sm:$0xff] }
 0x131   : > { %9397 = vmatprep.subr.bf16.mxu1 %v9396_v58  ;;  %v9448_v58 = vpack.c.bf16 %v1410_v50, %v1402_v48  ;;  %v1872_v48 = vld [vmem:[#allocation10 + $0x3c8] sm:$0xff]  ;;  %v1866_v50 = vld [vmem:[#allocation10 + $0x2d8] sm:$0xff] }
 0x133   : > { %9367 = vmatpush1.bf16.msra.mxu0 %v9366_v1  ;;  %v10940_v1 = vld [vmem:[%s10821_s12 + $0x18] sm:$0xff] }
 0x134   : > { %9399 = vmatpush1.bf16.msra.mxu1 %v9398_v2  ;;  %9401 = vmatprep.subr.bf16.mxu0 %v9400_v3  ;;  %v9418_v2 = vpack.c.bf16 %v1407_v56, %v1399_v55  ;;  %v9450_v3 = vpack.c.bf16 %v1409_v59, %v1401_v57  ;;  %v9468_v55 = vpack.c.bf16 %v1872_v48, %v1864_v47  ;;  %v1863_v56 = vld [vmem:[#allocation10 + $0x2c0] sm:$0xff]  ;;  %v1937_v47 = vld [vmem:[#allocation10 + $0xbd0] sm:$0xff]  ;;  %v1944_v48 = vld [vmem:[#allocation10 + $0xcc8] sm:$0xff] }
 0x135   : > { %9433 = vmatprep.subr.bf16.mxu1 %v9432_v6  ;;  %v1417_v6 = vld [vmem:[#allocation10 + $0xab0] sm:$0xff]  ;;  %v1871_v57 = vld [vmem:[#allocation10 + $0x3c0] sm:$0xff] }
 0x136   : > { %1524 = vmatmul.mubr.f32.vlgmr.msra.gmra.mrb[32].mxu0 %v10919_v23 }
 0x137   : > { %1613 = vmatmul.mubr.f32.vlgmr.msra.gmra.mrb[32].mxu1 %v10919_v23  ;;  %9403 = vmatpush1.bf16.msra.mxu0 %v9402_v14  ;;  %v1442_v14 = vld [vmem:[#allocation10 + $0xdb8] sm:$0xff] }
 0x138   : > { %9435 = vmatpush1.bf16.msra.mxu1 %v9434_v15  ;;  %9405 = vmatprep.subr.bf16.mxu0 %v9404_v16  ;;  %v9422_v15 = vpack.c.bf16 %v1423_v5, %v1415_v4  ;;  %v9454_v16 = vpack.c.bf16 %v1425_v9, %v1417_v6  ;;  %v9456_v20 = vpack.c.bf16 %v1442_v14, %v1434_v12  ;;  %v1879_v5 = vld [vmem:[#allocation10 + $0x4c0] sm:$0xff]  ;;  %v1904_v12 = vld [vmem:[#allocation10 + $0x7c8] sm:$0xff]  ;;  %v1898_v14 = vld [vmem:[#allocation10 + $0x6d8] sm:$0xff] }
 0x139   : > { %9437 = vmatprep.subr.bf16.mxu1 %v9436_v19  ;;  %1529 = vmatprep.mubr.f32.mxu0 %v11959_v8  ;;  %v1433_v19 = vld [vmem:[#allocation10 + $0xcb0] sm:$0xff]  ;;  %v9472_v4 = vpack.c.bf16 %v1888_v62, %v1880_v61  ;;  %v1887_v6 = vld [vmem:[#allocation10 + $0x5c0] sm:$0xff]  ;;  %v1960_v62 = vld [vmem:[#allocation10 + $0xec8] sm:$0xff] }
 0x13a   : > { %1618 = vmatprep.mubr.f32.mxu1 %v11959_v8  ;;  %1530 = vmatmul.mubr.f32.gmra.mrb[34].mxu0 %v10926_v38  ;;  %v1953_v61 = vld [vmem:[#allocation10 + $0xdd0] sm:$0xff] }
 0x13b   : > { %9407 = vmatpush1.bf16.msra.mxu0 %v9406_v27  ;;  %1619 = vmatmul.mubr.f32.gmra.mrb[34].mxu1 %v10926_v38  ;;  %v1458_v27 = vld [vmem:[#allocation10 + $0xfb8] sm:$0xff] }
 0x13c   : > { %9439 = vmatpush1.bf16.msra.mxu1 %v9438_v28  ;;  %9409 = vmatprep.subr.bf16.mxu0 %v9408_v13  ;;  %v9426_v28 = vpack.c.bf16 %v1439_v18, %v1431_v17  ;;  %v9458_v13 = vpack.c.bf16 %v1441_v21, %v1433_v19  ;;  %v9460_v33 = vpack.c.bf16 %v1458_v27, %v1450_v25  ;;  %v1895_v18 = vld [vmem:[#allocation10 + $0x6c0] sm:$0xff]  ;;  %v1920_v25 = vld [vmem:[#allocation10 + $0x9c8] sm:$0xff]  ;;  %v1914_v27 = vld [vmem:[#allocation10 + $0x8d8] sm:$0xff] }
 0x13d   : > { %9441 = vmatprep.subr.bf16.mxu1 %v9440_v32  ;;  %1535 = vmatprep.mubr.f32.mxu0 %v11959_v8  ;;  %v1449_v32 = vld [vmem:[#allocation10 + $0xeb0] sm:$0xff]  ;;  %v9476_v17 = vpack.c.bf16 %v1904_v12, %v1896_v11  ;;  %v1903_v19 = vld [vmem:[#allocation10 + $0x7c0] sm:$0xff]  ;;  %v1852_v12 = vld [vmem:[#allocation10 + $0xe8] sm:$0xff] }
 0x13e   : > { %1624 = vmatprep.mubr.f32.mxu1 %v11959_v8  ;;  %1536 = vmatmul.mubr.f32.gmra.mrb[36].mxu0 %v10933_v51  ;;  %v1969_v11 = vld [vmem:[#allocation10 + $0xfd0] sm:$0xff] }
 0x13f   : > { %9411 = vmatpush1.bf16.msra.mxu0 %v9410_v39  ;;  %1625 = vmatmul.mubr.f32.gmra.mrb[36].mxu1 %v10933_v51  ;;  %v1858_v39 = vld [vmem:[#allocation10 + $0x1d8] sm:$0xff] }
 0x140   : > { %9443 = vmatpush1.bf16.msra.mxu1 %v9442_v26  ;;  %9413 = vmatprep.subr.bf16.mxu0 %v9412_v40  ;;  %v9430_v26 = vpack.c.bf16 %v1455_v31, %v1447_v30  ;;  %v9462_v40 = vpack.c.bf16 %v1457_v34, %v1449_v32  ;;  %v9496_v45 = vpack.c.bf16 %v1858_v39, %v1850_v37  ;;  %v1911_v31 = vld [vmem:[#allocation10 + $0x8c0] sm:$0xff]  ;;  %v1936_v37 = vld [vmem:[#allocation10 + $0xbc8] sm:$0xff]  ;;  %v1930_v39 = vld [vmem:[#allocation10 + $0xad8] sm:$0xff] }
 0x141   : > { %9445 = vmatprep.subr.bf16.mxu1 %v9444_v44  ;;  %1541 = vmatprep.mubr.f32.mxu0 %v11959_v8  ;;  %v1849_v44 = vld [vmem:[#allocation10 + $0xd0] sm:$0xff]  ;;  %v9480_v30 = vpack.c.bf16 %v1920_v25, %v1912_v24  ;;  %v1919_v32 = vld [vmem:[#allocation10 + $0x9c0] sm:$0xff]  ;;  %v1868_v25 = vld [vmem:[#allocation10 + $0x2e8] sm:$0xff] }
 0x142   : > { %1630 = vmatprep.mubr.f32.mxu1 %v11959_v8  ;;  %1542 = vmatmul.mubr.f32.gmra.mrb[38].mxu0 %v10940_v1  ;;  %v1861_v24 = vld [vmem:[#allocation10 + $0x1f0] sm:$0xff] }
 0x143   : > { %9415 = vmatpush1.bf16.msra.mxu0 %v9414_v52  ;;  %1631 = vmatmul.mubr.f32.gmra.mrb[38].mxu1 %v10940_v1  ;;  %v1874_v52 = vld [vmem:[#allocation10 + $0x3d8] sm:$0xff] }
 0x144   : > { %9447 = vmatpush1.bf16.msra.mxu1 %v9446_v53  ;;  %9417 = vmatprep.subr.bf16.mxu0 %v9416_v54  ;;  %v9466_v53 = vpack.c.bf16 %v1855_v43, %v1847_v42  ;;  %v9498_v54 = vpack.c.bf16 %v1857_v46, %v1849_v44  ;;  %v9500_v59 = vpack.c.bf16 %v1874_v52, %v1866_v50  ;;  %v1927_v43 = vld [vmem:[#allocation10 + $0xac0] sm:$0xff]  ;;  %v1952_v50 = vld [vmem:[#allocation10 + $0xdc8] sm:$0xff]  ;;  %v1946_v52 = vld [vmem:[#allocation10 + $0xcd8] sm:$0xff] }
 0x145   : > { %9449 = vmatprep.subr.bf16.mxu1 %v9448_v58  ;;  %1701 = vmatprep.mubr.f32.mxu0 %v11959_v8  ;;  %v1865_v58 = vld [vmem:[#allocation10 + $0x2d0] sm:$0xff]  ;;  %v9484_v42 = vpack.c.bf16 %v1936_v37, %v1928_v36  ;;  %v1935_v44 = vld [vmem:[#allocation10 + $0xbc0] sm:$0xff]  ;;  %v1884_v37 = vld [vmem:[#allocation10 + $0x4e8] sm:$0xff] }
 0x146   : > { %1790 = vmatprep.mubr.f32.mxu1 %v11959_v8  ;;  %v1877_v36 = vld [vmem:[#allocation10 + $0x3f0] sm:$0xff] }
 0x147   : > { %9419 = vmatpush1.bf16.msra.mxu0 %v9418_v2  ;;  %v1890_v2 = vld [vmem:[#allocation10 + $0x5d8] sm:$0xff] }
 0x148   : > { %9451 = vmatpush1.bf16.msra.mxu1 %v9450_v3  ;;  %9421 = vmatprep.subr.bf16.mxu0 %v9420_v49  ;;  %v9470_v3 = vpack.c.bf16 %v1871_v57, %v1863_v56  ;;  %v9502_v49 = vpack.c.bf16 %v1873_v60, %v1865_v58  ;;  %v9504_v9 = vpack.c.bf16 %v1890_v2, %v1882_v0  ;;  %v1943_v57 = vld [vmem:[#allocation10 + $0xcc0] sm:$0xff]  ;;  %v1968_v0 = vld [vmem:[#allocation10 + $0xfc8] sm:$0xff]  ;;  %v1962_v2 = vld [vmem:[#allocation10 + $0xed8] sm:$0xff] }
 0x149   : > { %9453 = vmatprep.subr.bf16.mxu1 %v9452_v7  ;;  %v1881_v7 = vld [vmem:[#allocation10 + $0x4d0] sm:$0xff]  ;;  %v9488_v56 = vpack.c.bf16 %v1952_v50, %v1944_v48  ;;  %v1951_v58 = vld [vmem:[#allocation10 + $0xdc0] sm:$0xff]  ;;  %v1900_v50 = vld [vmem:[#allocation10 + $0x6e8] sm:$0xff] }
 0x14a   : > { %v1893_v48 = vld [vmem:[#allocation10 + $0x5f0] sm:$0xff] }
 0x14b   : > { %9423 = vmatpush1.bf16.msra.mxu0 %v9422_v15  ;;  %v1906_v15 = vld [vmem:[#allocation10 + $0x7d8] sm:$0xff] }
 0x14c   : > { %9455 = vmatpush1.bf16.msra.mxu1 %v9454_v16  ;;  %9425 = vmatprep.subr.bf16.mxu0 %v9424_v63  ;;  %v9474_v16 = vpack.c.bf16 %v1887_v6, %v1879_v5  ;;  %v9506_v63 = vpack.c.bf16 %v1889_v10, %v1881_v7  ;;  %v9508_v21 = vpack.c.bf16 %v1906_v15, %v1898_v14  ;;  %v1959_v6 = vld [vmem:[#allocation10 + $0xec0] sm:$0xff]  ;;  %v1860_v14 = vld [vmem:[#allocation10 + $0x1e8] sm:$0xff]  ;;  %v1854_v15 = vld [vmem:[#allocation10 + $0xf8] sm:$0xff] }
 0x14d   : > { %9457 = vmatprep.subr.bf16.mxu1 %v9456_v20  ;;  %v1897_v20 = vld [vmem:[#allocation10 + $0x6d0] sm:$0xff]  ;;  %v9492_v5 = vpack.c.bf16 %v1968_v0, %v1960_v62  ;;  %v1967_v7 = vld [vmem:[#allocation10 + $0xfc0] sm:$0xff]  ;;  %v1916_v0 = vld [vmem:[#allocation10 + $0x8e8] sm:$0xff] }
 0x14e   : > { %v1909_v62 = vld [vmem:[#allocation10 + $0x7f0] sm:$0xff] }
 0x14f   : > { %9427 = vmatpush1.bf16.msra.mxu0 %v9426_v28  ;;  %v1922_v28 = vld [vmem:[#allocation10 + $0x9d8] sm:$0xff] }
 0x150   : > { %9459 = vmatpush1.bf16.msra.mxu1 %v9458_v13  ;;  %9429 = vmatprep.subr.bf16.mxu0 %v9428_v29  ;;  %v9478_v13 = vpack.c.bf16 %v1903_v19, %v1895_v18  ;;  %v9510_v29 = vpack.c.bf16 %v1905_v22, %v1897_v20  ;;  %v9512_v34 = vpack.c.bf16 %v1922_v28, %v1914_v27  ;;  %v1851_v19 = vld [vmem:[#allocation10 + $0xe0] sm:$0xff]  ;;  %v1876_v27 = vld [vmem:[#allocation10 + $0x3e8] sm:$0xff]  ;;  %v1870_v28 = vld [vmem:[#allocation10 + $0x2f8] sm:$0xff] }
 0x151   : > { %9461 = vmatprep.subr.bf16.mxu1 %v9460_v33  ;;  %v1913_v33 = vld [vmem:[#allocation10 + $0x8d0] sm:$0xff]  ;;  %v9528_v18 = vpack.c.bf16 %v1860_v14, %v1852_v12  ;;  %v1859_v20 = vld [vmem:[#allocation10 + $0x1e0] sm:$0xff]  ;;  %v1932_v14 = vld [vmem:[#allocation10 + $0xae8] sm:$0xff] }
 0x152   : > { %v1925_v12 = vld [vmem:[#allocation10 + $0x9f0] sm:$0xff] }
 0x153   : > { %9431 = vmatpush1.bf16.msra.mxu0 %v9430_v26  ;;  %v1938_v26 = vld [vmem:[#allocation10 + $0xbd8] sm:$0xff] }
 0x154   : > { %9463 = vmatpush1.bf16.msra.mxu1 %v9462_v40  ;;  %9465 = vmatprep.subr.bf16.mxu0 %v9464_v41  ;;  %v9482_v40 = vpack.c.bf16 %v1919_v32, %v1911_v31  ;;  %v9514_v41 = vpack.c.bf16 %v1921_v35, %v1913_v33  ;;  %v9516_v46 = vpack.c.bf16 %v1938_v26, %v1930_v39  ;;  %v1867_v32 = vld [vmem:[#allocation10 + $0x2e0] sm:$0xff]  ;;  %v1892_v39 = vld [vmem:[#allocation10 + $0x5e8] sm:$0xff]  ;;  %v1886_v26 = vld [vmem:[#allocation10 + $0x4f8] sm:$0xff] }
 0x155   : > { %9497 = vmatprep.subr.bf16.mxu1 %v9496_v45  ;;  %v1929_v45 = vld [vmem:[#allocation10 + $0xad0] sm:$0xff]  ;;  %v9532_v31 = vpack.c.bf16 %v1876_v27, %v1868_v25  ;;  %v1875_v33 = vld [vmem:[#allocation10 + $0x3e0] sm:$0xff]  ;;  %v1948_v27 = vld [vmem:[#allocation10 + $0xce8] sm:$0xff] }
 0x156   : > { %1702 = vmatmul.mubr.f32.vlgmr.msra.gmra.mrb[40].mxu0 %v10919_v23  ;;  %v1941_v25 = vld [vmem:[#allocation10 + $0xbf0] sm:$0xff] }
 0x157   : > { %1791 = vmatmul.mubr.f32.vlgmr.msra.gmra.mrb[40].mxu1 %v10919_v23  ;;  %9467 = vmatpush1.bf16.msra.mxu0 %v9466_v53  ;;  %v1954_v53 = vld [vmem:[#allocation10 + $0xdd8] sm:$0xff] }
 0x158   : > { %9499 = vmatpush1.bf16.msra.mxu1 %v9498_v54  ;;  %9469 = vmatprep.subr.bf16.mxu0 %v9468_v55  ;;  %v9486_v54 = vpack.c.bf16 %v1935_v44, %v1927_v43  ;;  %v9518_v55 = vpack.c.bf16 %v1937_v47, %v1929_v45  ;;  %v9520_v60 = vpack.c.bf16 %v1954_v53, %v1946_v52  ;;  %v1883_v44 = vld [vmem:[#allocation10 + $0x4e0] sm:$0xff]  ;;  %v1908_v52 = vld [vmem:[#allocation10 + $0x7e8] sm:$0xff]  ;;  %v1902_v53 = vld [vmem:[#allocation10 + $0x6f8] sm:$0xff] }
 0x159   : > { %9501 = vmatprep.subr.bf16.mxu1 %v9500_v59  ;;  %1707 = vmatprep.mubr.f32.mxu0 %v11959_v8  ;;  %v1945_v59 = vld [vmem:[#allocation10 + $0xcd0] sm:$0xff]  ;;  %v9536_v43 = vpack.c.bf16 %v1892_v39, %v1884_v37  ;;  %v1891_v45 = vld [vmem:[#allocation10 + $0x5e0] sm:$0xff]  ;;  %v1964_v39 = vld [vmem:[#allocation10 + $0xee8] sm:$0xff] }
 0x15a   : > { %1796 = vmatprep.mubr.f32.mxu1 %v11959_v8  ;;  %1708 = vmatmul.mubr.f32.gmra.mrb[42].mxu0 %v10926_v38  ;;  %v1957_v37 = vld [vmem:[#allocation10 + $0xdf0] sm:$0xff] }
 0x15b   : > { %9471 = vmatpush1.bf16.msra.mxu0 %v9470_v3  ;;  %1797 = vmatmul.mubr.f32.gmra.mrb[42].mxu1 %v10926_v38  ;;  %v1970_v3 = vld [vmem:[#allocation10 + $0xfd8] sm:$0xff] }
 0x15c   : > { %9503 = vmatpush1.bf16.msra.mxu1 %v9502_v49  ;;  %9473 = vmatprep.subr.bf16.mxu0 %v9472_v4  ;;  %v9490_v49 = vpack.c.bf16 %v1951_v58, %v1943_v57  ;;  %v9522_v4 = vpack.c.bf16 %v1953_v61, %v1945_v59  ;;  %v9524_v10 = vpack.c.bf16 %v1970_v3, %v1962_v2  ;;  %v1899_v58 = vld [vmem:[#allocation10 + $0x6e0] sm:$0xff]  ;;  %v1924_v2 = vld [vmem:[#allocation10 + $0x9e8] sm:$0xff]  ;;  %v1918_v3 = vld [vmem:[#allocation10 + $0x8f8] sm:$0xff] }
 0x15d   : > { %9505 = vmatprep.subr.bf16.mxu1 %v9504_v9  ;;  %1713 = vmatprep.mubr.f32.mxu0 %v11959_v8  ;;  %v1961_v9 = vld [vmem:[#allocation10 + $0xed0] sm:$0xff]  ;;  %v9540_v57 = vpack.c.bf16 %v1908_v52, %v1900_v50  ;;  %v1907_v59 = vld [vmem:[#allocation10 + $0x7e0] sm:$0xff]  ;;  %v2363_v52 = vld [vmem:[%s11954_s4] sm:$0xff] }
 0x15e   : > { %1802 = vmatprep.mubr.f32.mxu1 %v11959_v8  ;;  %1714 = vmatmul.mubr.f32.gmra.mrb[44].mxu0 %v10933_v51  ;;  %v1973_v50 = vld [vmem:[#allocation10 + $0xff0] sm:$0xff] }
 0x15f   : > { %9475 = vmatpush1.bf16.msra.mxu0 %v9474_v16  ;;  %1803 = vmatmul.mubr.f32.gmra.mrb[44].mxu1 %v10933_v51  ;;  %v1862_v16 = vld [vmem:[#allocation10 + $0x1f8] sm:$0xff] }
 0x160   : > { %9507 = vmatpush1.bf16.msra.mxu1 %v9506_v63  ;;  %9477 = vmatprep.subr.bf16.mxu0 %v9476_v17  ;;  %v9494_v63 = vpack.c.bf16 %v1967_v7, %v1959_v6  ;;  %v9526_v17 = vpack.c.bf16 %v1969_v11, %v1961_v9  ;;  %v9560_v22 = vpack.c.bf16 %v1862_v16, %v1854_v15  ;;  %v1915_v7 = vld [vmem:[#allocation10 + $0x8e0] sm:$0xff]  ;;  %v1940_v15 = vld [vmem:[#allocation10 + $0xbe8] sm:$0xff]  ;;  %v1934_v16 = vld [vmem:[#allocation10 + $0xaf8] sm:$0xff] }
 0x161   : > { %9509 = vmatprep.subr.bf16.mxu1 %v9508_v21  ;;  %1719 = vmatprep.mubr.f32.mxu0 %v11959_v8  ;;  %v1853_v21 = vld [vmem:[#allocation10 + $0xf0] sm:$0xff]  ;;  %v9544_v6 = vpack.c.bf16 %v1924_v2, %v1916_v0  ;;  %v1923_v9 = vld [vmem:[#allocation10 + $0x9e0] sm:$0xff]  ;;  %v2489_v2 = vld [vmem:[#allocation8 + $0x218] sm:$0xff] }
 0x162   : > { %1808 = vmatprep.mubr.f32.mxu1 %v11959_v8  ;;  %1720 = vmatmul.mubr.f32.gmra.mrb[46].mxu0 %v10940_v1  ;;  %v2366_v0 = vld [vmem:[%s11954_s4 + $0x18] sm:$0xff] }
 0x163   : > { %9479 = vmatpush1.bf16.msra.mxu0 %v9478_v13  ;;  %1809 = vmatmul.mubr.f32.gmra.mrb[46].mxu1 %v10940_v1  ;;  %v1878_v13 = vld [vmem:[#allocation10 + $0x3f8] sm:$0xff] }
 0x164   : > { %9511 = vmatpush1.bf16.msra.mxu1 %v9510_v29  ;;  %9481 = vmatprep.subr.bf16.mxu0 %v9480_v30  ;;  %v9530_v29 = vpack.c.bf16 %v1859_v20, %v1851_v19  ;;  %v9562_v30 = vpack.c.bf16 %v1861_v24, %v1853_v21  ;;  %v9564_v35 = vpack.c.bf16 %v1878_v13, %v1870_v28  ;;  %v1931_v20 = vld [vmem:[#allocation10 + $0xae0] sm:$0xff]  ;;  %v1956_v28 = vld [vmem:[#allocation10 + $0xde8] sm:$0xff]  ;;  %v1950_v13 = vld [vmem:[#allocation10 + $0xcf8] sm:$0xff] }
 0x165   : > { %9513 = vmatprep.subr.bf16.mxu1 %v9512_v34  ;;  %2039 = vmatprep.mubr.f32.mxu0 %v11959_v8  ;;  %v1869_v34 = vld [vmem:[#allocation10 + $0x2f0] sm:$0xff]  ;;  %v9548_v19 = vpack.c.bf16 %v1940_v15, %v1932_v14  ;;  %v1939_v21 = vld [vmem:[#allocation10 + $0xbe0] sm:$0xff] }
 0x166   : > { %2128 = vmatprep.mubr.f32.mxu1 %v11959_v8 }
 0x167   : > { %9483 = vmatpush1.bf16.msra.mxu0 %v9482_v40  ;;  %v1894_v40 = vld [vmem:[#allocation10 + $0x5f8] sm:$0xff] }
 0x168   : > { %9515 = vmatpush1.bf16.msra.mxu1 %v9514_v41  ;;  %9485 = vmatprep.subr.bf16.mxu0 %v9484_v42  ;;  %v9534_v41 = vpack.c.bf16 %v1875_v33, %v1867_v32  ;;  %v9566_v42 = vpack.c.bf16 %v1877_v36, %v1869_v34  ;;  %v9568_v47 = vpack.c.bf16 %v1894_v40, %v1886_v26  ;;  %v1947_v33 = vld [vmem:[#allocation10 + $0xce0] sm:$0xff]  ;;  %v1972_v26 = vld [vmem:[#allocation10 + $0xfe8] sm:$0xff]  ;;  %v1966_v40 = vld [vmem:[#allocation10 + $0xef8] sm:$0xff] }
 0x169   : > { %9517 = vmatprep.subr.bf16.mxu1 %v9516_v46  ;;  %v1885_v46 = vld [vmem:[#allocation10 + $0x4f0] sm:$0xff]  ;;  %v9552_v32 = vpack.c.bf16 %v1956_v28, %v1948_v27  ;;  %v1955_v34 = vld [vmem:[#allocation10 + $0xde0] sm:$0xff]  ;;  %v2493_v27 = vld [vmem:[#allocation8 + $0x238] sm:$0xff] }
 0x16a   : > { %v2501_v28 = vld [vmem:[#allocation8 + $0x338] sm:$0xff] }
 0x16b   : > { %9487 = vmatpush1.bf16.msra.mxu0 %v9486_v54  ;;  %v1910_v54 = vld [vmem:[#allocation10 + $0x7f8] sm:$0xff] }
 0x16c   : > { %9519 = vmatpush1.bf16.msra.mxu1 %v9518_v55  ;;  %9489 = vmatprep.subr.bf16.mxu0 %v9488_v56  ;;  %v9538_v55 = vpack.c.bf16 %v1891_v45, %v1883_v44  ;;  %v9570_v56 = vpack.c.bf16 %v1893_v48, %v1885_v46  ;;  %v9572_v61 = vpack.c.bf16 %v1910_v54, %v1902_v53  ;;  %v1963_v45 = vld [vmem:[#allocation10 + $0xee0] sm:$0xff]  ;;  %v2473_v54 = vld [vmem:[#allocation8 + $0x18] sm:$0xff] }
 0x16d   : > { %9521 = vmatprep.subr.bf16.mxu1 %v9520_v60  ;;  %v1901_v60 = vld [vmem:[#allocation10 + $0x6f0] sm:$0xff]  ;;  %v9556_v44 = vpack.c.bf16 %v1972_v26, %v1964_v39  ;;  %v1971_v46 = vld [vmem:[#allocation10 + $0xfe0] sm:$0xff] }
 0x16e   : > { %v2364_v53 = vld [vmem:[%s11954_s4 + $0x8] sm:$0xff] }
 0x16f   : > { %9491 = vmatpush1.bf16.msra.mxu0 %v9490_v49  ;;  %v1926_v49 = vld [vmem:[#allocation10 + $0x9f8] sm:$0xff] }
 0x170   : > { %9523 = vmatpush1.bf16.msra.mxu1 %v9522_v4  ;;  %9493 = vmatprep.subr.bf16.mxu0 %v9492_v5  ;;  %v9542_v4 = vpack.c.bf16 %v1907_v59, %v1899_v58  ;;  %v9574_v5 = vpack.c.bf16 %v1909_v62, %v1901_v60  ;;  %v9576_v11 = vpack.c.bf16 %v1926_v49, %v1918_v3  ;;  %v2472_v60 = vld [vmem:[#allocation8 + $0x10] sm:$0xff]  ;;  %v2365_v62 = vld [vmem:[%s11954_s4 + $0x10] sm:$0xff]  ;;  %v2497_v3 = vld [vmem:[#allocation8 + $0x318] sm:$0xff] }
 0x171   : > { %9525 = vmatprep.subr.bf16.mxu1 %v9524_v10  ;;  %v1917_v10 = vld [vmem:[#allocation10 + $0x8f0] sm:$0xff]  ;;  %v9592_v58 = vpack.c.bf16 %v2364_v53, %v2363_v52  ;;  %v2471_v53 = vld [vmem:[#allocation8 + $0x8] sm:$0xff] }
 0x172   : > { %v2872_v52 = vld [vmem:[#allocation8 + $0x350] sm:$0xff] }
 0x173   : > { %9495 = vmatpush1.bf16.msra.mxu0 %v9494_v63  ;;  %v1942_v63 = vld [vmem:[#allocation10 + $0xbf8] sm:$0xff] }
 0x174   : > { %9527 = vmatpush1.bf16.msra.mxu1 %v9526_v17  ;;  %9529 = vmatprep.subr.bf16.mxu0 %v9528_v18  ;;  %v9546_v17 = vpack.c.bf16 %v1923_v9, %v1915_v7  ;;  %v9578_v18 = vpack.c.bf16 %v1925_v12, %v1917_v10  ;;  %v9580_v24 = vpack.c.bf16 %v1942_v63, %v1934_v16  ;;  %v2488_v9 = vld [vmem:[#allocation8 + $0x210] sm:$0xff]  ;;  %v2485_v12 = vld [vmem:[#allocation8 + $0x138] sm:$0xff]  ;;  %v2369_v16 = vld [vmem:[%s11954_s4 + $0x30] sm:$0xff] }
 0x175   : > { %9561 = vmatprep.subr.bf16.mxu1 %v9560_v22  ;;  %v1933_v22 = vld [vmem:[#allocation10 + $0xaf0] sm:$0xff]  ;;  %v11001_v7 = vpack.c.bf16 %v2497_v3, %v2489_v2  ;;  %v2869_v3 = vld [vmem:[#allocation8 + $0x278] sm:$0xff] }
 0x176   : > { %2040 = vmatmul.mubr.f32.vlgmr.msra.gmra.mrb[48].mxu0 %v10919_v23  ;;  %v2496_v10 = vld [vmem:[#allocation8 + $0x310] sm:$0xff] }
 0x177   : > { %2129 = vmatmul.mubr.f32.vlgmr.msra.gmra.mrb[48].mxu1 %v10919_v23  ;;  %9531 = vmatpush1.bf16.msra.mxu0 %v9530_v29  ;;  %v1958_v29 = vld [vmem:[#allocation10 + $0xdf8] sm:$0xff]  ;;  %v11008_v15 = vpack.c.bf16 %v2496_v10, %v2488_v9  ;;  %v2370_v63 = vld [vmem:[%s11954_s4 + $0x38] sm:$0xff] }
 0x178   : > { %9563 = vmatpush1.bf16.msra.mxu1 %v9562_v30  ;;  %9533 = vmatprep.subr.bf16.mxu0 %v9532_v31  ;;  %v9550_v30 = vpack.c.bf16 %v1939_v21, %v1931_v20  ;;  %v9582_v31 = vpack.c.bf16 %v1941_v25, %v1933_v22  ;;  %v9584_v36 = vpack.c.bf16 %v1958_v29, %v1950_v13  ;;  %v2372_v20 = vld [vmem:[%s11954_s4 + $0x48] sm:$0xff]  ;;  %v2476_v22 = vld [vmem:[#allocation8 + $0x30] sm:$0xff]  ;;  %v2373_v25 = vld [vmem:[%s11954_s4 + $0x50] sm:$0xff] }
 0x179   : > { %9565 = vmatprep.subr.bf16.mxu1 %v9564_v35  ;;  %2134 = vmatprep.mubr.f32.mxu1 %v11959_v8  ;;  %v1949_v35 = vld [vmem:[#allocation10 + $0xcf0] sm:$0xff]  ;;  %v11043_v13 = vld [vmem:[#allocation2] sm:$0xff] }
 0x17a   : > { %2045 = vmatprep.mubr.f32.mxu0 %v11959_v8  ;;  %v2860_v2 = vld [vmem:[#allocation8 + $0x170] sm:$0xff] }
 0x17b   : > { %9535 = vmatpush1.bf16.msra.mxu0 %v9534_v41  ;;  %2135 = vmatmul.mubr.f32.gmra.mrb[50].mxu1 %v10926_v38  ;;  %v1974_v41 = vld [vmem:[#allocation10 + $0xff8] sm:$0xff] }
 0x17c   : > { %9567 = vmatpush1.bf16.msra.mxu1 %v9566_v42  ;;  %9537 = vmatprep.subr.bf16.mxu0 %v9536_v43  ;;  %v9554_v42 = vpack.c.bf16 %v1955_v34, %v1947_v33  ;;  %v9586_v43 = vpack.c.bf16 %v1957_v37, %v1949_v35  ;;  %v9588_v48 = vpack.c.bf16 %v1974_v41, %v1966_v40  ;;  %v2500_v33 = vld [vmem:[#allocation8 + $0x330] sm:$0xff]  ;;  %v2375_v34 = vld [vmem:[%s11954_s4 + $0x60] sm:$0xff]  ;;  %v2376_v35 = vld [vmem:[%s11954_s4 + $0x68] sm:$0xff] }
 0x17d   : > { %9569 = vmatprep.subr.bf16.mxu1 %v9568_v47  ;;  %2046 = vmatmul.mubr.f32.gmra.mrb[50].mxu0 %v10926_v38  ;;  %v1965_v47 = vld [vmem:[#allocation10 + $0xef0] sm:$0xff]  ;;  %v2857_v37 = vld [vmem:[#allocation8 + $0x158] sm:$0xff]  ;;  %v9616_v26 = vpack.c.bf16 %v2376_v35, %v2375_v34  ;;  %v2491_v35 = vld [vmem:[#allocation8 + $0x228] sm:$0xff] }
 0x17e   : > { %2140 = vmatprep.mubr.f32.mxu1 %v11959_v8  ;;  %2051 = vmatprep.mubr.f32.mxu0 %v11959_v8  ;;  %v2848_v40 = vld [vmem:[#allocation8 + $0x50] sm:$0xff] }
 0x17f   : > { %9539 = vmatpush1.bf16.msra.mxu0 %v9538_v55  ;;  %2141 = vmatmul.mubr.f32.gmra.mrb[52].mxu1 %v10933_v51  ;;  %v2481_v55 = vld [vmem:[#allocation8 + $0x118] sm:$0xff]  ;;  %v3226_v34 = vld [vmem:[#allocation8 + $0x190] sm:$0xff] }
 0x180   : > { %9571 = vmatpush1.bf16.msra.mxu1 %v9570_v56  ;;  %9541 = vmatprep.subr.bf16.mxu0 %v9540_v57  ;;  %v9558_v56 = vpack.c.bf16 %v1971_v46, %v1963_v45  ;;  %v9590_v57 = vpack.c.bf16 %v1973_v50, %v1965_v47  ;;  %v10984_v59 = vpack.c.bf16 %v2481_v55, %v2473_v54  ;;  %v2873_v45 = vld [vmem:[#allocation8 + $0x358] sm:$0xff]  ;;  %v2479_v54 = vld [vmem:[#allocation8 + $0x108] sm:$0xff] }
 0x181   : > { %9573 = vmatprep.subr.bf16.mxu1 %v9572_v61  ;;  %2052 = vmatmul.mubr.f32.gmra.mrb[52].mxu0 %v10933_v51  ;;  %v2480_v61 = vld [vmem:[#allocation8 + $0x110] sm:$0xff]  ;;  %v2853_v55 = vld [vmem:[#allocation8 + $0x78] sm:$0xff] }
 0x182   : > { %2146 = vmatprep.mubr.f32.mxu1 %v11959_v8  ;;  %2057 = vmatprep.mubr.f32.mxu0 %v11959_v8  ;;  %v10992_v49 = vpack.c.bf16 %v2480_v61, %v2472_v60  ;;  %v2470_v60 = vld [vmem:[#allocation8] sm:$0xff] }
 0x183   : > { %9543 = vmatpush1.bf16.msra.mxu0 %v9542_v4  ;;  %2147 = vmatmul.mubr.f32.gmra.mrb[54].mxu1 %v10940_v1  ;;  %v9596_v4 = vpack.c.bf16 %v2366_v0, %v2365_v62  ;;  %v2478_v61 = vld [vmem:[#allocation8 + $0x100] sm:$0xff]  ;;  %v2852_v0 = vld [vmem:[#allocation8 + $0x70] sm:$0xff] }
 0x184   : > { %9575 = vmatpush1.bf16.msra.mxu1 %v9574_v5  ;;  %9545 = vmatprep.subr.bf16.mxu0 %v9544_v6  ;;  %v2367_v5 = vld [vmem:[%s11954_s4 + $0x20] sm:$0xff]  ;;  %v2368_v6 = vld [vmem:[%s11954_s4 + $0x28] sm:$0xff]  ;;  %v11089_v9 = vpack.c.bf16 %v2478_v61, %v2470_v60  ;;  %v11093_v10 = vpack.c.bf16 %v2860_v2, %v2852_v0  ;;  %v3222_v60 = vld [vmem:[#allocation8 + $0xb0] sm:$0xff] }
 0x185   : > { %9577 = vmatprep.subr.bf16.mxu1 %v9576_v11  ;;  %2058 = vmatmul.mubr.f32.gmra.mrb[54].mxu0 %v10940_v1  ;;  %v2477_v11 = vld [vmem:[#allocation8 + $0x38] sm:$0xff]  ;;  %v9600_v14 = vpack.c.bf16 %v2368_v6, %v2367_v5  ;;  %v2487_v5 = vld [vmem:[#allocation8 + $0x208] sm:$0xff]  ;;  %v2846_v61 = vld [vmem:[#allocation8 + $0x40] sm:$0xff] }
 0x186   : > { %2306 = vmatprep.mubr.f32.mxu1 %v11959_v8  ;;  %2217 = vmatprep.mubr.f32.mxu0 %v11959_v8  ;;  %v2495_v6 = vld [vmem:[#allocation8 + $0x308] sm:$0xff]  ;;  %v2854_v0 = vld [vmem:[#allocation8 + $0x140] sm:$0xff] }
 0x187   : > { %9547 = vmatpush1.bf16.msra.mxu0 %v9546_v17  ;;  %v11016_v17 = vpack.c.bf16 %v2485_v12, %v2477_v11  ;;  %v2868_v11 = vld [vmem:[#allocation8 + $0x270] sm:$0xff]  ;;  %v2486_v12 = vld [vmem:[#allocation8 + $0x200] sm:$0xff] }
 0x188   : > { %9579 = vmatpush1.bf16.msra.mxu1 %v9578_v18  ;;  %9549 = vmatprep.subr.bf16.mxu0 %v9548_v19  ;;  %v9604_v18 = vpack.c.bf16 %v2370_v63, %v2369_v16  ;;  %v2371_v19 = vld [vmem:[%s11954_s4 + $0x40] sm:$0xff]  ;;  %v11098_v63 = vpack.c.bf16 %v2495_v6, %v2487_v5  ;;  %v2871_v5 = vld [vmem:[#allocation8 + $0x348] sm:$0xff] }
 0x189   : > { %9581 = vmatprep.subr.bf16.mxu1 %v9580_v24  ;;  %v9608_v21 = vpack.c.bf16 %v2372_v20, %v2371_v19  ;;  %v2484_v24 = vld [vmem:[#allocation8 + $0x130] sm:$0xff]  ;;  %v2475_v19 = vld [vmem:[#allocation8 + $0x28] sm:$0xff]  ;;  %v3239_v6 = vld [vmem:[#allocation8 + $0x2b8] sm:$0xff] }
 0x18a   : > { %v11045_v29 = vpack.c.bf16 %v2484_v24, %v2476_v22  ;;  %v2483_v20 = vld [vmem:[#allocation8 + $0x128] sm:$0xff]  ;;  %v3219_v22 = vld [vmem:[#allocation8 + $0x98] sm:$0xff] }
 0x18b   : > { %9551 = vmatpush1.bf16.msra.mxu0 %v9550_v30  ;;  %v3227_v24 = vld [vmem:[#allocation8 + $0x198] sm:$0xff] }
 0x18c   : > { %9583 = vmatpush1.bf16.msra.mxu1 %v9582_v31  ;;  %9553 = vmatprep.subr.bf16.mxu0 %v9552_v32  ;;  %v2492_v31 = vld [vmem:[#allocation8 + $0x230] sm:$0xff]  ;;  %v11047_v32 = vpack.c.bf16 %v2501_v28, %v2493_v27  ;;  %v11110_v27 = vpack.c.bf16 %v2483_v20, %v2475_v19  ;;  %v2862_v20 = vld [vmem:[#allocation8 + $0x240] sm:$0xff] }
 0x18d   : > { %9585 = vmatprep.subr.bf16.mxu1 %v9584_v36  ;;  %v2849_v36 = vld [vmem:[#allocation8 + $0x58] sm:$0xff]  ;;  %v11060_v39 = vpack.c.bf16 %v2500_v33, %v2492_v31  ;;  %v3218_v28 = vld [vmem:[#allocation8 + $0x90] sm:$0xff]  ;;  %v2482_v31 = vld [vmem:[#allocation8 + $0x120] sm:$0xff]  ;;  %v11114_v33 = vpack.c.bf16 %v3227_v24, %v3219_v22 }
 0x18e   : > { %v11064_v41 = vpack.c.bf16 %v2857_v37, %v2849_v36  ;;  %v2499_v36 = vld [vmem:[#allocation8 + $0x328] sm:$0xff]  ;;  %v3243_v37 = vld [vmem:[#allocation8 + $0x398] sm:$0xff]  ;;  %v3238_v19 = vld [vmem:[#allocation8 + $0x2b0] sm:$0xff] }
 0x18f   : > { %9555 = vmatpush1.bf16.msra.mxu0 %v9554_v42  ;;  %v2856_v42 = vld [vmem:[#allocation8 + $0x150] sm:$0xff] }
 0x190   : > { %9587 = vmatpush1.bf16.msra.mxu1 %v9586_v43  ;;  %9557 = vmatprep.subr.bf16.mxu0 %v9556_v44  ;;  %v2378_v43 = vld [vmem:[%s11954_s4 + $0x78] sm:$0xff]  ;;  %v2865_v44 = vld [vmem:[#allocation8 + $0x258] sm:$0xff]  ;;  %v11073_v46 = vpack.c.bf16 %v2856_v42, %v2848_v40  ;;  %v11124_v40 = vpack.c.bf16 %v3226_v34, %v3218_v28  ;;  %v11126_v42 = vpack.c.bf16 %v2499_v36, %v2491_v35  ;;  %v2851_v28 = vld [vmem:[#allocation8 + $0x68] sm:$0xff] }
 0x191   : > { %9589 = vmatprep.subr.bf16.mxu1 %v9588_v48  ;;  %v2864_v48 = vld [vmem:[#allocation8 + $0x250] sm:$0xff]  ;;  %v11076_v50 = vpack.c.bf16 %v2873_v45, %v2865_v44  ;;  %v3597_v34 = vld [vmem:[#allocation8 + $0x1d8] sm:$0xff] }
 0x192   : > { %v3242_v45 = vld [vmem:[#allocation8 + $0x390] sm:$0xff] }
 0x193   : > { %9559 = vmatpush1.bf16.msra.mxu0 %v9558_v56  ;;  %v2861_v56 = vld [vmem:[#allocation8 + $0x178] sm:$0xff]  ;;  %v3246_v24 = vld [vmem:[#allocation8 + $0x3b0] sm:$0xff] }
 0x194   : > { %9591 = vmatpush1.bf16.msra.mxu1 %v9590_v57  ;;  %9593 = vmatprep.subr.bf16.mxu0 %v9592_v58  ;;  %v11081_v57 = vpack.c.bf16 %v2872_v52, %v2864_v48  ;;  %v11087_v62 = vpack.c.bf16 %v2861_v56, %v2853_v55  ;;  %v2855_v48 = vld [vmem:[#allocation8 + $0x148] sm:$0xff]  ;;  %v3223_v52 = vld [vmem:[#allocation8 + $0xb8] sm:$0xff]  ;;  %v11170_v36 = vpack.c.bf16 %v3246_v24, %v3238_v19 }
 0x195   : > { %9633 = vmatprep.subr.bf16.mxu1 %v10984_v59  ;;  %v3217_v19 = vld [vmem:[#allocation8 + $0x88] sm:$0xff]  ;;  %v3601_v24 = vld [vmem:[#allocation8 + $0x1f8] sm:$0xff] }
 0x196   : > { %2218 = vmatmul.mubr.f32.vlgmr.msra.gmra.mrb[56].mxu0 %v10919_v23 }
 0x197   : > { %2307 = vmatmul.mubr.f32.vlgmr.msra.gmra.mrb[56].mxu1 %v10919_v23  ;;  %9595 = vmatpush3.bf16.msra.mxu0 %v9592_v58  ;;  %v11083_v58 = vpack.c.bf16 %v2479_v54, %v2471_v53  ;;  %v3231_v53 = vld [vmem:[#allocation8 + $0x1b8] sm:$0xff] }
 0x198   : > { %9635 = vmatpush1.bf16.msra.mxu1 %v10992_v49  ;;  %2312 = vmatprep.mubr.f32.mxu1 %v11959_v8  ;;  %v11146_v2 = vpack.c.bf16 %v3231_v53, %v3223_v52  ;;  %v3605_v52 = vld [vmem:[#allocation8 + $0x2d8] sm:$0xff] }
 0x199   : > { %9597 = vmatprep.subr.bf16.mxu0 %v9596_v4  ;;  %9637 = vmatprep.subr.bf16.mxu1 %v11001_v7  ;;  %v3613_v53 = vld [vmem:[#allocation8 + $0x3d8] sm:$0xff] }
 0x19a   : > { %2223 = vmatprep.mubr.f32.mxu0 %v11959_v8 }
 0x19b   : > { %2313 = vmatmul.mubr.f32.gmra.mrb[58].mxu1 %v10926_v38  ;;  %9599 = vmatpush3.bf16.msra.mxu0 %v9596_v4  ;;  %v2877_v4 = vld [vmem:[#allocation8 + $0x378] sm:$0xff] }
 0x19c   : > { %2318 = vmatprep.mubr.f32.mxu1 %v11959_v8  ;;  %9601 = vmatprep.subr.bf16.mxu0 %v9600_v14  ;;  %v11096_v16 = vpack.c.bf16 %v2877_v4, %v2869_v3  ;;  %v3230_v3 = vld [vmem:[#allocation8 + $0x1b0] sm:$0xff]  ;;  %v2863_v4 = vld [vmem:[#allocation8 + $0x248] sm:$0xff] }
 0x19d   : > { %9639 = vmatpush1.bf16.msra.mxu1 %v11008_v15  ;;  %2224 = vmatmul.mubr.f32.gmra.mrb[58].mxu0 %v10926_v38  ;;  %v2374_v38 = vld [vmem:[%s11954_s4 + $0x58] sm:$0xff] }
 0x19e   : > { %9649 = vmatprep.subr.bf16.mxu1 %v11016_v17  ;;  %2229 = vmatprep.mubr.f32.mxu0 %v11959_v8  ;;  %v9612_v30 = vpack.c.bf16 %v2374_v38, %v2373_v25 }
 0x19f   : > { %2319 = vmatmul.mubr.f32.gmra.mrb[60].mxu1 %v10933_v51  ;;  %9603 = vmatpush3.bf16.msra.mxu0 %v9600_v14  ;;  %v2494_v14 = vld [vmem:[#allocation8 + $0x300] sm:$0xff] }
 0x1a0   : > { %2324 = vmatprep.mubr.f32.mxu1 %v11959_v8  ;;  %9605 = vmatprep.subr.bf16.mxu0 %v9604_v18  ;;  %v11104_v25 = vpack.c.bf16 %v2494_v14, %v2486_v12  ;;  %v11150_v12 = vpack.c.bf16 %v2854_v0, %v2846_v61  ;;  %v11154_v14 = vpack.c.bf16 %v3230_v3, %v3222_v60  ;;  %v3604_v3 = vld [vmem:[#allocation8 + $0x2d0] sm:$0xff] }
 0x1a1   : > { %2230 = vmatmul.mubr.f32.gmra.mrb[60].mxu0 %v10933_v51 }
 0x1a2   : > { %2235 = vmatprep.mubr.f32.mxu0 %v11959_v8 }
 0x1a3   : > { %2325 = vmatmul.mubr.f32.gmra.mrb[62].mxu1 %v10940_v1  ;;  %9607 = vmatpush3.bf16.msra.mxu0 %v9604_v18  ;;  %v2876_v18 = vld [vmem:[#allocation8 + $0x370] sm:$0xff] }
 0x1a4   : > { %2651 = vmatprep.mubr.f32.mxu1 %v11959_v8  ;;  %9609 = vmatprep.subr.bf16.mxu0 %v9608_v21  ;;  %v11108_v38 = vpack.c.bf16 %v2876_v18, %v2868_v11  ;;  %v3247_v11 = vld [vmem:[#allocation8 + $0x3b8] sm:$0xff]  ;;  %v11156_v18 = vpack.c.bf16 %v2871_v5, %v2863_v4  ;;  %v2866_v4 = vld [vmem:[#allocation8 + $0x260] sm:$0xff] }
 0x1a5   : > { %2236 = vmatmul.mubr.f32.gmra.mrb[62].mxu0 %v10940_v1  ;;  %v11159_v22 = vpack.c.bf16 %v3247_v11, %v3239_v6  ;;  %v2874_v5 = vld [vmem:[#allocation8 + $0x360] sm:$0xff]  ;;  %v11189_v6 = vpack.c.bf16 %v3613_v53, %v3605_v52  ;;  %v3612_v11 = vld [vmem:[#allocation8 + $0x3d0] sm:$0xff]  ;;  %v3609_v52 = vld [vmem:[#allocation8 + $0x2f8] sm:$0xff] }
 0x1a6   : > { %9030 = vmatprep.mubr.f32.mxu0 %v10919_v23  ;;  %v2377_v23 = vld [vmem:[%s11954_s4 + $0x70] sm:$0xff]  ;;  %v3617_v53 = vld [vmem:[#allocation8 + $0x3f8] sm:$0xff] }
 0x1a7   : > { %8858 = vmatmul.mubr.msk.f32.vlgmr.msra.gmra.mrb[0].mxu1 %vm2464_vm1, %v11043_v13  ;;  %9611 = vmatpush3.bf16.msra.mxu0 %v9608_v21  ;;  %v9620_v47 = vpack.c.bf16 %v2378_v43, %v2377_v23  ;;  %v10380_v21 = vld [vmem:[%s10821_s12 + $0x8] sm:$0xff]  ;;  %v3234_v23 = vld [vmem:[#allocation8 + $0x290] sm:$0xff]  ;;  %v2498_v43 = vld [vmem:[#allocation8 + $0x320] sm:$0xff]  ;;  %12009 = vst [vmem:[#allocation20_spill] sm:$0xff] %v11189_v6  ;;  %s8957_s12 = sshll.u32 %s10638_s22, 12  ;;  %s8722_s22 = scalar_lea.sflag [#allocation7], %s10817_s17 }
 0x1a8   : > { %9651 = vmatpush1.bf16.msra.mxu1 %v11045_v29  ;;  %9613 = vmatprep.subr.bf16.mxu0 %v9612_v30  ;;  %v11140_v55 = vpack.c.bf16 %v3242_v45, %v3234_v23  ;;  %v2850_v23 = vld [vmem:[#allocation8 + $0x60] sm:$0xff]  ;;  %v3596_v45 = vld [vmem:[#allocation8 + $0x1d0] sm:$0xff]  ;;  %s11902_s10 = scalar_lea.hbm %s11955_s5, %s8957_s12 }
 0x1a9   : > { %9653 = vmatprep.subr.bf16.mxu1 %v11047_v32  ;;  %2793 = vmatprep.mubr.f32.mxu1 %v11959_v8 }
 0x1ab   : > { %9615 = vmatpush3.bf16.msra.mxu0 %v9612_v30  ;;  %v2474_v30 = vld [vmem:[#allocation8 + $0x20] sm:$0xff] }
 0x1ac   : > { %9655 = vmatpush1.bf16.msra.mxu1 %v11060_v39  ;;  %9617 = vmatprep.subr.bf16.mxu0 %v9616_v26 }
 0x1ad   : > { %9665 = vmatprep.subr.bf16.mxu1 %v11064_v41 }
 0x1af   : > { %8860 = vmatmul.mubr.msk.f32.vlgmr.msra.gmra.mrb[8].mxu1 %vm2464_vm1, %v11043_v13  ;;  %9619 = vmatpush3.bf16.msra.mxu0 %v9616_v26  ;;  %v11120_v26 = vpack.c.bf16 %v2482_v31, %v2474_v30  ;;  %v2859_v30 = vld [vmem:[#allocation8 + $0x168] sm:$0xff]  ;;  %v3589_v31 = vld [vmem:[#allocation8 + $0xd8] sm:$0xff] }
 0x1b0   : > { %9667 = vmatpush1.bf16.msra.mxu1 %v11073_v46  ;;  %9621 = vmatprep.subr.bf16.mxu0 %v9620_v47 }
 0x1b1   : > { %9669 = vmatprep.subr.bf16.mxu1 %v11076_v50  ;;  %3021 = vmatprep.mubr.f32.mxu1 %v11959_v8 }
 0x1b3   : > { %9623 = vmatpush3.bf16.msra.mxu0 %v9620_v47  ;;  %v2847_v47 = vld [vmem:[#allocation8 + $0x48] sm:$0xff] }
 0x1b4   : > { %9671 = vmatpush1.bf16.msra.mxu1 %v11081_v57  ;;  %9625 = vmatprep.subr.bf16.mxu0 %v11083_v58  ;;  %v11142_v56 = vpack.c.bf16 %v2855_v48, %v2847_v47  ;;  %v2867_v47 = vld [vmem:[#allocation8 + $0x268] sm:$0xff] }
 0x1b5   : > { %9681 = vmatprep.subr.bf16.mxu1 %v11087_v62  ;;  %v2875_v48 = vld [vmem:[#allocation8 + $0x368] sm:$0xff] }
 0x1b6   : > { %9031 = vmatmul.mubr.f32.vlgmr.msra.gmra.mrb[64].mxu0 %v10380_v21  ;;  %v2870_v21 = vld [vmem:[#allocation8 + $0x340] sm:$0xff]  ;;  %v11186_v0 = vpack.c.bf16 %v2875_v48, %v2867_v47  ;;  %v3233_v47 = vld [vmem:[#allocation8 + $0x288] sm:$0xff] }
 0x1b7   : > { %8862 = vmatmul.mubr.msk.f32.vlgmr.msra.gmra.mrb[16].mxu1 %vm2464_vm1, %v11043_v13  ;;  %9627 = vmatpush1.bf16.msra.mxu0 %v11089_v9  ;;  %v11166_v35 = vpack.c.bf16 %v2870_v21, %v2862_v20  ;;  %v3225_v20 = vld [vmem:[#allocation8 + $0x188] sm:$0xff]  ;;  %v3593_v21 = vld [vmem:[#allocation8 + $0xf8] sm:$0xff] }
 0x1b8   : > { %9683 = vmatpush1.bf16.msra.mxu1 %v11093_v10  ;;  %9033 = vmatprep.mubr.f32.mxu0 %v10933_v51  ;;  %v3235_v51 = vld [vmem:[#allocation8 + $0x298] sm:$0xff]  ;;  %v3241_v48 = vld [vmem:[#allocation8 + $0x388] sm:$0xff] }
 0x1b9   : > { %9685 = vmatprep.subr.bf16.mxu1 %v11096_v16  ;;  %9629 = vmatprep.subr.bf16.mxu0 %v11098_v63  ;;  %v11129_v44 = vpack.c.bf16 %v3243_v37, %v3235_v51  ;;  %v11172_v51 = vpack.c.bf16 %v2859_v30, %v2851_v28  ;;  %v3588_v37 = vld [vmem:[#allocation8 + $0xd0] sm:$0xff]  ;;  %v11196_v28 = vpack.c.bf16 %v2874_v5, %v2866_v4 }
 0x1ba   : > { %9034 = vmatmul.mubr.f32.gmra.mrb[66].mxu0 %v10940_v1  ;;  %3163 = vmatprep.mubr.f32.mxu1 %v11959_v8  ;;  %v2490_v1 = vld [vmem:[#allocation8 + $0x220] sm:$0xff]  ;;  %v11184_v61 = vpack.c.bf16 %v3596_v45, %v3588_v37  ;;  %v11200_v30 = vpack.c.bf16 %v3612_v11, %v3604_v3  ;;  %v3600_v45 = vld [vmem:[#allocation8 + $0x1f0] sm:$0xff]  ;;  %v11216_v5 = vpack.c.bf16 %v3241_v48, %v3233_v47 }
 0x1bb   : > { %9631 = vmatpush1.bf16.msra.mxu0 %v11104_v25  ;;  %2580 = vmatprep.mubr.f32.mxu0 %v11959_v8  ;;  %v11136_v54 = vpack.c.bf16 %v2498_v43, %v2490_v1  ;;  %v2858_v1 = vld [vmem:[#allocation8 + $0x160] sm:$0xff]  ;;  %v11176_v43 = vpack.c.bf16 %v3597_v34, %v3589_v31  ;;  %v11202_v31 = vpack.c.bf16 %v3225_v20, %v3217_v19  ;;  %v3592_v34 = vld [vmem:[#allocation8 + $0xf0] sm:$0xff] }
 0x1bc   : > { %9687 = vmatpush1.bf16.msra.mxu1 %v11108_v38  ;;  %9641 = vmatprep.subr.bf16.mxu0 %v11110_v27  ;;  %v11180_v60 = vpack.c.bf16 %v2858_v1, %v2850_v23  ;;  %12008 = vst [vmem:[#allocation19_spill] sm:$0xff] %v11184_v61  ;;  %12010 = vst [vmem:[#allocation21_spill] sm:$0xff] %v11200_v30  ;;  %v3216_v37 = vld [vmem:[#allocation8 + $0x80] sm:$0xff]  ;;  %v11206_v1 = vpack.c.bf16 %v3601_v24, %v3593_v21  ;;  %v3608_v11 = vld [vmem:[#allocation8 + $0x2f0] sm:$0xff] }
 0x1bd   : > { %9697 = vmatprep.subr.bf16.mxu1 %v11114_v33  ;;  %12007 = vst [vmem:[#allocation18_spill] sm:$0xff] %v11176_v43  ;;  %v3224_v23 = vld [vmem:[#allocation8 + $0x180] sm:$0xff]  ;;  %v11214_v4 = vpack.c.bf16 %v3600_v45, %v3592_v34  ;;  %v11219_v21 = vpack.c.bf16 %v3617_v53, %v3609_v52  ;;  %v3616_v24 = vld [vmem:[#allocation8 + $0x3f0] sm:$0xff]  ;;  %v12015_v52 = vmov 0.0   ;;  %v3957_v53 = vld [vmem:[#allocation11 + $0x8] sm:$0xff] }
 0x1be   : > { %8857 = vmatmul.mubr.msk.f32.vlgmr.msra.gmra.mrb[0].mxu0 %vm2464_vm1, %v11043_v13  ;;  %12011 = vst [vmem:[#allocation22_spill] sm:$0xff] %v11206_v1  ;;  %v11210_v3 = vpack.c.bf16 %v3224_v23, %v3216_v37  ;;  %v3232_v19 = vld [vmem:[#allocation8 + $0x280] sm:$0xff]  ;;  %v11230_v37 = vpack.c.bf16 %v3616_v24, %v3608_v11  ;;  %v3958_v11 = vld [vmem:[#allocation11 + $0x10] sm:$0xff] }
 0x1bf   : > { %8864 = vmatmul.mubr.msk.f32.vlgmr.msra.gmra.mrb[24].mxu1 %vm2464_vm1, %v11043_v13  ;;  %9643 = vmatpush1.bf16.msra.mxu0 %v11120_v26  ;;  %12012 = vst [vmem:[#allocation23_spill] sm:$0xff] %v11214_v4  ;;  %v3240_v20 = vld [vmem:[#allocation8 + $0x380] sm:$0xff]  ;;  %12013 = vst [vmem:[#allocation24_spill] sm:$0xff] %v11219_v21 }
 0x1c0   : > { %9699 = vmatpush1.bf16.msra.mxu1 %v11124_v40  ;;  %9645 = vmatprep.subr.bf16.mxu0 %v11126_v42  ;;  %v11226_v34 = vpack.c.bf16 %v3240_v20, %v3232_v19  ;;  %12014 = vst [vmem:[#allocation25_spill] sm:$0xff] %v11230_v37  ;;  %v3956_v45 = vld [vmem:[#allocation11] sm:$0xff] }
 0x1c1   : > { %9701 = vmatprep.subr.bf16.mxu1 %v11129_v44  ;;  %3391 = vmatprep.mubr.f32.mxu1 %v11959_v8  ;;  %v3220_v47 = vld [vmem:[#allocation8 + $0xa0] sm:$0xff] }
 0x1c2   : > { %2722 = vmatprep.mubr.f32.mxu0 %v11959_v8  ;;  %v3228_v48 = vld [vmem:[#allocation8 + $0x1a0] sm:$0xff] }
 0x1c3   : > { %9647 = vmatpush1.bf16.msra.mxu0 %v11136_v54  ;;  %v11238_v19 = vpack.c.bf16 %v3228_v48, %v3220_v47  ;;  %v3236_v20 = vld [vmem:[#allocation8 + $0x2a0] sm:$0xff] }
 0x1c4   : > { %9703 = vmatpush1.bf16.msra.mxu1 %v11140_v55  ;;  %9657 = vmatprep.subr.bf16.mxu0 %v11142_v56  ;;  %v3244_v24 = vld [vmem:[#allocation8 + $0x3a0] sm:$0xff] }
 0x1c5   : > { %9713 = vmatprep.subr.bf16.mxu1 %v11146_v2  ;;  %v3586_v47 = vld [vmem:[#allocation8 + $0xc0] sm:$0xff] }
 0x1c6   : > { %8859 = vmatmul.mubr.msk.f32.vlgmr.msra.gmra.mrb[8].mxu0 %vm2464_vm1, %v11043_v13  ;;  %v3594_v48 = vld [vmem:[#allocation8 + $0x1c0] sm:$0xff] }
 0x1c7   : > { %8866 = vmatmul.mubr.msk.f32.vlgmr.msra.gmra.mrb[32].mxu1 %vm2464_vm1, %v11043_v13  ;;  %9659 = vmatpush1.bf16.msra.mxu0 %v11150_v12 }
 0x1c8   : > { %9715 = vmatpush1.bf16.msra.mxu1 %v11154_v14  ;;  %9661 = vmatprep.subr.bf16.mxu0 %v11156_v18 }
 0x1c9   : > { %9717 = vmatprep.subr.bf16.mxu1 %v11159_v22  ;;  %3533 = vmatprep.mubr.f32.mxu1 %v11959_v8 }
 0x1ca   : > { %2950 = vmatprep.mubr.f32.mxu0 %v11959_v8 }
 0x1cb   : > { %9663 = vmatpush1.bf16.msra.mxu0 %v11166_v35 }
 0x1cc   : > { %9719 = vmatpush1.bf16.msra.mxu1 %v11170_v36  ;;  %9673 = vmatprep.subr.bf16.mxu0 %v11172_v51 }
 0x1cd   : > { %9729 = vmatprep.subr.bf16.mxu1 %v11176_v43  ;;  %v3595_v43 = vld [vmem:[#allocation8 + $0x1c8] sm:$0xff] }
 0x1ce   : > { %8861 = vmatmul.mubr.msk.f32.vlgmr.msra.gmra.mrb[16].mxu0 %vm2464_vm1, %v11043_v13 }
 0x1cf   : > { %8868 = vmatmul.mubr.msk.f32.vlgmr.msra.gmra.mrb[40].mxu1 %vm2464_vm1, %v11043_v13  ;;  %9675 = vmatpush1.bf16.msra.mxu0 %v11180_v60 }
 0x1d0   : > { %9731 = vmatpush1.bf16.msra.mxu1 %v11184_v61  ;;  %9677 = vmatprep.subr.bf16.mxu0 %v11186_v0  ;;  %v3587_v61 = vld [vmem:[#allocation8 + $0xc8] sm:$0xff] }
 0x1d1   : > { %9733 = vmatprep.subr.bf16.mxu1 %v11189_v6  ;;  %3761 = vmatprep.mubr.f32.mxu1 %v11959_v8  ;;  %v3229_v6 = vld [vmem:[#allocation8 + $0x1a8] sm:$0xff] }
 0x1d2   : > { %3092 = vmatprep.mubr.f32.mxu0 %v11959_v8  ;;  %v3221_v8 = vld [vmem:[#allocation8 + $0xa8] sm:$0xff] }
 0x1d3   : > { %9679 = vmatpush1.bf16.msra.mxu0 %v11196_v28  ;;  %v11232_v23 = vpack.c.bf16 %v3229_v6, %v3221_v8  ;;  %v11242_v8 = vpack.c.bf16 %v3957_v53, %v3956_v45  ;;  %v11252_v45 = vpack.c.bf16 %v3244_v24, %v3236_v20  ;;  %v3603_v53 = vld [vmem:[#allocation8 + $0x2c8] sm:$0xff]  ;;  %v11265_v20 = vpack.c.bf16 %v3594_v48, %v3586_v47  ;;  %v3590_v48 = vld [vmem:[#allocation8 + $0xe0] sm:$0xff] }
 0x1d4   : > { %9735 = vmatpush1.bf16.msra.mxu1 %v11200_v30  ;;  %9689 = vmatprep.subr.bf16.mxu0 %v11202_v31  ;;  %v3245_v30 = vld [vmem:[#allocation8 + $0x3a8] sm:$0xff] }
 0x1d5   : > { %9745 = vmatprep.subr.bf16.mxu1 %v11206_v1  ;;  %v3237_v1 = vld [vmem:[#allocation8 + $0x2a8] sm:$0xff]  ;;  %12016 = vst [vmem:[#allocation26_spill] sm:$0xff] %v11242_v8 }
 0x1d6   : > { %8863 = vmatmul.mubr.msk.f32.vlgmr.msra.gmra.mrb[24].mxu0 %vm2464_vm1, %v11043_v13  ;;  %v11244_v6 = vpack.c.bf16 %v3245_v30, %v3237_v1  ;;  %v11258_v1 = vpack.c.bf16 %v3595_v43, %v3587_v61  ;;  %v3602_v61 = vld [vmem:[#allocation8 + $0x2c0] sm:$0xff]  ;;  %v3599_v24 = vld [vmem:[#allocation8 + $0x1e8] sm:$0xff] }
 0x1d7   : > { %8870 = vmatmul.mubr.msk.f32.vlgmr.msra.gmra.mrb[48].mxu1 %vm2464_vm1, %v11043_v13  ;;  %9691 = vmatpush1.bf16.msra.mxu0 %v11210_v3 }
 0x1d8   : > { %9747 = vmatpush1.bf16.msra.mxu1 %v11214_v4  ;;  %9693 = vmatprep.subr.bf16.mxu0 %v11216_v5  ;;  %v3959_v4 = vld [vmem:[#allocation11 + $0x18] sm:$0xff] }
 0x1d9   : > { %9749 = vmatprep.subr.bf16.mxu1 %v11219_v21  ;;  %3903 = vmatprep.mubr.f32.mxu1 %v12015_v52  ;;  %v11969_v21 = vmov 0.0|0.0   ;;  %v11256_v30 = vpack.c.bf16 %v3959_v4, %v3958_v11  ;;  %v3610_v4 = vld [vmem:[#allocation8 + $0x3c0] sm:$0xff]  ;;  %v3591_v11 = vld [vmem:[#allocation8 + $0xe8] sm:$0xff] }
 0x1da   : > { %3320 = vmatprep.mubr.f32.mxu0 %v12015_v52  ;;  %v11277_v47 = vpack.c.bf16 %v3610_v4, %v3602_v61 }
 0x1db   : > { %9695 = vmatpush1.bf16.msra.mxu0 %v11226_v34  ;;  %12017 = vst [vmem:[#allocation27_spill] sm:$0xff] %v11256_v30 }
 0x1dc   : > { %9751 = vmatpush1.bf16.msra.mxu1 %v11230_v37  ;;  %9705 = vmatprep.subr.bf16.mxu0 %v11232_v23  ;;  %v3611_v37 = vld [vmem:[#allocation8 + $0x3c8] sm:$0xff]  ;;  %12018 = vst [vmem:[#allocation28_spill] sm:$0xff] %v11277_v47 }
 0x1dd   : > { %9752 = vmatprep.subr.bf16.mxu1 %v11969_v21  ;;  %v11269_v43 = vpack.c.bf16 %v3611_v37, %v3603_v53  ;;  %v11281_v37 = vpack.c.bf16 %v3599_v24, %v3591_v11  ;;  %v3598_v53 = vld [vmem:[#allocation8 + $0x1e0] sm:$0xff] }
 0x1de   : > { %8865 = vmatmul.mubr.msk.f32.vlgmr.msra.gmra.mrb[32].mxu0 %vm2464_vm1, %v11043_v13  ;;  %v11287_v61 = vpack.c.bf16 %v3598_v53, %v3590_v48  ;;  %v3606_v11 = vld [vmem:[#allocation8 + $0x2e0] sm:$0xff] }
 0x1df   : > { %8872 = vmatmul.mubr.msk.f32.vlgmr.msra.gmra.mrb[56].mxu1 %vm2464_vm1, %v11043_v13  ;;  %9707 = vmatpush1.bf16.msra.mxu0 %v11238_v19  ;;  %12019 = vst [vmem:[#allocation29_spill] sm:$0xff] %v11281_v37  ;;  %v3614_v24 = vld [vmem:[#allocation8 + $0x3e0] sm:$0xff] }
 0x1e0   : > { %9754 = vmatpush3.bf16.msra.mxu1 %v11242_v8  ;;  %9709 = vmatprep.subr.bf16.mxu0 %v11244_v6  ;;  %12020 = vst [vmem:[#allocation30_spill] sm:$0xff] %v11287_v61 }
 0x1e1   : > { %9755 = vmatprep.subr.bf16.mxu1 %v11969_v21  ;;  %9044 = vmatprep.mubr.msk.f32.mxu1 %vm10582_vm2, %v12015_v52  ;;  %v3607_v21 = vld [vmem:[#allocation8 + $0x2e8] sm:$0xff] }
 0x1e2   : > { %3462 = vmatprep.mubr.f32.mxu0 %v12015_v52 }
 0x1e3   : > { %9711 = vmatpush1.bf16.msra.mxu0 %v11252_v45 }
 0x1e4   : > { %9757 = vmatpush3.bf16.msra.mxu1 %v11256_v30  ;;  %9721 = vmatprep.subr.bf16.mxu0 %v11258_v1 }
 0x1e5   : > { %9767 = vmatprep.subr.bf16.mxu1 %v10984_v59  ;;  %v3615_v59 = vld [vmem:[#allocation8 + $0x3e8] sm:$0xff] }
 0x1e6   : > { %8867 = vmatmul.mubr.msk.f32.vlgmr.msra.gmra.mrb[40].mxu0 %vm2464_vm1, %v11043_v13  ;;  %v11290_v4 = vpack.c.bf16 %v3615_v59, %v3607_v21 }
 0x1e7   : > { %9045 = vmatmul.mubr.msk.f32.vlgmr.msra.gmra.mrb[64].mxu1 %vm2464_vm1, %v11043_v13  ;;  %9723 = vmatpush1.bf16.msra.mxu0 %v11265_v20 }
 0x1e8   : > { %9725 = vmatprep.subr.bf16.mxu0 %v11269_v43  ;;  %3690 = vmatprep.mubr.f32.mxu0 %v12015_v52  ;;  %12021 = vst [vmem:[#allocation31_spill] sm:$0xff] %v11290_v4 }
 0x1e9   : > { %9769 = vmatpush1.bf16.msra.mxu1 %v10992_v49  ;;  %4212 = vmatprep.mubr.f32.mxu1 %v12015_v52  ;;  %v11297_v49 = vpack.c.bf16 %v3614_v24, %v3606_v11  ;;  %v2813_v11 = vlaneseq }
 0x1ea   : > { %9771 = vmatprep.subr.bf16.mxu1 %v11001_v7 }
 0x1eb   : > { %9727 = vmatpush1.bf16.msra.mxu0 %v11277_v47  ;;  %12022 = vst [vmem:[#allocation32_spill] sm:$0xff] %v11297_v49 }
 0x1ec   : > { %9737 = vmatprep.subr.bf16.mxu0 %v11281_v37 }
 0x1ed   : > { %9773 = vmatpush1.bf16.msra.mxu1 %v11008_v15 }
 0x1ee   : > { %8869 = vmatmul.mubr.msk.f32.vlgmr.msra.gmra.mrb[48].mxu0 %vm2464_vm1, %v11043_v13  ;;  %9783 = vmatprep.subr.bf16.mxu1 %v11016_v17 }
 0x1ef   : > { %9739 = vmatpush1.bf16.msra.mxu0 %v11287_v61  ;;  %3832 = vmatprep.mubr.f32.mxu0 %v12015_v52 }
 0x1f0   : > { %9741 = vmatprep.subr.bf16.mxu0 %v11290_v4 }
 0x1f3   : > { %9743 = vmatpush1.bf16.msra.mxu0 %v11297_v49 }
 0x1f4   : > { %9759 = vmatprep.subr.bf16.mxu0 %v11083_v58  ;;  %v10583_v58 = vmov 1983009808  }
 0x1f5   : > { %v2811_v59 = vunpack.c.l.s4 %v10583_v58 }
 0x1f6   : > { %8871 = vmatmul.mubr.msk.f32.vlgmr.msra.gmra.mrb[56].mxu0 %vm2464_vm1, %v11043_v13 }
 0x1f7   : > { %9761 = vmatpush1.bf16.msra.mxu0 %v11089_v9  ;;  %4141 = vmatprep.mubr.f32.mxu0 %v12015_v52 }
 0x1f8   : > { %9763 = vmatprep.subr.bf16.mxu0 %v11098_v63 }
 0x1fb   : > { %9765 = vmatpush1.bf16.msra.mxu0 %v11104_v25  ;;  %v2812_v25 = vunpack.c.0.s8 %v2811_v59 }
 0x1fc   : > { %9775 = vmatprep.subr.bf16.mxu0 %v11110_v27  ;;  %v2814_v27 = vshrl.u32 %v2813_v11, 7 }
 0x27a   : > { %v2653_v7 = vpop.f32.mrb[0].mxu1 }
 0x27b   : > { %v2655_v15 = vpop.f32.mrb[1].mxu1 }
 0x27c   : > { %v2809_v17 = vcombine.low %v2653_v7, %v2655_v15  ;;  %v11314_v15 = vsub.s32 %v2812_v25, %v2814_v27 }
 0x282   : > { %v2795_v21 = vpop.f32.mrb[8].mxu1 }
 0x283   : > { %v2797_v48 = vpop.f32.mrb[9].mxu1 }
 0x284   : > { %v2826_v53 = vcombine.low %v2795_v21, %v2797_v48 }
 0x289   : > { %v9032_v13 = vpop.f32.mrb[64].mxu0 }
 0x28a   : > { %v3023_v24 = vpop.f32.mrb[16].mxu1  ;;  %2466 = vst.msk [vmem:[#allocation4 + $0x8] sm:$0xff] %vm2464_vm1, %v9032_v13  ;;  %v2445_v9 = vpop.f32.mrb[65].mxu0 }
 0x28b   : > { %v3025_v30 = vpop.f32.mrb[17].mxu1  ;;  %2465 = vst.msk [vmem:[#allocation4] sm:$0xff] %vm2464_vm1, %v2445_v9 }
 0x28c   : > { %v3179_v63 = vcombine.low %v3023_v24, %v3025_v30  ;;  %v2823_v30 = vrot.slane %v2809_v17, %v11314_v15 }
 0x28d   : > { %v9035_v8 = vpop.f32.mrb[66].mxu0 }
 0x28e   : > { %2468 = vst.msk [vmem:[#allocation4 + $0x18] sm:$0xff] %vm2464_vm1, %v9035_v8  ;;  %v2455_v7 = vpop.f32.mrb[67].mxu0 }
 0x28f   : > { %2467 = vst.msk [vmem:[#allocation4 + $0x10] sm:$0xff] %vm2464_vm1, %v2455_v7  ;;  %v2840_v7 = vrot.slane %v2826_v53, %v11314_v15 }
 0x291   : > { %v2582_v21 = vpop.f32.mrb[0].mxu0 }
 0x292   : > { %v3165_v48 = vpop.f32.mrb[24].mxu1  ;;  %v2584_v58 = vpop.f32.mrb[1].mxu0 }
 0x293   : > { %v3167_v13 = vpop.f32.mrb[25].mxu1  ;;  %v2808_v49 = vcombine.low %v2582_v21, %v2584_v58 }
 0x294   : > { %v3196_v4 = vcombine.low %v3165_v48, %v3167_v13 }
 0x295   : > { %v2816_v59 = vrot.slane %v2808_v49, %v11314_v15 }
 0x297   : > { %v2824_v11 = vcombine.low %v2816_v59, %v2823_v30  ;;  %v3193_v30 = vrot.slane %v3179_v63, %v11314_v15 }
 0x299   : > { %2844 = vst [vmem:[%s10836_s6] sm:$0xff] %v2824_v11  ;;  %v2724_v24 = vpop.f32.mrb[8].mxu0 }
 0x29a   : > { %v3393_v8 = vpop.f32.mrb[32].mxu1  ;;  %v2726_v9 = vpop.f32.mrb[9].mxu0 }
 0x29b   : > { %v3395_v61 = vpop.f32.mrb[33].mxu1  ;;  %v2825_v25 = vcombine.low %v2724_v24, %v2726_v9 }
 0x29c   : > { %v3549_v27 = vcombine.low %v3393_v8, %v3395_v61 }
 0x29d   : > { %v2833_v37 = vrot.slane %v2825_v25, %v11314_v15 }
 0x29f   : > { %v2841_v47 = vcombine.low %v2833_v37, %v2840_v7  ;;  %v3210_v37 = vrot.slane %v3196_v4, %v11314_v15 }
 0x2a1   : > { %2845 = vst [vmem:[%s10836_s6 + $0x8] sm:$0xff] %v2841_v47  ;;  %v2952_v21 = vpop.f32.mrb[16].mxu0 }
 0x2a2   : > { %v3535_v48 = vpop.f32.mrb[40].mxu1  ;;  %v2954_v17 = vpop.f32.mrb[17].mxu0 }
 0x2a3   : > { %v3537_v58 = vpop.f32.mrb[41].mxu1  ;;  %v3178_v49 = vcombine.low %v2952_v21, %v2954_v17 }
 0x2a4   : > { %v3566_v13 = vcombine.low %v3535_v48, %v3537_v58 }
 0x2a5   : > { %v3186_v59 = vrot.slane %v3178_v49, %v11314_v15 }
 0x2a7   : > { %v3194_v11 = vcombine.low %v3186_v59, %v3193_v30  ;;  %v3563_v30 = vrot.slane %v3549_v27, %v11314_v15 }
 0x2a9   : > { %3214 = vst [vmem:[%s10836_s6 + $0x10] sm:$0xff] %v3194_v11  ;;  %v3094_v61 = vpop.f32.mrb[24].mxu0 }
 0x2aa   : > { %v3763_v24 = vpop.f32.mrb[48].mxu1  ;;  %v3096_v53 = vpop.f32.mrb[25].mxu0 }
 0x2ab   : > { %v3765_v8 = vpop.f32.mrb[49].mxu1  ;;  %v3195_v9 = vcombine.low %v3094_v61, %v3096_v53  ;;  %v3960_v61 = vld [vmem:[#allocation4] sm:$0xff] }
 0x2ac   : > { %v3919_v47 = vcombine.low %v3763_v24, %v3765_v8 }
 0x2ad   : > { %v3203_v25 = vrot.slane %v3195_v9, %v11314_v15 }
 0x2af   : > { %v3211_v7 = vcombine.low %v3203_v25, %v3210_v37  ;;  %v3580_v25 = vrot.slane %v3566_v13, %v11314_v15 }
 0x2b1   : > { %3215 = vst [vmem:[%s10836_s6 + $0x18] sm:$0xff] %v3211_v7  ;;  %v3322_v21 = vpop.f32.mrb[32].mxu0 }
 0x2b2   : > { %v3905_v48 = vpop.f32.mrb[56].mxu1  ;;  %v3324_v63 = vpop.f32.mrb[33].mxu0 }
 0x2b3   : > { %v3907_v17 = vpop.f32.mrb[57].mxu1  ;;  %v3548_v58 = vcombine.low %v3322_v21, %v3324_v63  ;;  %v5610_v63 = vld [vmem:[#allocation8 + $0x200] sm:$0xff] }
 0x2b4   : > { %v3936_v49 = vcombine.low %v3905_v48, %v3907_v17  ;;  %v5621_v48 = vld [vmem:[#allocation8 + $0x318] sm:$0xff]  ;;  %v5618_v17 = vld [vmem:[#allocation8 + $0x300] sm:$0xff] }
 0x2b5   : > { %v3556_v59 = vrot.slane %v3548_v58, %v11314_v15 }
 0x2b7   : > { %v3564_v11 = vcombine.low %v3556_v59, %v3563_v30  ;;  %v5612_v30 = vld [vmem:[#allocation8 + $0x210] sm:$0xff] }
 0x2b8   : > { %v5620_v59 = vld [vmem:[#allocation8 + $0x310] sm:$0xff] }
 0x2b9   : > { %3584 = vst [vmem:[%s10836_s6 + $0x20] sm:$0xff] %v3564_v11  ;;  %v3464_v24 = vpop.f32.mrb[40].mxu0  ;;  %v11471_v11 = vpack.c.bf16 %v5620_v59, %v5612_v30 }
 0x2ba   : > { %v4027_v53 = vpop.f32.mrb[64].mxu1  ;;  %v3466_v4 = vpop.f32.mrb[41].mxu0 }
 0x2bb   : > { %v11331_v8 = vadd.f32 %v4027_v53, %v3960_v61  ;;  %v9046_v9 = vpop.f32.mrb[65].mxu1  ;;  %v3565_v37 = vcombine.low %v3464_v24, %v3466_v4  ;;  %v5599_v61 = vld [vmem:[#allocation8 + $0x28] sm:$0xff]  ;;  %v5601_v53 = vld [vmem:[#allocation8 + $0x38] sm:$0xff] }
 0x2bc   : > { %v5607_v24 = vld [vmem:[#allocation8 + $0x128] sm:$0xff] }
 0x2bd   : > { %v3573_v7 = vrot.slane %v3565_v37, %v11314_v15  ;;  %8874 = vmatmul.mubr.msk.f32.vlgmr.msra.gmra.mrb[2].mxu0 %vm2464_vm1, %v11331_v8  ;;  %8875 = vmatmul.mubr.msk.f32.vlgmr.msra.gmra.mrb[2].mxu1 %vm2464_vm1, %v11331_v8  ;;  %v11476_v4 = vpack.c.bf16 %v5607_v24, %v5599_v61 }
 0x2be   : > { %9777 = vmatpush1.bf16.msra.mxu0 %v11120_v26  ;;  %9785 = vmatpush1.bf16.msra.mxu1 %v11045_v29  ;;  %v3933_v29 = vrot.slane %v3919_v47, %v11314_v15 }
 0x2bf   : > { %v3581_v27 = vcombine.low %v3573_v7, %v3580_v25  ;;  %9779 = vmatprep.subr.bf16.mxu0 %v11126_v42  ;;  %9787 = vmatprep.subr.bf16.mxu1 %v11047_v32 }
 0x2c0   : > { %4283 = vmatprep.mubr.f32.mxu0 %v12015_v52  ;;  %4354 = vmatprep.mubr.f32.mxu1 %v12015_v52 }
 0x2c1   : > { %3585 = vst [vmem:[%s10836_s6 + $0x28] sm:$0xff] %v3581_v27  ;;  %v3692_v13 = vpop.f32.mrb[48].mxu0 }
 0x2c2   : > { %9781 = vmatpush1.bf16.msra.mxu0 %v11136_v54  ;;  %9789 = vmatpush1.bf16.msra.mxu1 %v11060_v39  ;;  %v3694_v21 = vpop.f32.mrb[49].mxu0 }
 0x2c3   : > { %v3918_v26 = vcombine.low %v3692_v13, %v3694_v21  ;;  %9791 = vmatprep.subr.bf16.mxu0 %v11142_v56  ;;  %9799 = vmatprep.subr.bf16.mxu1 %v11064_v41  ;;  %v12031_v56 = vld [vmem:[#allocation23_spill] sm:$0xff] }
 0x2c5   : > { %v3926_v32 = vrot.slane %v3918_v26, %v11314_v15  ;;  %8876 = vmatmul.mubr.msk.f32.vlgmr.msra.gmra.mrb[10].mxu0 %vm2464_vm1, %v11331_v8  ;;  %8877 = vmatmul.mubr.msk.f32.vlgmr.msra.gmra.mrb[10].mxu1 %vm2464_vm1, %v11331_v8 }
 0x2c6   : > { %9793 = vmatpush1.bf16.msra.mxu0 %v11150_v12  ;;  %9801 = vmatpush1.bf16.msra.mxu1 %v11073_v46  ;;  %v3950_v46 = vrot.slane %v3936_v49, %v11314_v15  ;;  %v12033_v12 = vld [vmem:[#allocation24_spill] sm:$0xff]  ;;  %v11468_v49 = vpack.c.bf16 %v5618_v17, %v5610_v63 }
 0x2c7   : > { %v3934_v39 = vcombine.low %v3926_v32, %v3933_v29  ;;  %9795 = vmatprep.subr.bf16.mxu0 %v11156_v18  ;;  %9803 = vmatprep.subr.bf16.mxu1 %v11076_v50  ;;  %v12035_v18 = vld [vmem:[#allocation25_spill] sm:$0xff] }
 0x2c8   : > { %4512 = vmatprep.mubr.f32.mxu0 %v12015_v52  ;;  %4583 = vmatprep.mubr.f32.mxu1 %v12015_v52 }
 0x2c9   : > { %3954 = vst [vmem:[%s10836_s6 + $0x30] sm:$0xff] %v3934_v39  ;;  %v3834_v41 = vpop.f32.mrb[56].mxu0 }
 0x2ca   : > { %9797 = vmatpush1.bf16.msra.mxu0 %v11166_v35  ;;  %9805 = vmatpush1.bf16.msra.mxu1 %v11081_v57  ;;  %v3836_v42 = vpop.f32.mrb[57].mxu0  ;;  %v12037_v35 = vld [vmem:[#allocation26_spill] sm:$0xff] }
 0x2cb   : > { %v3935_v54 = vcombine.low %v3834_v41, %v3836_v42  ;;  %9807 = vmatprep.subr.bf16.mxu0 %v11172_v51  ;;  %9815 = vmatprep.subr.bf16.mxu1 %v11087_v62  ;;  %v12023_v62 = vld [vmem:[#allocation18_spill] sm:$0xff]  ;;  %v5595_v51 = vld [vmem:[#allocation8 + $0x8] sm:$0xff] }
 0x2cd   : > { %v3943_v50 = vrot.slane %v3935_v54, %v11314_v15  ;;  %8880 = vmatmul.mubr.msk.f32.vlgmr.msra.gmra.mrb[18].mxu0 %vm2464_vm1, %v11331_v8  ;;  %8881 = vmatmul.mubr.msk.f32.vlgmr.msra.gmra.mrb[18].mxu1 %vm2464_vm1, %v11331_v8 }
 0x2ce   : > { %9809 = vmatpush1.bf16.msra.mxu0 %v11180_v60  ;;  %9817 = vmatpush1.bf16.msra.mxu1 %v11093_v10  ;;  %v12024_v10 = vld [vmem:[#allocation19_spill] sm:$0xff] }
 0x2cf   : > { %v3951_v57 = vcombine.low %v3943_v50, %v3950_v46  ;;  %9811 = vmatprep.subr.bf16.mxu0 %v11186_v0  ;;  %9819 = vmatprep.subr.bf16.mxu1 %v11096_v16  ;;  %v12025_v16 = vld [vmem:[#allocation20_spill] sm:$0xff]  ;;  %v5603_v60 = vld [vmem:[#allocation8 + $0x108] sm:$0xff]  ;;  %v5597_v0 = vld [vmem:[#allocation8 + $0x18] sm:$0xff] }
 0x2d0   : > { %4654 = vmatprep.mubr.f32.mxu0 %v12015_v52  ;;  %4725 = vmatprep.mubr.f32.mxu1 %v12015_v52 }
 0x2d1   : > { %3955 = vst [vmem:[%s10836_s6 + $0x38] sm:$0xff] %v3951_v57 }
 0x2d2   : > { %9813 = vmatpush1.bf16.msra.mxu0 %v11196_v28  ;;  %9821 = vmatpush1.bf16.msra.mxu1 %v11108_v38  ;;  %v12026_v38 = vld [vmem:[#allocation28_spill] sm:$0xff]  ;;  %v11452_v28 = vpack.c.bf16 %v5603_v60, %v5595_v51 }
 0x2d3   : > { %9823 = vmatprep.subr.bf16.mxu0 %v11202_v31  ;;  %9831 = vmatprep.subr.bf16.mxu1 %v11114_v33  ;;  %v12027_v33 = vld [vmem:[#allocation21_spill] sm:$0xff] }
 0x2d4   : > { %v5605_v31 = vld [vmem:[#allocation8 + $0x118] sm:$0xff] }
 0x2d5   : > { %8882 = vmatmul.mubr.msk.f32.vlgmr.msra.gmra.mrb[26].mxu0 %vm2464_vm1, %v11331_v8  ;;  %8883 = vmatmul.mubr.msk.f32.vlgmr.msra.gmra.mrb[26].mxu1 %vm2464_vm1, %v11331_v8 }
 0x2d6   : > { %9825 = vmatpush1.bf16.msra.mxu0 %v11210_v3  ;;  %9833 = vmatpush1.bf16.msra.mxu1 %v11124_v40  ;;  %v12028_v40 = vld [vmem:[#allocation29_spill] sm:$0xff]  ;;  %v5594_v3 = vld [vmem:[#allocation8] sm:$0xff] }
 0x2d7   : > { %9827 = vmatprep.subr.bf16.mxu0 %v11216_v5  ;;  %9835 = vmatprep.subr.bf16.mxu1 %v11129_v44  ;;  %v12029_v44 = vld [vmem:[#allocation22_spill] sm:$0xff] }
 0x2d8   : > { %4882 = vmatprep.mubr.f32.mxu0 %v12015_v52  ;;  %4953 = vmatprep.mubr.f32.mxu1 %v12015_v52  ;;  %v5602_v5 = vld [vmem:[#allocation8 + $0x100] sm:$0xff] }
 0x2da   : > { %9829 = vmatpush1.bf16.msra.mxu0 %v11226_v34  ;;  %9837 = vmatpush1.bf16.msra.mxu1 %v11140_v55  ;;  %v12030_v55 = vld [vmem:[#allocation30_spill] sm:$0xff]  ;;  %v11454_v34 = vpack.c.bf16 %v5605_v31, %v5597_v0 }
 0x2db   : > { %9839 = vmatprep.subr.bf16.mxu0 %v11232_v23  ;;  %9847 = vmatprep.subr.bf16.mxu1 %v11146_v2  ;;  %v12032_v2 = vld [vmem:[#allocation31_spill] sm:$0xff]  ;;  %v11456_v23 = vpack.c.bf16 %v5602_v5, %v5594_v3 }
 0x2dd   : > { %8886 = vmatmul.mubr.msk.f32.vlgmr.msra.gmra.mrb[34].mxu0 %vm2464_vm1, %v11331_v8  ;;  %8887 = vmatmul.mubr.msk.f32.vlgmr.msra.gmra.mrb[34].mxu1 %vm2464_vm1, %v11331_v8 }
 0x2de   : > { %9841 = vmatpush1.bf16.msra.mxu0 %v11238_v19  ;;  %9849 = vmatpush1.bf16.msra.mxu1 %v11154_v14  ;;  %v12034_v14 = vld [vmem:[#allocation32_spill] sm:$0xff] }
 0x2df   : > { %9843 = vmatprep.subr.bf16.mxu0 %v11244_v6  ;;  %9851 = vmatprep.subr.bf16.mxu1 %v11159_v22  ;;  %v12036_v22 = vmov 0.0|0.0   ;;  %v5596_v19 = vld [vmem:[#allocation8 + $0x10] sm:$0xff] }
 0x2e0   : > { %5024 = vmatprep.mubr.f32.mxu0 %v12015_v52  ;;  %5095 = vmatprep.mubr.f32.mxu1 %v12015_v52  ;;  %v5604_v6 = vld [vmem:[#allocation8 + $0x110] sm:$0xff] }
 0x2e2   : > { %9845 = vmatpush1.bf16.msra.mxu0 %v11252_v45  ;;  %9853 = vmatpush1.bf16.msra.mxu1 %v11170_v36  ;;  %v12038_v36 = vld [vmem:[#allocation27_spill] sm:$0xff]  ;;  %v11459_v45 = vpack.c.bf16 %v5604_v6, %v5596_v19 }
 0x2e3   : > { %9855 = vmatprep.subr.bf16.mxu0 %v11258_v1  ;;  %9863 = vmatprep.subr.bf16.mxu1 %v12023_v62  ;;  %v5611_v1 = vld [vmem:[#allocation8 + $0x208] sm:$0xff] }
 0x2e5   : > { %8888 = vmatmul.mubr.msk.f32.vlgmr.msra.gmra.mrb[42].mxu0 %vm2464_vm1, %v11331_v8  ;;  %8889 = vmatmul.mubr.msk.f32.vlgmr.msra.gmra.mrb[42].mxu1 %vm2464_vm1, %v11331_v8 }
 0x2e6   : > { %9857 = vmatpush1.bf16.msra.mxu0 %v11265_v20  ;;  %9865 = vmatpush1.bf16.msra.mxu1 %v12024_v10  ;;  %v5619_v20 = vld [vmem:[#allocation8 + $0x308] sm:$0xff] }
 0x2e7   : > { %9859 = vmatprep.subr.bf16.mxu0 %v11269_v43  ;;  %9867 = vmatprep.subr.bf16.mxu1 %v12025_v16  ;;  %v5613_v43 = vld [vmem:[#allocation8 + $0x218] sm:$0xff]  ;;  %v11464_v47 = vpack.c.bf16 %v5619_v20, %v5611_v1 }
 0x2e8   : > { %5252 = vmatprep.mubr.f32.mxu0 %v12015_v52  ;;  %5323 = vmatprep.mubr.f32.mxu1 %v12015_v52  ;;  %v11466_v58 = vpack.c.bf16 %v5621_v48, %v5613_v43 }
 0x2ea   : > { %9861 = vmatpush1.bf16.msra.mxu0 %v12026_v38  ;;  %9869 = vmatpush1.bf16.msra.mxu1 %v12027_v33 }
 0x2eb   : > { %9871 = vmatprep.subr.bf16.mxu0 %v12028_v40  ;;  %9879 = vmatprep.subr.bf16.mxu1 %v12029_v44 }
 0x2ed   : > { %8892 = vmatmul.mubr.msk.f32.vlgmr.msra.gmra.mrb[50].mxu0 %vm2464_vm1, %v11331_v8  ;;  %8893 = vmatmul.mubr.msk.f32.vlgmr.msra.gmra.mrb[50].mxu1 %vm2464_vm1, %v11331_v8 }
 0x2ee   : > { %9873 = vmatpush1.bf16.msra.mxu0 %v12030_v55  ;;  %9881 = vmatpush1.bf16.msra.mxu1 %v12031_v56 }
 0x2ef   : > { %9875 = vmatprep.subr.bf16.mxu0 %v12032_v2  ;;  %9883 = vmatprep.subr.bf16.mxu1 %v12033_v12 }
 0x2f0   : > { %5394 = vmatprep.mubr.f32.mxu0 %v12015_v52  ;;  %5465 = vmatprep.mubr.f32.mxu1 %v12015_v52 }
 0x2f2   : > { %9877 = vmatpush1.bf16.msra.mxu0 %v12034_v14  ;;  %9885 = vmatpush1.bf16.msra.mxu1 %v12035_v18 }
 0x2f3   : > { %9886 = vmatprep.subr.bf16.mxu1 %v12036_v22  ;;  %9893 = vmatprep.subr.bf16.mxu0 %v11452_v28 }
 0x2f5   : > { %8894 = vmatmul.mubr.msk.f32.vlgmr.msra.gmra.mrb[58].mxu0 %vm2464_vm1, %v11331_v8  ;;  %8895 = vmatmul.mubr.msk.f32.vlgmr.msra.gmra.mrb[58].mxu1 %vm2464_vm1, %v11331_v8 }
 0x2f6   : > { %9888 = vmatpush3.bf16.msra.mxu1 %v12037_v35  ;;  %9055 = vmatprep.mubr.msk.f32.mxu1 %vm10582_vm2, %v12015_v52 }
 0x2f7   : > { %9889 = vmatprep.subr.bf16.mxu1 %v12036_v22  ;;  %5704 = vmatprep.mubr.f32.mxu0 %v12015_v52 }
 0x2f8   : > { %9895 = vmatpush1.bf16.msra.mxu0 %v11456_v23 }
 0x2f9   : > { %9897 = vmatprep.subr.bf16.mxu0 %v11464_v47 }
 0x2fa   : > { %9891 = vmatpush3.bf16.msra.mxu1 %v12038_v36 }
 0x2fb   : > { %9901 = vmatprep.subr.bf16.mxu1 %v11454_v34 }
 0x2fc   : > { %9899 = vmatpush1.bf16.msra.mxu0 %v11468_v49 }
 0x2fd   : > { %9056 = vmatmul.mubr.msk.f32.vlgmr.msra.gmra.mrb[66].mxu1 %vm2464_vm1, %v11331_v8  ;;  %v5609_v8 = vld [vmem:[#allocation8 + $0x138] sm:$0xff]  ;;  %9909 = vmatprep.subr.bf16.mxu0 %v11476_v4 }
 0x2fe   : > { %5775 = vmatprep.mubr.f32.mxu1 %v12015_v52  ;;  %9903 = vmatpush1.bf16.msra.mxu1 %v11459_v45  ;;  %v11478_v9 = vpack.c.bf16 %v5609_v8, %v5601_v53 }
 0x2ff   : > { %9905 = vmatprep.subr.bf16.mxu1 %v11466_v58 }
 0x302   : > { %9907 = vmatpush1.bf16.msra.mxu1 %v11471_v11 }
 0x303   : > { %9917 = vmatprep.subr.bf16.mxu1 %v11478_v9 }
 0x390   : > { %v4143_v37 = vpop.f32.mrb[2].mxu0  ;;  %v4214_v25 = vpop.f32.mrb[2].mxu1 }
 0x391   : > { %v4145_v7 = vpop.f32.mrb[3].mxu0  ;;  %v4216_v27 = vpop.f32.mrb[3].mxu1 }
 0x392   : > { %v4369_v13 = vcombine.low %v4143_v37, %v4145_v7  ;;  %v4370_v21 = vcombine.low %v4214_v25, %v4216_v27 }
 0x394   : > { %v4377_v26 = vrot.slane %v4369_v13, %v11314_v15  ;;  %v4384_v29 = vrot.slane %v4370_v21, %v11314_v15 }
 0x396   : > { %v4385_v32 = vcombine.low %v4377_v26, %v4384_v29 }
 0x398   : > { %8878 = vst [vmem:[%s10836_s6 + $0x40] sm:$0xff] %v4385_v32  ;;  %v4285_v39 = vpop.f32.mrb[10].mxu0  ;;  %v4356_v41 = vpop.f32.mrb[10].mxu1 }
 0x399   : > { %v4287_v42 = vpop.f32.mrb[11].mxu0  ;;  %v4358_v54 = vpop.f32.mrb[11].mxu1 }
 0x39a   : > { %v4386_v46 = vcombine.low %v4285_v39, %v4287_v42  ;;  %v4387_v50 = vcombine.low %v4356_v41, %v4358_v54 }
 0x39c   : > { %v4394_v57 = vrot.slane %v4386_v46, %v11314_v15  ;;  %v4401_v62 = vrot.slane %v4387_v50, %v11314_v15 }
 0x39e   : > { %v4402_v10 = vcombine.low %v4394_v57, %v4401_v62 }
 0x3a0   : > { %8879 = vst [vmem:[%s10836_s6 + $0x48] sm:$0xff] %v4402_v10  ;;  %v4514_v16 = vpop.f32.mrb[18].mxu0  ;;  %v4585_v38 = vpop.f32.mrb[18].mxu1 }
 0x3a1   : > { %v4516_v33 = vpop.f32.mrb[19].mxu0  ;;  %v4587_v40 = vpop.f32.mrb[19].mxu1 }
 0x3a2   : > { %v4740_v44 = vcombine.low %v4514_v16, %v4516_v33  ;;  %v4741_v55 = vcombine.low %v4585_v38, %v4587_v40  ;;  %v5598_v33 = vld [vmem:[#allocation8 + $0x20] sm:$0xff] }
 0x3a3   : > { %v5606_v40 = vld [vmem:[#allocation8 + $0x120] sm:$0xff] }
 0x3a4   : > { %v4748_v56 = vrot.slane %v4740_v44, %v11314_v15  ;;  %v4755_v2 = vrot.slane %v4741_v55, %v11314_v15  ;;  %v5600_v44 = vld [vmem:[#allocation8 + $0x30] sm:$0xff] }
 0x3a5   : > { %v5608_v55 = vld [vmem:[#allocation8 + $0x130] sm:$0xff] }
 0x3a6   : > { %v4756_v12 = vcombine.low %v4748_v56, %v4755_v2  ;;  %v5615_v56 = vld [vmem:[#allocation8 + $0x228] sm:$0xff] }
 0x3a8   : > { %8884 = vst [vmem:[%s10836_s6 + $0x50] sm:$0xff] %v4756_v12  ;;  %v4656_v14 = vpop.f32.mrb[26].mxu0  ;;  %v4727_v18 = vpop.f32.mrb[26].mxu1  ;;  %v5623_v12 = vld [vmem:[#allocation8 + $0x328] sm:$0xff] }
 0x3a9   : > { %v4658_v35 = vpop.f32.mrb[27].mxu0  ;;  %v4729_v36 = vpop.f32.mrb[27].mxu1 }
 0x3aa   : > { %v4757_v51 = vcombine.low %v4656_v14, %v4658_v35  ;;  %v4758_v60 = vcombine.low %v4727_v18, %v4729_v36  ;;  %v5617_v14 = vld [vmem:[#allocation8 + $0x238] sm:$0xff]  ;;  %v5523_v35 = vld [vmem:[#allocation4 + $0x8] sm:$0xff] }
 0x3ab   : > { %v5625_v18 = vld [vmem:[#allocation8 + $0x338] sm:$0xff] }
 0x3ac   : > { %v4765_v0 = vrot.slane %v4757_v51, %v11314_v15  ;;  %v4772_v31 = vrot.slane %v4758_v60, %v11314_v15  ;;  %v11506_v51 = vpack.c.bf16 %v5606_v40, %v5598_v33  ;;  %v11508_v60 = vpack.c.bf16 %v5608_v55, %v5600_v44  ;;  %v5975_v33 = vld [vmem:[#allocation8 + $0x60] sm:$0xff] }
 0x3ad   : > { %v5983_v40 = vld [vmem:[#allocation8 + $0x160] sm:$0xff] }
 0x3ae   : > { %v4773_v3 = vcombine.low %v4765_v0, %v4772_v31  ;;  %v5614_v0 = vld [vmem:[#allocation8 + $0x220] sm:$0xff] }
 0x3af   : > { %v5622_v31 = vld [vmem:[#allocation8 + $0x320] sm:$0xff] }
 0x3b0   : > { %8885 = vst [vmem:[%s10836_s6 + $0x58] sm:$0xff] %v4773_v3  ;;  %v4884_v5 = vpop.f32.mrb[34].mxu0  ;;  %v4955_v19 = vpop.f32.mrb[34].mxu1 }
 0x3b1   : > { %v4886_v6 = vpop.f32.mrb[35].mxu0  ;;  %v4957_v1 = vpop.f32.mrb[35].mxu1 }
 0x3b2   : > { %v5110_v20 = vcombine.low %v4884_v5, %v4886_v6  ;;  %v5111_v43 = vcombine.low %v4955_v19, %v4957_v1  ;;  %v11512_v19 = vpack.c.bf16 %v5623_v12, %v5615_v56  ;;  %v11514_v6 = vpack.c.bf16 %v5625_v18, %v5617_v14  ;;  %v5616_v1 = vld [vmem:[#allocation8 + $0x230] sm:$0xff]  ;;  %v5992_v12 = vld [vmem:[#allocation8 + $0x268] sm:$0xff]  ;;  %v5994_v18 = vld [vmem:[#allocation8 + $0x278] sm:$0xff] }
 0x3b3   : > { %v5977_v56 = vld [vmem:[#allocation8 + $0x70] sm:$0xff]  ;;  %v6000_v14 = vld [vmem:[#allocation8 + $0x368] sm:$0xff] }
 0x3b4   : > { %v5118_v48 = vrot.slane %v5110_v20, %v11314_v15  ;;  %v5125_v63 = vrot.slane %v5111_v43, %v11314_v15  ;;  %v5624_v20 = vld [vmem:[#allocation8 + $0x330] sm:$0xff]  ;;  %v5972_v43 = vld [vmem:[#allocation8 + $0x48] sm:$0xff] }
 0x3b6   : > { %v5126_v17 = vcombine.low %v5118_v48, %v5125_v63  ;;  %v5980_v48 = vld [vmem:[#allocation8 + $0x148] sm:$0xff]  ;;  %v5974_v63 = vld [vmem:[#allocation8 + $0x58] sm:$0xff] }
 0x3b8   : > { %8890 = vst [vmem:[%s10836_s6 + $0x60] sm:$0xff] %v5126_v17  ;;  %v5026_v30 = vpop.f32.mrb[42].mxu0  ;;  %v5097_v59 = vpop.f32.mrb[42].mxu1  ;;  %v5982_v17 = vld [vmem:[#allocation8 + $0x158] sm:$0xff] }
 0x3b9   : > { %v5028_v61 = vpop.f32.mrb[43].mxu0  ;;  %v5099_v24 = vpop.f32.mrb[43].mxu1 }
 0x3ba   : > { %v5127_v53 = vcombine.low %v5026_v30, %v5028_v61  ;;  %v5128_v8 = vcombine.low %v5097_v59, %v5099_v24  ;;  %v11522_v30 = vpack.c.bf16 %v5622_v31, %v5614_v0  ;;  %v11524_v59 = vpack.c.bf16 %v5624_v20, %v5616_v1  ;;  %v5971_v61 = vld [vmem:[#allocation8 + $0x40] sm:$0xff] }
 0x3bb   : > { %v5979_v24 = vld [vmem:[#allocation8 + $0x140] sm:$0xff]  ;;  %v11572_v1 = vpack.c.bf16 %v6000_v14, %v5992_v12  ;;  %v6359_v12 = vld [vmem:[#allocation8 + $0x290] sm:$0xff] }
 0x3bc   : > { %v5135_v37 = vrot.slane %v5127_v53, %v11314_v15  ;;  %v5142_v25 = vrot.slane %v5128_v8, %v11314_v15  ;;  %v11528_v53 = vpack.c.bf16 %v5980_v48, %v5972_v43  ;;  %v11530_v8 = vpack.c.bf16 %v5982_v17, %v5974_v63  ;;  %v5991_v31 = vld [vmem:[#allocation8 + $0x260] sm:$0xff]  ;;  %v5993_v43 = vld [vmem:[#allocation8 + $0x270] sm:$0xff]  ;;  %v6342_v63 = vld [vmem:[#allocation8 + $0x88] sm:$0xff] }
 0x3bd   : > { %v6001_v48 = vld [vmem:[#allocation8 + $0x370] sm:$0xff]  ;;  %v6350_v17 = vld [vmem:[#allocation8 + $0x188] sm:$0xff] }
 0x3be   : > { %v5143_v7 = vcombine.low %v5135_v37, %v5142_v25  ;;  %v5973_v37 = vld [vmem:[#allocation8 + $0x50] sm:$0xff] }
 0x3bf   : > { %v5981_v25 = vld [vmem:[#allocation8 + $0x150] sm:$0xff] }
 0x3c0   : > { %8891 = vst [vmem:[%s10836_s6 + $0x68] sm:$0xff] %v5143_v7  ;;  %v5254_v27 = vpop.f32.mrb[50].mxu0  ;;  %v5325_v13 = vpop.f32.mrb[50].mxu1  ;;  %v5988_v7 = vld [vmem:[#allocation8 + $0x248] sm:$0xff]  ;;  %v6367_v14 = vld [vmem:[#allocation8 + $0x390] sm:$0xff] }
 0x3c1   : > { %v5256_v21 = vpop.f32.mrb[51].mxu0  ;;  %v5327_v26 = vpop.f32.mrb[51].mxu1 }
 0x3c2   : > { %v5480_v29 = vcombine.low %v5254_v27, %v5256_v21  ;;  %v5481_v32 = vcombine.low %v5325_v13, %v5327_v26  ;;  %v5996_v27 = vld [vmem:[#allocation8 + $0x348] sm:$0xff]  ;;  %v5990_v13 = vld [vmem:[#allocation8 + $0x258] sm:$0xff]  ;;  %v11536_v26 = vpack.c.bf16 %v5979_v24, %v5971_v61 }
 0x3c3   : > { %v5998_v21 = vld [vmem:[#allocation8 + $0x358] sm:$0xff] }
 0x3c4   : > { %v5488_v39 = vrot.slane %v5480_v29, %v11314_v15  ;;  %v5495_v41 = vrot.slane %v5481_v32, %v11314_v15  ;;  %v11538_v29 = vpack.c.bf16 %v5981_v25, %v5973_v37  ;;  %v5987_v32 = vld [vmem:[#allocation8 + $0x240] sm:$0xff]  ;;  %v6344_v61 = vld [vmem:[#allocation8 + $0x98] sm:$0xff]  ;;  %v11584_v25 = vpack.c.bf16 %v6001_v48, %v5993_v43 }
 0x3c5   : > { %v6352_v24 = vld [vmem:[#allocation8 + $0x198] sm:$0xff]  ;;  %v11614_v48 = vpack.c.bf16 %v6367_v14, %v6359_v12 }
 0x3c6   : > { %v5496_v42 = vcombine.low %v5488_v39, %v5495_v41  ;;  %v5995_v39 = vld [vmem:[#allocation8 + $0x340] sm:$0xff]  ;;  %v11542_v41 = vpack.c.bf16 %v5996_v27, %v5988_v7 }
 0x3c7   : > { %v6341_v7 = vld [vmem:[#allocation8 + $0x80] sm:$0xff]  ;;  %12040 = vst [vmem:[#allocation19_spill] sm:$0xff] %v11614_v48 }
 0x3c8   : > { %8896 = vst [vmem:[%s10836_s6 + $0x70] sm:$0xff] %v5496_v42  ;;  %v5396_v54 = vpop.f32.mrb[58].mxu0  ;;  %v5467_v46 = vpop.f32.mrb[58].mxu1  ;;  %v11544_v42 = vpack.c.bf16 %v5998_v21, %v5990_v13  ;;  %v6349_v27 = vld [vmem:[#allocation8 + $0x180] sm:$0xff]  ;;  %v11588_v13 = vpack.c.bf16 %v6350_v17, %v6342_v63  ;;  %v11590_v21 = vpack.c.bf16 %v6352_v24, %v6344_v61 }
 0x3c9   : > { %v5398_v50 = vpop.f32.mrb[59].mxu0  ;;  %v5469_v57 = vpop.f32.mrb[59].mxu1  ;;  %v6345_v63 = vld [vmem:[#allocation8 + $0xa0] sm:$0xff] }
 0x3ca   : > { %v5497_v62 = vcombine.low %v5396_v54, %v5398_v50  ;;  %v5498_v10 = vcombine.low %v5467_v46, %v5469_v57  ;;  %v5989_v54 = vld [vmem:[#allocation8 + $0x250] sm:$0xff]  ;;  %v5976_v50 = vld [vmem:[#allocation8 + $0x68] sm:$0xff]  ;;  %v6353_v17 = vld [vmem:[#allocation8 + $0x1a0] sm:$0xff] }
 0x3cb   : > { %v5997_v46 = vld [vmem:[#allocation8 + $0x350] sm:$0xff]  ;;  %v5984_v57 = vld [vmem:[#allocation8 + $0x168] sm:$0xff] }
 0x3cc   : > { %v5505_v16 = vrot.slane %v5497_v62, %v11314_v15  ;;  %v5512_v38 = vrot.slane %v5498_v10, %v11314_v15  ;;  %v5978_v62 = vld [vmem:[#allocation8 + $0x78] sm:$0xff]  ;;  %v11558_v44 = vpack.c.bf16 %v5984_v57, %v5976_v50 }
 0x3cd   : > { %v5986_v10 = vld [vmem:[#allocation8 + $0x178] sm:$0xff] }
 0x3ce   : > { %v5513_v2 = vcombine.low %v5505_v16, %v5512_v38  ;;  %v11552_v16 = vpack.c.bf16 %v5995_v39, %v5987_v32  ;;  %v11554_v38 = vpack.c.bf16 %v5997_v46, %v5989_v54  ;;  %v11560_v55 = vpack.c.bf16 %v5986_v10, %v5978_v62  ;;  %v6343_v32 = vld [vmem:[#allocation8 + $0x90] sm:$0xff]  ;;  %v6358_v54 = vld [vmem:[#allocation8 + $0x288] sm:$0xff]  ;;  %v6360_v50 = vld [vmem:[#allocation8 + $0x298] sm:$0xff] }
 0x3cf   : > { %v6351_v39 = vld [vmem:[#allocation8 + $0x190] sm:$0xff]  ;;  %v6366_v46 = vld [vmem:[#allocation8 + $0x388] sm:$0xff]  ;;  %v6368_v57 = vld [vmem:[#allocation8 + $0x398] sm:$0xff]  ;;  %v11596_v62 = vpack.c.bf16 %v6349_v27, %v6341_v7 }
 0x3d0   : > { %8897 = vst [vmem:[%s10836_s6 + $0x78] sm:$0xff] %v5513_v2  ;;  %v5590_v36 = vpop.f32.mrb[66].mxu1  ;;  %v5985_v2 = vld [vmem:[#allocation8 + $0x170] sm:$0xff]  ;;  %v11598_v10 = vpack.c.bf16 %v6351_v39, %v6343_v32  ;;  %v6362_v32 = vld [vmem:[#allocation8 + $0x2a8] sm:$0xff] }
 0x3d1   : > { %v11510_v3 = vadd.f32 %v5590_v36, %v5523_v35  ;;  %v9057_v5 = vpop.f32.mrb[67].mxu1  ;;  %v6002_v35 = vld [vmem:[#allocation8 + $0x378] sm:$0xff]  ;;  %v11566_v36 = vpack.c.bf16 %v5983_v40, %v5975_v33  ;;  %v11568_v0 = vpack.c.bf16 %v5985_v2, %v5977_v56  ;;  %v6357_v33 = vld [vmem:[#allocation8 + $0x280] sm:$0xff]  ;;  %v11602_v56 = vpack.c.bf16 %v6366_v46, %v6358_v54  ;;  %v6347_v7 = vld [vmem:[#allocation8 + $0xb0] sm:$0xff] }
 0x3d2   : > { %v5999_v5 = vld [vmem:[#allocation8 + $0x360] sm:$0xff]  ;;  %v11574_v20 = vpack.c.bf16 %v6002_v35, %v5994_v18  ;;  %v11604_v2 = vpack.c.bf16 %v6368_v57, %v6360_v50  ;;  %v6346_v18 = vld [vmem:[#allocation8 + $0xa8] sm:$0xff]  ;;  %v6355_v27 = vld [vmem:[#allocation8 + $0x1b0] sm:$0xff]  ;;  %v11626_v50 = vpack.c.bf16 %v6353_v17, %v6345_v63 }
 0x3d3   : > { %8899 = vmatmul.mubr.msk.f32.vlgmr.msra.gmra.mrb[4].mxu0 %vm2464_vm1, %v11510_v3  ;;  %8900 = vmatmul.mubr.msk.f32.vlgmr.msra.gmra.mrb[4].mxu1 %vm2464_vm1, %v11510_v3  ;;  %v11582_v37 = vpack.c.bf16 %v5999_v5, %v5991_v31  ;;  %v6365_v40 = vld [vmem:[#allocation8 + $0x380] sm:$0xff]  ;;  %v6354_v35 = vld [vmem:[#allocation8 + $0x1a8] sm:$0xff]  ;;  %v6348_v31 = vld [vmem:[#allocation8 + $0xb8] sm:$0xff]  ;;  %v11628_v57 = vpack.c.bf16 %v6355_v27, %v6347_v7 }
 0x3d4   : > { %9911 = vmatpush1.bf16.msra.mxu0 %v11506_v51  ;;  %9919 = vmatpush1.bf16.msra.mxu1 %v11508_v60  ;;  %v6356_v5 = vld [vmem:[#allocation8 + $0x1b8] sm:$0xff]  ;;  %v11612_v43 = vpack.c.bf16 %v6365_v40, %v6357_v33  ;;  %v11618_v61 = vpack.c.bf16 %v6354_v35, %v6346_v18  ;;  %v6370_v39 = vld [vmem:[#allocation8 + $0x3a8] sm:$0xff]  ;;  %12043 = vst [vmem:[#allocation21_spill] sm:$0xff] %v11626_v50  ;;  %v6361_v33 = vld [vmem:[#allocation8 + $0x2a0] sm:$0xff] }
 0x3d5   : > { %9913 = vmatprep.subr.bf16.mxu0 %v11512_v19  ;;  %9921 = vmatprep.subr.bf16.mxu1 %v11514_v6  ;;  %v11620_v24 = vpack.c.bf16 %v6356_v5, %v6348_v31  ;;  %v6364_v54 = vld [vmem:[#allocation8 + $0x2b8] sm:$0xff]  ;;  %12044 = vst [vmem:[#allocation29_spill] sm:$0xff] %v11628_v57  ;;  %v6369_v40 = vld [vmem:[#allocation8 + $0x3a0] sm:$0xff]  ;;  %v11632_v12 = vpack.c.bf16 %v6370_v39, %v6362_v32  ;;  %v6363_v18 = vld [vmem:[#allocation8 + $0x2b0] sm:$0xff] }
 0x3d6   : > { %5846 = vmatprep.mubr.f32.mxu0 %v12015_v52  ;;  %5917 = vmatprep.mubr.f32.mxu1 %v12015_v52  ;;  %12039 = vst [vmem:[#allocation18_spill] sm:$0xff] %v11612_v43  ;;  %12041 = vst [vmem:[#allocation20_spill] sm:$0xff] %v11618_v61  ;;  %v6372_v46 = vld [vmem:[#allocation8 + $0x3b8] sm:$0xff]  ;;  %v6371_v35 = vld [vmem:[#allocation8 + $0x3b0] sm:$0xff]  ;;  %v11642_v63 = vpack.c.bf16 %v6369_v40, %v6361_v33 }
 0x3d7   : > { %12042 = vst [vmem:[#allocation28_spill] sm:$0xff] %v11620_v24  ;;  %12045 = vst [vmem:[#allocation22_spill] sm:$0xff] %v11632_v12  ;;  %v11634_v14 = vpack.c.bf16 %v6372_v46, %v6364_v54  ;;  %v6712_v31 = vld [vmem:[#allocation8 + $0xc8] sm:$0xff]  ;;  %v11644_v17 = vpack.c.bf16 %v6371_v35, %v6363_v18  ;;  %v6711_v7 = vld [vmem:[#allocation8 + $0xc0] sm:$0xff] }
 0x3d8   : > { %9915 = vmatpush1.bf16.msra.mxu0 %v11522_v30  ;;  %9923 = vmatpush1.bf16.msra.mxu1 %v11524_v59  ;;  %v6720_v5 = vld [vmem:[#allocation8 + $0x1c8] sm:$0xff]  ;;  %12047 = vst [vmem:[#allocation23_spill] sm:$0xff] %v11642_v63  ;;  %v6719_v27 = vld [vmem:[#allocation8 + $0x1c0] sm:$0xff]  ;;  %v6713_v54 = vld [vmem:[#allocation8 + $0xd0] sm:$0xff] }
 0x3d9   : > { %9925 = vmatprep.subr.bf16.mxu0 %v11528_v53  ;;  %9933 = vmatprep.subr.bf16.mxu1 %v11530_v8  ;;  %12046 = vst [vmem:[#allocation30_spill] sm:$0xff] %v11634_v14  ;;  %12048 = vst [vmem:[#allocation31_spill] sm:$0xff] %v11644_v17  ;;  %v11648_v32 = vpack.c.bf16 %v6720_v5, %v6712_v31  ;;  %v6721_v46 = vld [vmem:[#allocation8 + $0x1d0] sm:$0xff]  ;;  %v6736_v33 = vld [vmem:[#allocation8 + $0x3c8] sm:$0xff]  ;;  %v11656_v35 = vpack.c.bf16 %v6719_v27, %v6711_v7 }
 0x3da   : > { %v6730_v40 = vld [vmem:[#allocation8 + $0x2d8] sm:$0xff]  ;;  %v11658_v31 = vpack.c.bf16 %v6721_v46, %v6713_v54  ;;  %v6715_v27 = vld [vmem:[#allocation8 + $0xe0] sm:$0xff] }
 0x3db   : > { %8901 = vmatmul.mubr.msk.f32.vlgmr.msra.gmra.mrb[12].mxu0 %vm2464_vm1, %v11510_v3  ;;  %8902 = vmatmul.mubr.msk.f32.vlgmr.msra.gmra.mrb[12].mxu1 %vm2464_vm1, %v11510_v3  ;;  %v6738_v18 = vld [vmem:[#allocation8 + $0x3d8] sm:$0xff]  ;;  %v6723_v54 = vld [vmem:[#allocation8 + $0x1e0] sm:$0xff] }
 0x3dc   : > { %9927 = vmatpush1.bf16.msra.mxu0 %v11536_v26  ;;  %9935 = vmatpush1.bf16.msra.mxu1 %v11538_v29  ;;  %12050 = vst [vmem:[#allocation32_spill] sm:$0xff] %v11658_v31 }
 0x3dd   : > { %9929 = vmatprep.subr.bf16.mxu0 %v11542_v41  ;;  %9937 = vmatprep.subr.bf16.mxu1 %v11544_v42 }
 0x3de   : > { %6075 = vmatprep.mubr.f32.mxu0 %v12015_v52  ;;  %6146 = vmatprep.mubr.f32.mxu1 %v12015_v52 }
 0x3e0   : > { %9931 = vmatpush1.bf16.msra.mxu0 %v11552_v16  ;;  %9939 = vmatpush1.bf16.msra.mxu1 %v11554_v38 }
 0x3e1   : > { %9941 = vmatprep.subr.bf16.mxu0 %v11558_v44  ;;  %9949 = vmatprep.subr.bf16.mxu1 %v11560_v55 }
 0x3e3   : > { %8905 = vmatmul.mubr.msk.f32.vlgmr.msra.gmra.mrb[20].mxu0 %vm2464_vm1, %v11510_v3  ;;  %8906 = vmatmul.mubr.msk.f32.vlgmr.msra.gmra.mrb[20].mxu1 %vm2464_vm1, %v11510_v3 }
 0x3e4   : > { %9943 = vmatpush1.bf16.msra.mxu0 %v11566_v36  ;;  %9951 = vmatpush1.bf16.msra.mxu1 %v11568_v0 }
 0x3e5   : > { %9945 = vmatprep.subr.bf16.mxu0 %v11572_v1  ;;  %9953 = vmatprep.subr.bf16.mxu1 %v11574_v20 }
 0x3e6   : > { %6217 = vmatprep.mubr.f32.mxu0 %v12015_v52  ;;  %6288 = vmatprep.mubr.f32.mxu1 %v12015_v52 }
 0x3e8   : > { %9947 = vmatpush1.bf16.msra.mxu0 %v11582_v37  ;;  %9955 = vmatpush1.bf16.msra.mxu1 %v11584_v25 }
 0x3e9   : > { %9957 = vmatprep.subr.bf16.mxu0 %v11588_v13  ;;  %9965 = vmatprep.subr.bf16.mxu1 %v11590_v21 }
 0x3eb   : > { %8907 = vmatmul.mubr.msk.f32.vlgmr.msra.gmra.mrb[28].mxu0 %vm2464_vm1, %v11510_v3  ;;  %8908 = vmatmul.mubr.msk.f32.vlgmr.msra.gmra.mrb[28].mxu1 %vm2464_vm1, %v11510_v3 }
 0x3ec   : > { %9959 = vmatpush1.bf16.msra.mxu0 %v11596_v62  ;;  %9967 = vmatpush1.bf16.msra.mxu1 %v11598_v10 }
 0x3ed   : > { %9961 = vmatprep.subr.bf16.mxu0 %v11602_v56  ;;  %9969 = vmatprep.subr.bf16.mxu1 %v11604_v2 }
 0x3ee   : > { %6445 = vmatprep.mubr.f32.mxu0 %v12015_v52  ;;  %6516 = vmatprep.mubr.f32.mxu1 %v12015_v52 }
 0x3f0   : > { %9963 = vmatpush1.bf16.msra.mxu0 %v11612_v43  ;;  %9971 = vmatpush1.bf16.msra.mxu1 %v11614_v48  ;;  %v6714_v43 = vld [vmem:[#allocation8 + $0xd8] sm:$0xff] }
 0x3f1   : > { %9973 = vmatprep.subr.bf16.mxu0 %v11618_v61  ;;  %9981 = vmatprep.subr.bf16.mxu1 %v11620_v24  ;;  %v6722_v48 = vld [vmem:[#allocation8 + $0x1d8] sm:$0xff]  ;;  %v6728_v24 = vld [vmem:[#allocation8 + $0x2c8] sm:$0xff] }
 0x3f2   : > { %v11650_v39 = vpack.c.bf16 %v6722_v48, %v6714_v43  ;;  %v6727_v43 = vld [vmem:[#allocation8 + $0x2c0] sm:$0xff]  ;;  %v11662_v5 = vpack.c.bf16 %v6736_v33, %v6728_v24  ;;  %v6718_v61 = vld [vmem:[#allocation8 + $0xf8] sm:$0xff] }
 0x3f3   : > { %8911 = vmatmul.mubr.msk.f32.vlgmr.msra.gmra.mrb[36].mxu0 %vm2464_vm1, %v11510_v3  ;;  %8912 = vmatmul.mubr.msk.f32.vlgmr.msra.gmra.mrb[36].mxu1 %vm2464_vm1, %v11510_v3  ;;  %v6735_v48 = vld [vmem:[#allocation8 + $0x3c0] sm:$0xff] }
 0x3f4   : > { %9975 = vmatpush1.bf16.msra.mxu0 %v11626_v50  ;;  %9983 = vmatpush1.bf16.msra.mxu1 %v11628_v57  ;;  %12049 = vst [vmem:[#allocation24_spill] sm:$0xff] %v11650_v39  ;;  %12051 = vst [vmem:[#allocation25_spill] sm:$0xff] %v11662_v5  ;;  %v6737_v57 = vld [vmem:[#allocation8 + $0x3d0] sm:$0xff]  ;;  %v6716_v50 = vld [vmem:[#allocation8 + $0xe8] sm:$0xff]  ;;  %v11672_v24 = vpack.c.bf16 %v6735_v48, %v6727_v43  ;;  %v11686_v48 = vpack.c.bf16 %v6723_v54, %v6715_v27 }
 0x3f5   : > { %9977 = vmatprep.subr.bf16.mxu0 %v11632_v12  ;;  %9985 = vmatprep.subr.bf16.mxu1 %v11634_v14  ;;  %v11664_v14 = vpack.c.bf16 %v6738_v18, %v6730_v40  ;;  %v6729_v12 = vld [vmem:[#allocation8 + $0x2d0] sm:$0xff]  ;;  %v6740_v43 = vld [vmem:[#allocation8 + $0x3e8] sm:$0xff] }
 0x3f6   : > { %6587 = vmatprep.mubr.f32.mxu0 %v12015_v52  ;;  %6658 = vmatprep.mubr.f32.mxu1 %v12015_v52  ;;  %v11674_v7 = vpack.c.bf16 %v6737_v57, %v6729_v12  ;;  %v6717_v40 = vld [vmem:[#allocation8 + $0xf0] sm:$0xff]  ;;  %v6734_v57 = vld [vmem:[#allocation8 + $0x2f8] sm:$0xff] }
 0x3f7   : > { %12052 = vst [vmem:[#allocation26_spill] sm:$0xff] %v11664_v14  ;;  %v6725_v18 = vld [vmem:[#allocation8 + $0x1f0] sm:$0xff]  ;;  %v6742_v12 = vld [vmem:[#allocation8 + $0x3f8] sm:$0xff] }
 0x3f8   : > { %9979 = vmatpush1.bf16.msra.mxu0 %v11642_v63  ;;  %9987 = vmatpush1.bf16.msra.mxu1 %v11644_v17  ;;  %v6724_v63 = vld [vmem:[#allocation8 + $0x1e8] sm:$0xff]  ;;  %v6726_v17 = vld [vmem:[#allocation8 + $0x1f8] sm:$0xff] }
 0x3f9   : > { %9989 = vmatprep.subr.bf16.mxu0 %v11648_v32  ;;  %9997 = vmatprep.subr.bf16.mxu1 %v11650_v39  ;;  %v11678_v46 = vpack.c.bf16 %v6724_v63, %v6716_v50  ;;  %v11680_v33 = vpack.c.bf16 %v6726_v17, %v6718_v61  ;;  %v6732_v39 = vld [vmem:[#allocation8 + $0x2e8] sm:$0xff]  ;;  %v11688_v50 = vpack.c.bf16 %v6725_v18, %v6717_v40  ;;  %v6731_v61 = vld [vmem:[#allocation8 + $0x2e0] sm:$0xff] }
 0x3fa   : > { %v11692_v63 = vpack.c.bf16 %v6740_v43, %v6732_v39  ;;  %v11694_v17 = vpack.c.bf16 %v6742_v12, %v6734_v57  ;;  %v7081_v39 = vld [vmem:[#allocation11] sm:$0xff]  ;;  %v7082_v40 = vld [vmem:[#allocation11 + $0x8] sm:$0xff] }
 0x3fb   : > { %8913 = vmatmul.mubr.msk.f32.vlgmr.msra.gmra.mrb[44].mxu0 %vm2464_vm1, %v11510_v3  ;;  %8914 = vmatmul.mubr.msk.f32.vlgmr.msra.gmra.mrb[44].mxu1 %vm2464_vm1, %v11510_v3  ;;  %v11712_v18 = vpack.c.bf16 %v7082_v40, %v7081_v39 }
 0x3fc   : > { %9991 = vmatpush1.bf16.msra.mxu0 %v11656_v35  ;;  %9999 = vmatpush1.bf16.msra.mxu1 %v11658_v31  ;;  %v6741_v31 = vld [vmem:[#allocation8 + $0x3f0] sm:$0xff] }
 0x3fd   : > { %9993 = vmatprep.subr.bf16.mxu0 %v11662_v5  ;;  %10001 = vmatprep.subr.bf16.mxu1 %v11664_v14  ;;  %v6739_v14 = vld [vmem:[#allocation8 + $0x3e0] sm:$0xff]  ;;  %v6733_v5 = vld [vmem:[#allocation8 + $0x2f0] sm:$0xff] }
 0x3fe   : > { %6815 = vmatprep.mubr.f32.mxu0 %v12015_v52  ;;  %6886 = vmatprep.mubr.f32.mxu1 %v12015_v52  ;;  %v11702_v27 = vpack.c.bf16 %v6739_v14, %v6731_v61  ;;  %v11704_v54 = vpack.c.bf16 %v6741_v31, %v6733_v5  ;;  %v7083_v14 = vld [vmem:[#allocation11 + $0x10] sm:$0xff]  ;;  %v7084_v31 = vld [vmem:[#allocation11 + $0x18] sm:$0xff] }
 0x3ff   : > { %v11721_v5 = vpack.c.bf16 %v7084_v31, %v7083_v14 }
 0x400   : > { %9995 = vmatpush1.bf16.msra.mxu0 %v11672_v24  ;;  %10003 = vmatpush1.bf16.msra.mxu1 %v11674_v7 }
 0x401   : > { %10005 = vmatprep.subr.bf16.mxu0 %v11678_v46  ;;  %10013 = vmatprep.subr.bf16.mxu1 %v11680_v33 }
 0x403   : > { %8917 = vmatmul.mubr.msk.f32.vlgmr.msra.gmra.mrb[52].mxu0 %vm2464_vm1, %v11510_v3  ;;  %8918 = vmatmul.mubr.msk.f32.vlgmr.msra.gmra.mrb[52].mxu1 %vm2464_vm1, %v11510_v3 }
 0x404   : > { %10007 = vmatpush1.bf16.msra.mxu0 %v11686_v48  ;;  %10015 = vmatpush1.bf16.msra.mxu1 %v11688_v50 }
 0x405   : > { %10009 = vmatprep.subr.bf16.mxu0 %v11692_v63  ;;  %10017 = vmatprep.subr.bf16.mxu1 %v11694_v17 }
 0x406   : > { %6957 = vmatprep.mubr.f32.mxu0 %v12015_v52  ;;  %7028 = vmatprep.mubr.f32.mxu1 %v12015_v52 }
 0x408   : > { %10011 = vmatpush1.bf16.msra.mxu0 %v11702_v27  ;;  %10019 = vmatpush1.bf16.msra.mxu1 %v11704_v54 }
 0x409   : > { %10020 = vmatprep.subr.bf16.mxu1 %v12036_v22  ;;  %10027 = vmatprep.subr.bf16.mxu0 %v11452_v28 }
 0x40b   : > { %8919 = vmatmul.mubr.msk.f32.vlgmr.msra.gmra.mrb[60].mxu0 %vm2464_vm1, %v11510_v3  ;;  %8920 = vmatmul.mubr.msk.f32.vlgmr.msra.gmra.mrb[60].mxu1 %vm2464_vm1, %v11510_v3 }
 0x40c   : > { %10022 = vmatpush3.bf16.msra.mxu1 %v11712_v18  ;;  %9066 = vmatprep.mubr.msk.f32.mxu1 %vm10582_vm2, %v12015_v52 }
 0x40d   : > { %10023 = vmatprep.subr.bf16.mxu1 %v12036_v22  ;;  %10029 = vmatpush1.bf16.msra.mxu0 %v11456_v23 }
 0x40e   : > { %10031 = vmatprep.subr.bf16.mxu0 %v11464_v47  ;;  %7267 = vmatprep.mubr.f32.mxu0 %v12015_v52 }
 0x410   : > { %10025 = vmatpush3.bf16.msra.mxu1 %v11721_v5 }
 0x411   : > { %10035 = vmatprep.subr.bf16.mxu1 %v11454_v34  ;;  %10033 = vmatpush1.bf16.msra.mxu0 %v11468_v49 }
 0x412   : > { %10043 = vmatprep.subr.bf16.mxu0 %v11476_v4 }
 0x413   : > { %9067 = vmatmul.mubr.msk.f32.vlgmr.msra.gmra.mrb[68].mxu1 %vm2464_vm1, %v11510_v3 }
 0x414   : > { %10037 = vmatpush1.bf16.msra.mxu1 %v11459_v45  ;;  %7338 = vmatprep.mubr.f32.mxu1 %v12015_v52 }
 0x415   : > { %10039 = vmatprep.subr.bf16.mxu1 %v11466_v58 }
 0x418   : > { %10041 = vmatpush1.bf16.msra.mxu1 %v11471_v11 }
 0x419   : > { %10051 = vmatprep.subr.bf16.mxu1 %v11478_v9 }
 0x4a6   : > { %v5706_v28 = vpop.f32.mrb[4].mxu0  ;;  %v5777_v34 = vpop.f32.mrb[4].mxu1 }
 0x4a7   : > { %v5708_v23 = vpop.f32.mrb[5].mxu0  ;;  %v5779_v47 = vpop.f32.mrb[5].mxu1 }
 0x4a8   : > { %v5932_v49 = vcombine.low %v5706_v28, %v5708_v23  ;;  %v5933_v4 = vcombine.low %v5777_v34, %v5779_v47 }
 0x4aa   : > { %v5940_v43 = vrot.slane %v5932_v49, %v11314_v15  ;;  %v5947_v3 = vrot.slane %v5933_v4, %v11314_v15 }
 0x4ac   : > { %v5948_v45 = vcombine.low %v5940_v43, %v5947_v3 }
 0x4ae   : > { %8903 = vst [vmem:[%s10836_s6 + $0x80] sm:$0xff] %v5948_v45  ;;  %v5848_v57 = vpop.f32.mrb[12].mxu0  ;;  %v5919_v12 = vpop.f32.mrb[12].mxu1 }
 0x4af   : > { %v5850_v58 = vpop.f32.mrb[13].mxu0  ;;  %v5921_v61 = vpop.f32.mrb[13].mxu1 }
 0x4b0   : > { %v5949_v11 = vcombine.low %v5848_v57, %v5850_v58  ;;  %v5950_v9 = vcombine.low %v5919_v12, %v5921_v61 }
 0x4b2   : > { %v5957_v39 = vrot.slane %v5949_v11, %v11314_v15  ;;  %v5964_v40 = vrot.slane %v5950_v9, %v11314_v15 }
 0x4b4   : > { %v5965_v14 = vcombine.low %v5957_v39, %v5964_v40 }
 0x4b6   : > { %8904 = vst [vmem:[%s10836_s6 + $0x88] sm:$0xff] %v5965_v14  ;;  %v6077_v31 = vpop.f32.mrb[20].mxu0  ;;  %v6148_v28 = vpop.f32.mrb[20].mxu1 }
 0x4b7   : > { %v6079_v34 = vpop.f32.mrb[21].mxu0  ;;  %v6150_v23 = vpop.f32.mrb[21].mxu1 }
 0x4b8   : > { %v6303_v47 = vcombine.low %v6077_v31, %v6079_v34  ;;  %v6304_v49 = vcombine.low %v6148_v28, %v6150_v23 }
 0x4ba   : > { %v6311_v4 = vrot.slane %v6303_v47, %v11314_v15  ;;  %v6318_v43 = vrot.slane %v6304_v49, %v11314_v15 }
 0x4bc   : > { %v6319_v3 = vcombine.low %v6311_v4, %v6318_v43 }
 0x4be   : > { %8909 = vst [vmem:[%s10836_s6 + $0x90] sm:$0xff] %v6319_v3  ;;  %v6219_v45 = vpop.f32.mrb[28].mxu0  ;;  %v6290_v57 = vpop.f32.mrb[28].mxu1 }
 0x4bf   : > { %v6221_v12 = vpop.f32.mrb[29].mxu0  ;;  %v6292_v58 = vpop.f32.mrb[29].mxu1 }
 0x4c0   : > { %v6320_v61 = vcombine.low %v6219_v45, %v6221_v12  ;;  %v6321_v11 = vcombine.low %v6290_v57, %v6292_v58 }
 0x4c2   : > { %v6328_v9 = vrot.slane %v6320_v61, %v11314_v15  ;;  %v6335_v39 = vrot.slane %v6321_v11, %v11314_v15 }
 0x4c4   : > { %v6336_v40 = vcombine.low %v6328_v9, %v6335_v39 }
 0x4c6   : > { %8910 = vst [vmem:[%s10836_s6 + $0x98] sm:$0xff] %v6336_v40  ;;  %v6447_v14 = vpop.f32.mrb[36].mxu0  ;;  %v6518_v31 = vpop.f32.mrb[36].mxu1 }
 0x4c7   : > { %v6449_v28 = vpop.f32.mrb[37].mxu0  ;;  %v6520_v34 = vpop.f32.mrb[37].mxu1 }
 0x4c8   : > { %v6673_v23 = vcombine.low %v6447_v14, %v6449_v28  ;;  %v6674_v47 = vcombine.low %v6518_v31, %v6520_v34 }
 0x4ca   : > { %v6681_v49 = vrot.slane %v6673_v23, %v11314_v15  ;;  %v6688_v4 = vrot.slane %v6674_v47, %v11314_v15 }
 0x4cc   : > { %v6689_v43 = vcombine.low %v6681_v49, %v6688_v4 }
 0x4ce   : > { %8915 = vst [vmem:[%s10836_s6 + $0xa0] sm:$0xff] %v6689_v43  ;;  %v6589_v3 = vpop.f32.mrb[44].mxu0  ;;  %v6660_v45 = vpop.f32.mrb[44].mxu1 }
 0x4cf   : > { %v6591_v57 = vpop.f32.mrb[45].mxu0  ;;  %v6662_v12 = vpop.f32.mrb[45].mxu1 }
 0x4d0   : > { %v6690_v58 = vcombine.low %v6589_v3, %v6591_v57  ;;  %v6691_v61 = vcombine.low %v6660_v45, %v6662_v12 }
 0x4d2   : > { %v6698_v11 = vrot.slane %v6690_v58, %v11314_v15  ;;  %v6705_v9 = vrot.slane %v6691_v61, %v11314_v15 }
 0x4d4   : > { %v6706_v39 = vcombine.low %v6698_v11, %v6705_v9 }
 0x4d6   : > { %8916 = vst [vmem:[%s10836_s6 + $0xa8] sm:$0xff] %v6706_v39  ;;  %v6817_v40 = vpop.f32.mrb[52].mxu0  ;;  %v6888_v14 = vpop.f32.mrb[52].mxu1  ;;  %v7086_v39 = vld [vmem:[#allocation4 + $0x10] sm:$0xff] }
 0x4d7   : > { %v6819_v31 = vpop.f32.mrb[53].mxu0  ;;  %v6890_v28 = vpop.f32.mrb[53].mxu1 }
 0x4d8   : > { %v7043_v34 = vcombine.low %v6817_v40, %v6819_v31  ;;  %v7044_v23 = vcombine.low %v6888_v14, %v6890_v28 }
 0x4da   : > { %v7051_v47 = vrot.slane %v7043_v34, %v11314_v15  ;;  %v7058_v49 = vrot.slane %v7044_v23, %v11314_v15 }
 0x4dc   : > { %v7059_v4 = vcombine.low %v7051_v47, %v7058_v49 }
 0x4de   : > { %8921 = vst [vmem:[%s10836_s6 + $0xb0] sm:$0xff] %v7059_v4  ;;  %v6959_v43 = vpop.f32.mrb[60].mxu0  ;;  %v7030_v3 = vpop.f32.mrb[60].mxu1 }
 0x4df   : > { %v6961_v45 = vpop.f32.mrb[61].mxu0  ;;  %v7032_v57 = vpop.f32.mrb[61].mxu1 }
 0x4e0   : > { %v7060_v12 = vcombine.low %v6959_v43, %v6961_v45  ;;  %v7061_v58 = vcombine.low %v7030_v3, %v7032_v57 }
 0x4e2   : > { %v7068_v61 = vrot.slane %v7060_v12, %v11314_v15  ;;  %v7075_v11 = vrot.slane %v7061_v58, %v11314_v15 }
 0x4e4   : > { %v7076_v9 = vcombine.low %v7068_v61, %v7075_v11 }
 0x4e6   : > { %8922 = vst [vmem:[%s10836_s6 + $0xb8] sm:$0xff] %v7076_v9  ;;  %v7153_v40 = vpop.f32.mrb[68].mxu1 }
 0x4e7   : > { %v11764_v14 = vadd.f32 %v7153_v40, %v7086_v39  ;;  %v9068_v31 = vpop.f32.mrb[69].mxu1 }
 0x4e9   : > { %8924 = vmatmul.mubr.msk.f32.vlgmr.msra.gmra.mrb[6].mxu0 %vm2464_vm1, %v11764_v14  ;;  %8925 = vmatmul.mubr.msk.f32.vlgmr.msra.gmra.mrb[6].mxu1 %vm2464_vm1, %v11764_v14 }
 0x4ea   : > { %10045 = vmatpush1.bf16.msra.mxu0 %v11506_v51  ;;  %10053 = vmatpush1.bf16.msra.mxu1 %v11508_v60  ;;  %v12053_v51 = vld [vmem:[#allocation18_spill] sm:$0xff]  ;;  %v12054_v60 = vld [vmem:[#allocation19_spill] sm:$0xff] }
 0x4eb   : > { %10047 = vmatprep.subr.bf16.mxu0 %v11512_v19  ;;  %10055 = vmatprep.subr.bf16.mxu1 %v11514_v6  ;;  %v12055_v19 = vld [vmem:[#allocation20_spill] sm:$0xff] }
 0x4ec   : > { %7409 = vmatprep.mubr.f32.mxu0 %v12015_v52  ;;  %7480 = vmatprep.mubr.f32.mxu1 %v12015_v52  ;;  %v12056_v6 = vld [vmem:[#allocation28_spill] sm:$0xff] }
 0x4ee   : > { %10049 = vmatpush1.bf16.msra.mxu0 %v11522_v30  ;;  %10057 = vmatpush1.bf16.msra.mxu1 %v11524_v59  ;;  %v12057_v30 = vld [vmem:[#allocation21_spill] sm:$0xff] }
 0x4ef   : > { %10059 = vmatprep.subr.bf16.mxu0 %v11528_v53  ;;  %10067 = vmatprep.subr.bf16.mxu1 %v11530_v8  ;;  %v12058_v59 = vld [vmem:[#allocation29_spill] sm:$0xff]  ;;  %v12059_v53 = vld [vmem:[#allocation22_spill] sm:$0xff] }
 0x4f0   : > { %v12060_v8 = vld [vmem:[#allocation30_spill] sm:$0xff] }
 0x4f1   : > { %8926 = vmatmul.mubr.msk.f32.vlgmr.msra.gmra.mrb[14].mxu0 %vm2464_vm1, %v11764_v14  ;;  %8927 = vmatmul.mubr.msk.f32.vlgmr.msra.gmra.mrb[14].mxu1 %vm2464_vm1, %v11764_v14 }
 0x4f2   : > { %10061 = vmatpush1.bf16.msra.mxu0 %v11536_v26  ;;  %10069 = vmatpush1.bf16.msra.mxu1 %v11538_v29  ;;  %v12061_v26 = vld [vmem:[#allocation23_spill] sm:$0xff] }
 0x4f3   : > { %10063 = vmatprep.subr.bf16.mxu0 %v11542_v41  ;;  %10071 = vmatprep.subr.bf16.mxu1 %v11544_v42  ;;  %v12062_v29 = vld [vmem:[#allocation31_spill] sm:$0xff]  ;;  %v12063_v41 = vld [vmem:[#allocation24_spill] sm:$0xff] }
 0x4f4   : > { %7638 = vmatprep.mubr.f32.mxu0 %v12015_v52  ;;  %7709 = vmatprep.mubr.f32.mxu1 %v12015_v52  ;;  %v12064_v42 = vld [vmem:[#allocation32_spill] sm:$0xff] }
 0x4f6   : > { %10065 = vmatpush1.bf16.msra.mxu0 %v11552_v16  ;;  %10073 = vmatpush1.bf16.msra.mxu1 %v11554_v38  ;;  %v12065_v16 = vld [vmem:[#allocation25_spill] sm:$0xff]  ;;  %v12066_v38 = vld [vmem:[#allocation26_spill] sm:$0xff] }
 0x4f7   : > { %10075 = vmatprep.subr.bf16.mxu0 %v11558_v44  ;;  %10083 = vmatprep.subr.bf16.mxu1 %v11560_v55 }
 0x4f9   : > { %8930 = vmatmul.mubr.msk.f32.vlgmr.msra.gmra.mrb[22].mxu0 %vm2464_vm1, %v11764_v14  ;;  %8931 = vmatmul.mubr.msk.f32.vlgmr.msra.gmra.mrb[22].mxu1 %vm2464_vm1, %v11764_v14 }
 0x4fa   : > { %10077 = vmatpush1.bf16.msra.mxu0 %v11566_v36  ;;  %10085 = vmatpush1.bf16.msra.mxu1 %v11568_v0 }
 0x4fb   : > { %10079 = vmatprep.subr.bf16.mxu0 %v11572_v1  ;;  %10087 = vmatprep.subr.bf16.mxu1 %v11574_v20 }
 0x4fc   : > { %7780 = vmatprep.mubr.f32.mxu0 %v12015_v52  ;;  %7851 = vmatprep.mubr.f32.mxu1 %v12015_v52 }
 0x4fe   : > { %10081 = vmatpush1.bf16.msra.mxu0 %v11582_v37  ;;  %10089 = vmatpush1.bf16.msra.mxu1 %v11584_v25 }
 0x4ff   : > { %10091 = vmatprep.subr.bf16.mxu0 %v11588_v13  ;;  %10099 = vmatprep.subr.bf16.mxu1 %v11590_v21 }
 0x501   : > { %8932 = vmatmul.mubr.msk.f32.vlgmr.msra.gmra.mrb[30].mxu0 %vm2464_vm1, %v11764_v14  ;;  %8933 = vmatmul.mubr.msk.f32.vlgmr.msra.gmra.mrb[30].mxu1 %vm2464_vm1, %v11764_v14 }
 0x502   : > { %10093 = vmatpush1.bf16.msra.mxu0 %v11596_v62  ;;  %10101 = vmatpush1.bf16.msra.mxu1 %v11598_v10 }
 0x503   : > { %10095 = vmatprep.subr.bf16.mxu0 %v11602_v56  ;;  %10103 = vmatprep.subr.bf16.mxu1 %v11604_v2 }
 0x504   : > { %8008 = vmatprep.mubr.f32.mxu0 %v12015_v52  ;;  %8079 = vmatprep.mubr.f32.mxu1 %v12015_v52 }
 0x506   : > { %10097 = vmatpush1.bf16.msra.mxu0 %v12053_v51  ;;  %10105 = vmatpush1.bf16.msra.mxu1 %v12054_v60 }
 0x507   : > { %10107 = vmatprep.subr.bf16.mxu0 %v12055_v19  ;;  %10115 = vmatprep.subr.bf16.mxu1 %v12056_v6 }
 0x509   : > { %8936 = vmatmul.mubr.msk.f32.vlgmr.msra.gmra.mrb[38].mxu0 %vm2464_vm1, %v11764_v14  ;;  %8937 = vmatmul.mubr.msk.f32.vlgmr.msra.gmra.mrb[38].mxu1 %vm2464_vm1, %v11764_v14 }
 0x50a   : > { %10109 = vmatpush1.bf16.msra.mxu0 %v12057_v30  ;;  %10117 = vmatpush1.bf16.msra.mxu1 %v12058_v59 }
 0x50b   : > { %10111 = vmatprep.subr.bf16.mxu0 %v12059_v53  ;;  %10119 = vmatprep.subr.bf16.mxu1 %v12060_v8 }
 0x50c   : > { %8150 = vmatprep.mubr.f32.mxu0 %v12015_v52  ;;  %8221 = vmatprep.mubr.f32.mxu1 %v12015_v52 }
 0x50e   : > { %10113 = vmatpush1.bf16.msra.mxu0 %v12061_v26  ;;  %10121 = vmatpush1.bf16.msra.mxu1 %v12062_v29 }
 0x50f   : > { %10123 = vmatprep.subr.bf16.mxu0 %v11648_v32  ;;  %10131 = vmatprep.subr.bf16.mxu1 %v12063_v41 }
 0x511   : > { %8938 = vmatmul.mubr.msk.f32.vlgmr.msra.gmra.mrb[46].mxu0 %vm2464_vm1, %v11764_v14  ;;  %8939 = vmatmul.mubr.msk.f32.vlgmr.msra.gmra.mrb[46].mxu1 %vm2464_vm1, %v11764_v14 }
 0x512   : > { %10125 = vmatpush1.bf16.msra.mxu0 %v11656_v35  ;;  %10133 = vmatpush1.bf16.msra.mxu1 %v12064_v42 }
 0x513   : > { %10127 = vmatprep.subr.bf16.mxu0 %v12065_v16  ;;  %10135 = vmatprep.subr.bf16.mxu1 %v12066_v38 }
 0x514   : > { %8378 = vmatprep.mubr.f32.mxu0 %v12015_v52  ;;  %8449 = vmatprep.mubr.f32.mxu1 %v12015_v52 }
 0x516   : > { %10129 = vmatpush1.bf16.msra.mxu0 %v11672_v24  ;;  %10137 = vmatpush1.bf16.msra.mxu1 %v11674_v7 }
 0x517   : > { %10139 = vmatprep.subr.bf16.mxu0 %v11678_v46  ;;  %10147 = vmatprep.subr.bf16.mxu1 %v11680_v33 }
 0x519   : > { %8942 = vmatmul.mubr.msk.f32.vlgmr.msra.gmra.mrb[54].mxu0 %vm2464_vm1, %v11764_v14  ;;  %8943 = vmatmul.mubr.msk.f32.vlgmr.msra.gmra.mrb[54].mxu1 %vm2464_vm1, %v11764_v14 }
 0x51a   : > { %10141 = vmatpush1.bf16.msra.mxu0 %v11686_v48  ;;  %10149 = vmatpush1.bf16.msra.mxu1 %v11688_v50 }
 0x51b   : > { %10143 = vmatprep.subr.bf16.mxu0 %v11692_v63  ;;  %10151 = vmatprep.subr.bf16.mxu1 %v11694_v17 }
 0x51c   : > { %8520 = vmatprep.mubr.f32.mxu0 %v12015_v52  ;;  %8591 = vmatprep.mubr.f32.mxu1 %v12015_v52 }
 0x51e   : > { %10145 = vmatpush1.bf16.msra.mxu0 %v11702_v27  ;;  %10153 = vmatpush1.bf16.msra.mxu1 %v11704_v54 }
 0x51f   : > { %10154 = vmatprep.subr.bf16.mxu0 %v12036_v22 }
 0x521   : > { %8944 = vmatmul.mubr.msk.f32.vlgmr.msra.gmra.mrb[62].mxu0 %vm2464_vm1, %v11764_v14  ;;  %8945 = vmatmul.mubr.msk.f32.vlgmr.msra.gmra.mrb[62].mxu1 %vm2464_vm1, %v11764_v14 }
 0x522   : > { %10156 = vmatpush3.bf16.msra.mxu0 %v11712_v18  ;;  %9077 = vmatprep.mubr.msk.f32.mxu0 %vm10582_vm2, %v12015_v52 }
 0x523   : > { %10157 = vmatprep.subr.bf16.mxu0 %v12036_v22 }
 0x526   : > { %10159 = vmatpush3.bf16.msra.mxu0 %v11721_v5 }
 0x529   : > { %9078 = vmatmul.mubr.msk.f32.vlgmr.msra.gmra.mrb[68].mxu0 %vm2464_vm1, %v11764_v14 }
 0x5bc   : > { %v7269_v44 = vpop.f32.mrb[6].mxu0  ;;  %v7340_v55 = vpop.f32.mrb[6].mxu1 }
 0x5bd   : > { %v7271_v36 = vpop.f32.mrb[7].mxu0  ;;  %v7342_v0 = vpop.f32.mrb[7].mxu1 }
 0x5be   : > { %v7495_v1 = vcombine.low %v7269_v44, %v7271_v36  ;;  %v7496_v20 = vcombine.low %v7340_v55, %v7342_v0 }
 0x5c0   : > { %v7503_v37 = vrot.slane %v7495_v1, %v11314_v15  ;;  %v7510_v25 = vrot.slane %v7496_v20, %v11314_v15 }
 0x5c2   : > { %v7511_v13 = vcombine.low %v7503_v37, %v7510_v25 }
 0x5c4   : > { %8928 = vst [vmem:[%s10836_s6 + $0xc0] sm:$0xff] %v7511_v13  ;;  %v7411_v52 = vpop.f32.mrb[14].mxu0  ;;  %v7482_v22 = vpop.f32.mrb[14].mxu1 }
 0x5c5   : > { %v7413_v21 = vpop.f32.mrb[15].mxu0  ;;  %v7484_v62 = vpop.f32.mrb[15].mxu1 }
 0x5c6   : > { %v7512_v10 = vcombine.low %v7411_v52, %v7413_v21  ;;  %v7513_v56 = vcombine.low %v7482_v22, %v7484_v62  ;;  %v8649_v52 = vld [vmem:[#allocation4 + $0x18] sm:$0xff] }
 0x5c8   : > { %v7520_v2 = vrot.slane %v7512_v10, %v11314_v15  ;;  %v7527_v32 = vrot.slane %v7513_v56, %v11314_v15 }
 0x5ca   : > { %v7528_v35 = vcombine.low %v7520_v2, %v7527_v32 }
 0x5cc   : > { %8929 = vst [vmem:[%s10836_s6 + $0xc8] sm:$0xff] %v7528_v35  ;;  %v7640_v24 = vpop.f32.mrb[22].mxu0  ;;  %v7711_v7 = vpop.f32.mrb[22].mxu1 }
 0x5cd   : > { %v7642_v46 = vpop.f32.mrb[23].mxu0  ;;  %v7713_v33 = vpop.f32.mrb[23].mxu1 }
 0x5ce   : > { %v7866_v48 = vcombine.low %v7640_v24, %v7642_v46  ;;  %v7867_v50 = vcombine.low %v7711_v7, %v7713_v33 }
 0x5d0   : > { %v7874_v63 = vrot.slane %v7866_v48, %v11314_v15  ;;  %v7881_v17 = vrot.slane %v7867_v50, %v11314_v15 }
 0x5d2   : > { %v7882_v27 = vcombine.low %v7874_v63, %v7881_v17 }
 0x5d4   : > { %8934 = vst [vmem:[%s10836_s6 + $0xd0] sm:$0xff] %v7882_v27  ;;  %v7782_v54 = vpop.f32.mrb[30].mxu0  ;;  %v7853_v18 = vpop.f32.mrb[30].mxu1 }
 0x5d5   : > { %v7784_v5 = vpop.f32.mrb[31].mxu0  ;;  %v7855_v28 = vpop.f32.mrb[31].mxu1 }
 0x5d6   : > { %v7883_v34 = vcombine.low %v7782_v54, %v7784_v5  ;;  %v7884_v23 = vcombine.low %v7853_v18, %v7855_v28 }
 0x5d8   : > { %v7891_v47 = vrot.slane %v7883_v34, %v11314_v15  ;;  %v7898_v49 = vrot.slane %v7884_v23, %v11314_v15 }
 0x5da   : > { %v7899_v4 = vcombine.low %v7891_v47, %v7898_v49 }
 0x5dc   : > { %8935 = vst [vmem:[%s10836_s6 + $0xd8] sm:$0xff] %v7899_v4  ;;  %v8010_v43 = vpop.f32.mrb[38].mxu0  ;;  %v8081_v3 = vpop.f32.mrb[38].mxu1 }
 0x5dd   : > { %v8012_v45 = vpop.f32.mrb[39].mxu0  ;;  %v8083_v57 = vpop.f32.mrb[39].mxu1 }
 0x5de   : > { %v8236_v12 = vcombine.low %v8010_v43, %v8012_v45  ;;  %v8237_v58 = vcombine.low %v8081_v3, %v8083_v57 }
 0x5e0   : > { %v8244_v61 = vrot.slane %v8236_v12, %v11314_v15  ;;  %v8251_v11 = vrot.slane %v8237_v58, %v11314_v15 }
 0x5e2   : > { %v8252_v9 = vcombine.low %v8244_v61, %v8251_v11 }
 0x5e4   : > { %8940 = vst [vmem:[%s10836_s6 + $0xe0] sm:$0xff] %v8252_v9  ;;  %v8152_v39 = vpop.f32.mrb[46].mxu0  ;;  %v8223_v40 = vpop.f32.mrb[46].mxu1 }
 0x5e5   : > { %v8154_v14 = vpop.f32.mrb[47].mxu0  ;;  %v8225_v31 = vpop.f32.mrb[47].mxu1 }
 0x5e6   : > { %v8253_v51 = vcombine.low %v8152_v39, %v8154_v14  ;;  %v8254_v60 = vcombine.low %v8223_v40, %v8225_v31 }
 0x5e8   : > { %v8261_v19 = vrot.slane %v8253_v51, %v11314_v15  ;;  %v8268_v6 = vrot.slane %v8254_v60, %v11314_v15 }
 0x5ea   : > { %v8269_v30 = vcombine.low %v8261_v19, %v8268_v6 }
 0x5ec   : > { %8941 = vst [vmem:[%s10836_s6 + $0xe8] sm:$0xff] %v8269_v30  ;;  %v8380_v59 = vpop.f32.mrb[54].mxu0  ;;  %v8451_v53 = vpop.f32.mrb[54].mxu1 }
 0x5ed   : > { %v8382_v8 = vpop.f32.mrb[55].mxu0  ;;  %v8453_v26 = vpop.f32.mrb[55].mxu1 }
 0x5ee   : > { %v8606_v29 = vcombine.low %v8380_v59, %v8382_v8  ;;  %v8607_v41 = vcombine.low %v8451_v53, %v8453_v26 }
 0x5f0   : > { %v8614_v42 = vrot.slane %v8606_v29, %v11314_v15  ;;  %v8621_v16 = vrot.slane %v8607_v41, %v11314_v15 }
 0x5f2   : > { %v8622_v38 = vcombine.low %v8614_v42, %v8621_v16 }
 0x5f4   : > { %8946 = vst [vmem:[%s10836_s6 + $0xf0] sm:$0xff] %v8622_v38  ;;  %v8522_v44 = vpop.f32.mrb[62].mxu0  ;;  %v8593_v55 = vpop.f32.mrb[62].mxu1 }
 0x5f5   : > { %v8524_v36 = vpop.f32.mrb[63].mxu0  ;;  %v8595_v0 = vpop.f32.mrb[63].mxu1 }
 0x5f6   : > { %v8623_v1 = vcombine.low %v8522_v44, %v8524_v36  ;;  %v8624_v20 = vcombine.low %v8593_v55, %v8595_v0 }
 0x5f8   : > { %v8631_v37 = vrot.slane %v8623_v1, %v11314_v15  ;;  %v8638_v25 = vrot.slane %v8624_v20, %v11314_v15 }
 0x5fa   : > { %v8639_v13 = vcombine.low %v8631_v37, %v8638_v25 }
 0x5fc   : > { %8947 = vst [vmem:[%s10836_s6 + $0xf8] sm:$0xff] %v8639_v13  ;;  %v8716_v22 = vpop.f32.mrb[68].mxu0 }
 0x5fd   : > { %v8717_v21 = vadd.f32 %v8716_v22, %v8649_v52  ;;  %v9079_v62 = vpop.f32.mrb[69].mxu0 }
 0x5fe   : > { %10508 = shalt.err (!%p10505_p10)
}
 0x5ff   : > { %s10509_s6 = scalar_lea.hbm %s11902_s10, 4096  ;;  %s10513_s16 = scalar_lea.hbm %s11955_s5, 8192 }
 0x600   : > { %p10510_p3 = scmp.ne.s32.totalorder %s11902_s10, %s10509_s6  ;;  %p10514_p0 = scmp.lt.u32.totalorder %s11902_s10, %s11955_s5 }
 0x601   : > { %p10515_p6 = scmp.lt.u32.totalorder %s10513_s16, %s10509_s6  ;;  %p10517_p11 = scmp.lt.u32.totalorder %s10509_s6, %s11902_s10 }
 0x602   : > { %p10511_p12 = pnand %p10510_p3, %p10766_p5 }
 0x603   : > { %p10516_p8 = por %p10515_p6, %p10514_p0 }
 0x604   : > { %p10512_p9 = pneg %p10511_p12 }
 0x605   : > { %p10518_p7 = por %p10517_p11, %p10516_p8 }
 0x607   : > { %p10519_p13 = pnand %p10518_p7, %p10512_p9 }
 0x609   : > { %10522 = shalt.err (!%p10519_p13)
}
 0x60a   : > { %s10585_s12 = smov 1024   ;;  %s10586_s15 = smov 64   ;;  %8720 = vst.msk [vmem:[#allocation2] sm:$0xff] %vm2464_vm1, %v8717_v21 }
 0x60b   : > { %10302 = dma.vmem_to_hbm [thread:$0]  (%p10766_p5), %s11904_s9, 4096, %s11902_s10, %s8722_s22, %s10585_s12, %s10585_s12, %s10586_s15  }
 0x60c PF: > { %s8751_s30 = sand.u32 1, %s10557_s18   ;;  %p12067_p2 = scmp.ne.s32.totalorder %s11993_s25, 0 }
 0x60d   : > { %p12068_p1 = scmp.ge.s32.totalorder %s10569_s21, 2  ;;  %s8752_s8 = scalar_lea.sflag [#allocation7], %s8751_s30 }
 0x60f   : > { %p10319_p4 = pnand %p12068_p1, %p12067_p2 }
 0x611   : > { %10552 = dma.done.wait (!%p10319_p4), %s8752_s8, 4096  }
 0x612   : > { %10554 = vsyncadd (!%p10319_p4), %s8752_s8, 4294963200  ;;  %p20_p10 = scmp.ge.s32.totalorder %s10752_s28, 4   ;;  %s12069_s18 = smov %s10561_s19 }
 0x613   : > { %s12070_s19 = smov %s10565_s20  ;;  %s12071_s20 = smov %s10762_s7 }
 0x614   : > { %s12072_s21 = smov %s10752_s28  ;;  %22 = sbr.rel (!%p20_p10) target bundleno = 7 (0x7), region = 111 }
 0x61b   :  { %8757 = vsyncpa [#allocation6], 1 }
 0x61c   :  { %8759 = vsyncpa [#allocation6 + $0x1], 1 }
 0x61d   :  { %8760 = vsyncpa [#allocation9], 1 }
 0x61e   :  { %8761 = vsyncpa [#allocation12], 1 }
 0x61f   :  { %8762 = vsyncpa [#allocation7], 1 }
 0x620   :  { %8764 = vsyncpa [#allocation7 + $0x1], 1 }

</bundles_post_ra>
